<compile_context>
chip_gen: v7x
topology: tpu7x:2x2x1
jax: 0.10.0
libtpu: 0.0.40
codegen_flags: <defaults>
</compile_context>

<pallas_src>
import functools

import jax
import jax.numpy as jnp
import numpy as np
from jax.experimental import pallas as pl
from jax.experimental.pallas import tpu as pltpu


def _round_up(x, m):
    return (x + m - 1) // m * m


def _binconv_kernel(x_ref, w_ref, o_ref, patch_ref, *, kh_sz, kw_sz, oh, ow):
    """Grid = (batch, cout_tile).

    x_ref:     (1, HP, WP, Cin)         VMEM (resident across Cout tiles)
    w_ref:     (KH*KW*Cin, COUT_TILE)   VMEM, pre-binarized bf16 weight slab
    o_ref:     (1, OH*OW, COUT_TILE)    VMEM, lane-dense output slab
    patch_ref: (OH*OW, KH*KW*Cin)       VMEM scratch, bf16 im2col patch
    """
    cin = x_ref.shape[-1]

    # Build the im2col patch once per image; reuse it across Cout tiles.
    @pl.when(pl.program_id(1) == 0)
    def _():
        cols = []
        for dh in range(kh_sz):
            for dw in range(kw_sz):
                piece = x_ref[0, dh:dh + oh, dw:dw + ow, :]      # (OH, OW, Cin)
                cols.append(piece.reshape(oh * ow, cin))         # (OH*OW, Cin)
        # Column order (dh, dw, ci) matches the wrapper's weight-slab packing.
        patch_ref[...] = jnp.concatenate(cols, axis=-1).astype(patch_ref.dtype)

    # Single fused, lane-dense MXU matmul:
    #   (OH*OW, KH*KW*Cin) @ (KH*KW*Cin, COUT_TILE) -> f32
    o_ref[0] = jnp.dot(patch_ref[...], w_ref[...],
                       preferred_element_type=jnp.float32).astype(o_ref.dtype)


def bin_conv2d(x_nchw, weights_real_oihw, *, stride=1, padding=0,
               dilation=1, groups=1):
    """Binary-weight conv2d matching BinConv2d.forward (module defaults)."""
    assert stride == 1 and dilation == 1 and groups == 1, \
        "only the module defaults (stride=1, dilation=1, groups=1) are supported"

    n, cin, h, w = x_nchw.shape
    cout, cin_w, kh_sz, kw_sz = weights_real_oihw.shape
    assert cin == cin_w

    # Glue: layout conversion + optional spatial padding, outside the kernel.
    x = jnp.transpose(x_nchw, (0, 2, 3, 1))                      # NHWC
    if padding:
        x = jnp.pad(x, ((0, 0), (padding, padding), (padding, padding), (0, 0)))
    hp, wp = x.shape[1], x.shape[2]
    oh = hp - kh_sz + 1
    ow = wp - kw_sz + 1
    ohw = oh * ow
    kc = kh_sz * kw_sz * cin

    # Binarize ONCE in the wrapper: sign(clamp(w,-1,1)) == sign(w).  Pack as a
    # lane-dense (KC, COUT_PAD) bf16 slab; Cout padded to a 128 multiple so
    # the kernel's output stores are full-lane.  Zero padding columns produce
    # zero outputs and are sliced off below.
    cout_pad = _round_up(cout, 128)
    cout_tile = 256 if cout_pad % 256 == 0 else 128   # 256 tiles suit v6e/v7x MXU
    n_ct = cout_pad // cout_tile

    w_bin = jnp.sign(weights_real_oihw)                          # OIHW, {-1,0,+1}
    w_slab = jnp.transpose(w_bin, (2, 3, 1, 0)).reshape(kc, cout)  # (KC, Cout)
    w_slab = jnp.pad(w_slab, ((0, 0), (0, cout_pad - cout)))
    w_slab = w_slab.astype(jnp.bfloat16)                         # exact for +-1/0

    kernel = functools.partial(_binconv_kernel, kh_sz=kh_sz, kw_sz=kw_sz,
                               oh=oh, ow=ow)

    out = pl.pallas_call(
        kernel,
        out_shape=jax.ShapeDtypeStruct((n, ohw, cout_pad), x.dtype),
        grid_spec=pltpu.PrefetchScalarGridSpec(
            num_scalar_prefetch=0,
            grid=(n, n_ct),
            in_specs=[
                # Image block stays resident across the inner Cout-tile axis.
                pl.BlockSpec((1, hp, wp, cin), lambda b, j: (b, 0, 0, 0)),
                pl.BlockSpec((kc, cout_tile), lambda b, j: (0, j)),
            ],
            out_specs=pl.BlockSpec((1, ohw, cout_tile), lambda b, j: (b, 0, j)),
            scratch_shapes=[pltpu.VMEM((ohw, kc), jnp.bfloat16)],
        ),
        compiler_params=pltpu.CompilerParams(
            dimension_semantics=("parallel", "arbitrary")),
    )(x, w_slab)

    out = out[:, :, :cout].reshape(n, oh, ow, cout)              # drop Cout pad
    return jnp.transpose(out, (0, 3, 1, 2))                      # back to NCHW


if __name__ == "__main__":
    # Small, module-consistent shapes.
    N, CIN, H, W = 2, 4, 16, 16
    COUT, K = 8, 3

    key = jax.random.PRNGKey(0)
    kx, kw_key = jax.random.split(key)

    x = jax.random.normal(kx, (N, CIN, H, W), dtype=jnp.float32)

    # Deterministic kaiming_normal_-like init: std = sqrt(2 / fan_in).
    fan_in = CIN * K * K
    std = float(np.sqrt(2.0 / fan_in))
    weights_real = std * jax.random.normal(kw_key, (COUT, CIN, K, K),
                                           dtype=jnp.float32)

    out = bin_conv2d(x, weights_real)
    out = jax.block_until_ready(out)

    # Reference: pure JAX/XLA conv with binarized weights (module semantics).
    w_bin = jnp.sign(jnp.clip(weights_real, -1.0, 1.0))
    ref = jax.lax.conv_general_dilated(
        x, w_bin, window_strides=(1, 1), padding="VALID",
        dimension_numbers=("NCHW", "OIHW", "NCHW"))
    assert out.shape == (N, COUT, H - K + 1, W - K + 1)
    # Kernel uses bf16 activations on the MXU (weights +-1/0 are exact in
    # bf16; accumulation is f32), so tolerance is loosened accordingly.
    np.testing.assert_allclose(np.asarray(out), np.asarray(ref),
                               rtol=2e-2, atol=1e-1)

    print("KERNEL_OK")
</pallas_src>

<mosaic_0001>
module attributes {stable_mosaic.version = 11 : i64} {
  func.func @_binconv_kernel(%arg0: i32, %arg1: i32, %arg2: memref<1x16x16x4xf32, #tpu.memory_space<vmem>>, %arg3: memref<36x128xbf16, #tpu.memory_space<vmem>>, %arg4: memref<1x196x128xf32, #tpu.memory_space<vmem>>, %arg5: memref<196x36xbf16, #tpu.memory_space<vmem>>) attributes {dimension_semantics = [#tpu.dimension_semantics<parallel>, #tpu.dimension_semantics<arbitrary>], iteration_bounds = array<i64: 2, 1>, scalar_prefetch = 0 : i64, scratch_operands = 1 : i64, tpu.core_type = #tpu.core_type<tc>, window_params = [{transform_indices = @transform_0, window_bounds = array<i64: 1, 16, 16, 4>}, {transform_indices = @transform_1, window_bounds = array<i64: 36, 128>}, {transform_indices = @transform_2, window_bounds = array<i64: 1, 196, 128>}]} {
    %c0_i32 = arith.constant 0 : i32
    %0 = arith.cmpi eq, %arg1, %c0_i32 : i32
    %1 = arith.extui %0 : i1 to i32
    %c0_i32_0 = arith.constant 0 : i32
    %2 = arith.cmpi ne, %1, %c0_i32_0 : i32
    scf.if %2 {
      %c0_7 = arith.constant 0 : index
      %c0_8 = arith.constant 0 : index
      %c0_9 = arith.constant 0 : index
      %c0_10 = arith.constant 0 : index
      %9 = vector.load %arg2[%c0_7, %c0_8, %c0_9, %c0_10] : memref<1x16x16x4xf32, #tpu.memory_space<vmem>>, vector<1x14x14x4xf32>
      %10 = vector.shape_cast %9 : vector<1x14x14x4xf32> to vector<14x14x4xf32>
      %11 = vector.shape_cast %10 : vector<14x14x4xf32> to vector<196x4xf32>
      %c0_11 = arith.constant 0 : index
      %c0_12 = arith.constant 0 : index
      %c1 = arith.constant 1 : index
      %c0_13 = arith.constant 0 : index
      %12 = vector.load %arg2[%c0_11, %c0_12, %c1, %c0_13] : memref<1x16x16x4xf32, #tpu.memory_space<vmem>>, vector<1x14x14x4xf32>
      %13 = vector.shape_cast %12 : vector<1x14x14x4xf32> to vector<14x14x4xf32>
      %14 = vector.shape_cast %13 : vector<14x14x4xf32> to vector<196x4xf32>
      %c0_14 = arith.constant 0 : index
      %c0_15 = arith.constant 0 : index
      %c2 = arith.constant 2 : index
      %c0_16 = arith.constant 0 : index
      %15 = vector.load %arg2[%c0_14, %c0_15, %c2, %c0_16] : memref<1x16x16x4xf32, #tpu.memory_space<vmem>>, vector<1x14x14x4xf32>
      %16 = vector.shape_cast %15 : vector<1x14x14x4xf32> to vector<14x14x4xf32>
      %17 = vector.shape_cast %16 : vector<14x14x4xf32> to vector<196x4xf32>
      %c0_17 = arith.constant 0 : index
      %c1_18 = arith.constant 1 : index
      %c0_19 = arith.constant 0 : index
      %c0_20 = arith.constant 0 : index
      %18 = vector.load %arg2[%c0_17, %c1_18, %c0_19, %c0_20] : memref<1x16x16x4xf32, #tpu.memory_space<vmem>>, vector<1x14x14x4xf32>
      %19 = vector.shape_cast %18 : vector<1x14x14x4xf32> to vector<14x14x4xf32>
      %20 = vector.shape_cast %19 : vector<14x14x4xf32> to vector<196x4xf32>
      %c0_21 = arith.constant 0 : index
      %c1_22 = arith.constant 1 : index
      %c1_23 = arith.constant 1 : index
      %c0_24 = arith.constant 0 : index
      %21 = vector.load %arg2[%c0_21, %c1_22, %c1_23, %c0_24] : memref<1x16x16x4xf32, #tpu.memory_space<vmem>>, vector<1x14x14x4xf32>
      %22 = vector.shape_cast %21 : vector<1x14x14x4xf32> to vector<14x14x4xf32>
      %23 = vector.shape_cast %22 : vector<14x14x4xf32> to vector<196x4xf32>
      %c0_25 = arith.constant 0 : index
      %c1_26 = arith.constant 1 : index
      %c2_27 = arith.constant 2 : index
      %c0_28 = arith.constant 0 : index
      %24 = vector.load %arg2[%c0_25, %c1_26, %c2_27, %c0_28] : memref<1x16x16x4xf32, #tpu.memory_space<vmem>>, vector<1x14x14x4xf32>
      %25 = vector.shape_cast %24 : vector<1x14x14x4xf32> to vector<14x14x4xf32>
      %26 = vector.shape_cast %25 : vector<14x14x4xf32> to vector<196x4xf32>
      %c0_29 = arith.constant 0 : index
      %c2_30 = arith.constant 2 : index
      %c0_31 = arith.constant 0 : index
      %c0_32 = arith.constant 0 : index
      %27 = vector.load %arg2[%c0_29, %c2_30, %c0_31, %c0_32] : memref<1x16x16x4xf32, #tpu.memory_space<vmem>>, vector<1x14x14x4xf32>
      %28 = vector.shape_cast %27 : vector<1x14x14x4xf32> to vector<14x14x4xf32>
      %29 = vector.shape_cast %28 : vector<14x14x4xf32> to vector<196x4xf32>
      %c0_33 = arith.constant 0 : index
      %c2_34 = arith.constant 2 : index
      %c1_35 = arith.constant 1 : index
      %c0_36 = arith.constant 0 : index
      %30 = vector.load %arg2[%c0_33, %c2_34, %c1_35, %c0_36] : memref<1x16x16x4xf32, #tpu.memory_space<vmem>>, vector<1x14x14x4xf32>
      %31 = vector.shape_cast %30 : vector<1x14x14x4xf32> to vector<14x14x4xf32>
      %32 = vector.shape_cast %31 : vector<14x14x4xf32> to vector<196x4xf32>
      %c0_37 = arith.constant 0 : index
      %c2_38 = arith.constant 2 : index
      %c2_39 = arith.constant 2 : index
      %c0_40 = arith.constant 0 : index
      %33 = vector.load %arg2[%c0_37, %c2_38, %c2_39, %c0_40] : memref<1x16x16x4xf32, #tpu.memory_space<vmem>>, vector<1x14x14x4xf32>
      %34 = vector.shape_cast %33 : vector<1x14x14x4xf32> to vector<14x14x4xf32>
      %35 = vector.shape_cast %34 : vector<14x14x4xf32> to vector<196x4xf32>
      %36 = tpu.concatenate %11, %14, %17, %20, %23, %26, %29, %32, %35 in 1 : vector<196x4xf32>, vector<196x4xf32>, vector<196x4xf32>, vector<196x4xf32>, vector<196x4xf32>, vector<196x4xf32>, vector<196x4xf32>, vector<196x4xf32>, vector<196x4xf32> -> vector<196x36xf32>
      %37 = arith.truncf %36 : vector<196x36xf32> to vector<196x36xbf16>
      %c0_41 = arith.constant 0 : index
      %c0_42 = arith.constant 0 : index
      %38 = vector.load %arg5[%c0_41, %c0_42] : memref<196x36xbf16, #tpu.memory_space<vmem>>, vector<196x36xbf16>
      tpu.vector_store %arg5[%c0_41, %c0_42], %37 {strides = array<i32>} : memref<196x36xbf16, #tpu.memory_space<vmem>>, vector<196x36xbf16>,
    } else {
    }
    %c0 = arith.constant 0 : index
    %c0_1 = arith.constant 0 : index
    %3 = vector.load %arg5[%c0, %c0_1] : memref<196x36xbf16, #tpu.memory_space<vmem>>, vector<196x36xbf16>
    %c0_2 = arith.constant 0 : index
    %c0_3 = arith.constant 0 : index
    %4 = vector.load %arg3[%c0_2, %c0_3] : memref<36x128xbf16, #tpu.memory_space<vmem>>, vector<36x128xbf16>
    %cst = arith.constant dense<0.000000e+00> : vector<196x128xf32>
    %5 = tpu.matmul %3, %4, %cst {dimension_numbers = #tpu.dot_dimension_numbers<[1], [0], [0], [1], [0, 0, 1, 1], [], []>} : vector<196x36xbf16>, vector<36x128xbf16>, vector<196x128xf32> -> vector<196x128xf32>
    %c0_4 = arith.constant 0 : index
    %c0_5 = arith.constant 0 : index
    %c0_6 = arith.constant 0 : index
    %6 = vector.load %arg4[%c0_4, %c0_5, %c0_6] : memref<1x196x128xf32, #tpu.memory_space<vmem>>, vector<1x196x128xf32>
    %7 = vector.shape_cast %6 : vector<1x196x128xf32> to vector<196x128xf32>
    %8 = vector.shape_cast %5 : vector<196x128xf32> to vector<1x196x128xf32>
    tpu.vector_store %arg4[%c0_4, %c0_5, %c0_6], %8 {strides = array<i32>} : memref<1x196x128xf32, #tpu.memory_space<vmem>>, vector<1x196x128xf32>,
    return
  }
  func.func @transform_0(%arg0: i32, %arg1: i32) -> (i32, i32, i32, i32) {
    %c0_i32 = arith.constant 0 : i32
    %c0_i32_0 = arith.constant 0 : i32
    %c0_i32_1 = arith.constant 0 : i32
    %c0_i32_2 = arith.constant 0 : i32
    return %arg0, %c0_i32, %c0_i32_0, %c0_i32_1 : i32, i32, i32, i32
  }
  func.func @transform_1(%arg0: i32, %arg1: i32) -> (i32, i32) {
    %c0_i32 = arith.constant 0 : i32
    %c0_i32_0 = arith.constant 0 : i32
    return %c0_i32, %arg1 : i32, i32
  }
  func.func @transform_2(%arg0: i32, %arg1: i32) -> (i32, i32, i32) {
    %c0_i32 = arith.constant 0 : i32
    %c0_i32_0 = arith.constant 0 : i32
    return %arg0, %c0_i32, %arg1 : i32, i32, i32
  }
}

</mosaic_0001>

<bundles_post_ra>
// kernel: tpu_custom_call.1
= control target key start
LH: loop header
LB: loop body
LE: loop exit
PB: predicated region body
PF: predicated region fallthrough
CT: control target
= control target key end

     0   :  { %s11081_s9 = smov 0   ;;  %s11083_s10 = smov 0   ;;  %s14242_s0 = inlined_call_operand.vmem [shape: f32[2,16,16,4], index: 0, kind: input, shape index: {}]   ;;  %s14243_s1 = inlined_call_operand.vmem [shape: bf16[36,128], index: 1, kind: input, shape index: {}]   ;;  %s14244_s2 = inlined_call_operand.vmem [shape: f32[2,196,128], index: 2, kind: output, shape index: {}]  }
   0x1   :  { %s11085_s11 = smov 0  }
   0x2 LB: > { %s24_s12 = sadd.s32 1, %s11049_s10  ;;  %p9966_p0 = scmp.ge.s32.totalorder %s11053_s11, 1  ;;  %s11053_s11 = sphi %s11085_s11, %s12_s11   ;;  %s11049_s10 = sphi %s11083_s10, %s14403_s10   ;;  %s11045_s9 = sphi %s11081_s9, %s14402_s9  }
   0x3   : > { %p26_p1 = scmp.ge.s32.totalorder %s24_s12, 2  ;;  %p135_p2 = scmp.lt.s32.totalorder %s11053_s11, 3 }
   0x5   : > { %s14405_s12 = smov (%p26_p1, %s24_s12), 0  ;;  %p136_p3 = pnand %p9966_p0, %p135_p2 }
   0x7   : > { %139 = sbr.rel (%p136_p3) target bundleno = 922 (0x39a), region = 28 }
   0xe   : > { %p164_p4 = scmp.lt.s32.totalorder %s11045_s9, 1  ;;  %v246_v0 = vlaneseq  ;;  %v11055_v1 = vmov 1983009808   ;;  %s11056_s17 = smov 4   ;;  %vm9219_vm0 = vcmask 31744   ;;  %vm9245_vm1 = vcmask 64512  }
   0xf   : > { %v244_v2 = vunpack.c.l.s4 %v11055_v1  ;;  %s11057_s18 = smov 8   ;;  %s11058_s19 = smov 16   ;;  %vm9271_vm2 = vcmask 97280   ;;  %vm9297_vm3 = vcmask 130048   ;;  %vm9323_vm4 = vcmask 162816  }
  0x10   : > { %s14407_s9 = smov (!%p164_p4, %s11045_s9), 1  ;;  %v247_v3 = vshrl.u32 %v246_v0, 7  ;;  %s11059_s20 = smov 12   ;;  %vm9349_vm5 = vcmask 195584   ;;  %vm9375_vm6 = vcmask 228352   ;;  %vm9401_vm7 = vcmask 261120  }
  0x11   : > { %v245_v4 = vunpack.c.0.s8 %v244_v2  ;;  %s10194_s13 = sshll.u32 %s14407_s9, 8  ;;  %s11060_s21 = smov 24   ;;  %vm9528_vm8 = vcmask 289792   ;;  %vm9703_vm9 = vcmask 1041408   ;;  %vm11065_vm10 = vmmov 0  }
  0x12   : > { %s11105_s16 = scalar_lea.vmem %s14242_s0, %s10194_s13  ;;  %s11061_s22 = smov 20   ;;  %vm9663_vm11 = vcmask 293888   ;;  %vm9553_vm12 = vcmask 287744  }
  0x13   : > { %v11107_v5 = vsub.s32 %v245_v4, %v247_v3  ;;  %v11110_v6 = vld [vmem:[%s11105_s16 + $0x21] sm:$0xff]  ;;  %v709_v7 = vld [vmem:[%s11105_s16 + $0x29] sm:$0x3f]  ;;  %v710_v8 = vld [vmem:[%s11105_s16 + $0x31] sm:$0xff]  ;;  %s11062_s23 = smov 32   ;;  %s11063_s24 = smov 28  }
  0x14   : > { %v826_v9 = vcombine.high %v11110_v6, %v11110_v6  ;;  %v843_v10 = vcombine.high %v709_v7, %v709_v7  ;;  %v859_v12 = vcombine.high %v710_v8, %v710_v8  ;;  %v704_v13 = vld [vmem:[%s11105_s16 + $0x1] sm:$0xff]  ;;  %v705_v14 = vld [vmem:[%s11105_s16 + $0x9] sm:$0x3f]  ;;  %v706_v24 = vld [vmem:[%s11105_s16 + $0x11] sm:$0xff]  ;;  %s10300_s3 = smul.u32 200, %s14407_s9 }
  0x15   : > { %v850_v11 = vrot.slane %v709_v7, %v11107_v5  ;;  %v11120_v15 = vrot.slane %v710_v8, %v11107_v5  ;;  %v760_v16 = vcombine.high %v704_v13, %v704_v13  ;;  %v767_v17 = vrot.slane %v704_v13, %v11107_v5  ;;  %v711_v36 = vld [vmem:[%s11105_s16 + $0x39] sm:$0x3f]  ;;  %v712_v47 = vld [vmem:[%s11105_s16 + $0x41] sm:$0xff] }
  0x16   : > { %v777_v18 = vcombine.high %v705_v14, %v705_v14  ;;  %v840_v19 = vrot.slane %v826_v9, %v11107_v5  ;;  %v857_v20 = vrot.slane %v843_v10, %v11107_v5  ;;  %v873_v22 = vrot.slane %v859_v12, %v11107_v5  ;;  %v707_v58 = vld [vmem:[%s11105_s16 + $0x19] sm:$0x3f]  ;;  %s14205_s6 = scalar_lea.vmem %s14244_s2, %s10300_s3 }
  0x17   : > { %v858_v21 = vcombine.high %v850_v11, %v850_v11  ;;  %v11128_v23 = vcombine.high %v11120_v15, %v11120_v15  ;;  %v774_v25 = vrot.slane %v760_v16, %v11107_v5  ;;  %v775_v26 = vcombine.high %v767_v17, %v767_v17 }
  0x18   : > { %v784_v27 = vrot.slane %v705_v14, %v11107_v5  ;;  %v842_v28 = vcombine.high %v840_v19, %v840_v19  ;;  %v875_v29 = vcombine.high %v873_v22, %v873_v22  ;;  %v5376_v31 = vcombine.low %v857_v20, %v11120_v15 }
  0x19   : > { %v5360_v30 = vcombine.low %v850_v11, %v858_v21  ;;  %v5377_v32 = vcombine.low %v11128_v23, %v873_v22  ;;  %v776_v33 = vcombine.high %v774_v25, %v774_v25  ;;  %v791_v34 = vrot.slane %v777_v18, %v11107_v5  ;;  %v715_v18 = vld [vmem:[%s11105_s16 + $0x59] sm:$0x3f] }
  0x1a   : > { %v792_v35 = vcombine.high %v784_v27, %v784_v27  ;;  %v5359_v37 = vcombine.low %v840_v19, %v842_v28  ;;  %v5384_v39 = vrot.slane %v5376_v31, %v11107_v5  ;;  %v793_v40 = vcombine.high %v706_v24, %v706_v24 }
  0x1b   : > { %v5374_v38 = vrot.slane %v5360_v30, %v11107_v5  ;;  %v5391_v41 = vrot.slane %v5377_v32, %v11107_v5  ;;  %v11141_v42 = vrot.slane %v706_v24, %v11107_v5  ;;  %v5291_v43 = vcombine.low %v767_v17, %v775_v26  ;;  %v716_v24 = vld [vmem:[%s11105_s16 + $0x61] sm:$0xff] }
  0x1c   : > { %v5292_v44 = vcombine.low %v774_v25, %v776_v33  ;;  %v11144_v45 = vrot.slane %v5359_v37, %v11107_v5  ;;  %v5308_v46 = vcombine.low %v784_v27, %v792_v35  ;;  %v876_v48 = vcombine.high %v711_v36, %v711_v36  ;;  %v713_v37 = vld [vmem:[%s11105_s16 + $0x49] sm:$0x3f] }
  0x1d   : > { %v883_v49 = vrot.slane %v711_v36, %v11107_v5  ;;  %v5392_v50 = vcombine.low %v5384_v39, %v5391_v41  ;;  %v11150_v51 = vcombine.high %v11141_v42, %v11141_v42  ;;  %v5299_v52 = vrot.slane %v5291_v43, %v11107_v5 }
  0x1e   : > { %v5306_v53 = vrot.slane %v5292_v44, %v11107_v5  ;;  %v5375_v54 = vcombine.low %v11144_v45, %v5374_v38  ;;  %v5309_v55 = vcombine.low %v791_v34, %v11141_v42  ;;  %v5316_v56 = vrot.slane %v5308_v46, %v11107_v5  ;;  %v11193_v34 = vld [vmem:[%s11105_s16 + $0x69] sm:$0x3f] }
  0x1f   : > { %v890_v57 = vrot.slane %v876_v48, %v11107_v5  ;;  %v891_v60 = vcombine.high %v883_v49, %v883_v49  ;;  %v892_v61 = vcombine.high %v712_v47, %v712_v47  ;;  %v899_v62 = vrot.slane %v712_v47, %v11107_v5 }
  0x20   : > { %v5307_v59 = vcombine.low %v5299_v52, %v5306_v53  ;;  %v10346_v63 = vpack.i.bf16 %v5392_v50, %v5375_v54  ;;  %v5323_v0 = vrot.slane %v5309_v55, %v11107_v5  ;;  %v5393_v1 = vcombine.low %v875_v29, %v883_v49  ;;  %v714_v52 = vld [vmem:[%s11105_s16 + $0x51] sm:$0xff] }
  0x21   : > { %v11162_v2 = vrot.slane %v793_v40, %v11107_v5  ;;  %v906_v3 = vrot.slane %v892_v61, %v11107_v5  ;;  %v907_v4 = vcombine.high %v899_v62, %v899_v62  ;;  %v5394_v7 = vcombine.low %v891_v60, %v890_v57 }
  0x22   : > { %v810_v8 = vcombine.high %v707_v58, %v707_v58  ;;  %10347 = vrot.lane.b32.xlu1 %v10346_v63, %s11056_s17  ;;  %v5324_v9 = vcombine.low %v5316_v56, %v5323_v0  ;;  %v5401_v10 = vrot.slane %v5393_v1, %v11107_v5  ;;  %v817_v12 = vrot.slane %v707_v58, %v11107_v5 }
  0x23   : > { %v11169_v11 = vcombine.high %v11162_v2, %v11162_v2  ;;  %v908_v13 = vcombine.high %v906_v3, %v906_v3  ;;  %v5408_v14 = vrot.slane %v5394_v7, %v11107_v5  ;;  %v5410_v16 = vcombine.low %v899_v62, %v907_v4  ;;  %v720_v62 = vld [vmem:[%s11105_s16 + $0x81] sm:$0xff] }
  0x24   : > { %v824_v17 = vrot.slane %v810_v8, %v11107_v5  ;;  %v10336_v19 = vpack.i.bf16 %v5324_v9, %v5307_v59  ;;  %v825_v20 = vcombine.high %v817_v12, %v817_v12  ;;  %v11177_v21 = vrot.slane %v11110_v6, %v11107_v5 }
  0x25   : > { %v5325_v22 = vcombine.low %v11150_v51, %v11162_v2  ;;  %v5409_v25 = vcombine.low %v5401_v10, %v5408_v14  ;;  %v5411_v26 = vcombine.low %v906_v3, %v908_v13  ;;  %v5418_v27 = vrot.slane %v5410_v16, %v11107_v5  ;;  %v721_v14 = vld [vmem:[%s11105_s16 + $0x89] sm:$0x3f] }
  0x26   : > { %v5326_v28 = vcombine.low %v11169_v11, %v817_v12  ;;  %10337 = vrot.lane.b32.xlu0 %v10336_v19, %s11056_s17  ;;  %v11187_v29 = vcombine.high %v11177_v21, %v11177_v21  ;;  %v5342_v30 = vcombine.low %v825_v20, %v824_v17  ;;  %v942_v31 = vcombine.high %v715_v18, %v715_v18 }
  0x27   : > { %v5333_v6 = vrot.slane %v5325_v22, %v11107_v5  ;;  %v5425_v32 = vrot.slane %v5411_v26, %v11107_v5  ;;  %v949_v35 = vrot.slane %v715_v18, %v11107_v5  ;;  %v958_v36 = vcombine.high %v716_v24, %v716_v24 }
  0x28   : > { %v5340_v33 = vrot.slane %v5326_v28, %v11107_v5  ;;  %v5343_v38 = vcombine.low %v11177_v21, %v11187_v29  ;;  %v5350_v39 = vrot.slane %v5342_v30, %v11107_v5  ;;  %v956_v40 = vrot.slane %v942_v31, %v11107_v5  ;;  %v11227_v30 = vld [vmem:[%s11105_s16 + $0x91] sm:$0xff] }
  0x29   : > { %v965_v41 = vrot.slane %v716_v24, %v11107_v5  ;;  %v5426_v43 = vcombine.low %v5418_v27, %v5425_v32  ;;  %v957_v46 = vcombine.high %v949_v35, %v949_v35  ;;  %v972_v47 = vrot.slane %v958_v36, %v11107_v5 }
  0x2a   : > { %v5341_v44 = vcombine.low %v5333_v6, %v5340_v33  ;;  %v11204_v48 = vrot.slane %v5343_v38, %v11107_v5  ;;  %v982_v50 = vrot.slane %v11193_v34, %v11107_v5  ;;  %v909_v53 = vcombine.high %v713_v37, %v713_v37  ;;  %v718_v38 = vld [vmem:[%s11105_s16 + $0x71] sm:$0xff] }
  0x2b   : > { %v973_v49 = vcombine.high %v965_v41, %v965_v41  ;;  %v10351_v54 = vpack.i.bf16 %v5426_v43, %v5409_v25  ;;  %v974_v55 = vcombine.high %v972_v47, %v972_v47  ;;  %v5461_v56 = vcombine.low %v957_v46, %v956_v40 }
  0x2c   : > { %v916_v57 = vrot.slane %v713_v37, %v11107_v5  ;;  %v5358_v58 = vcombine.low %v5350_v39, %v11204_v48  ;;  %v990_v59 = vcombine.high %v982_v50, %v982_v50  ;;  %v923_v61 = vrot.slane %v909_v53, %v11107_v5 }
  0x2d   : > { %v5462_v60 = vcombine.low %v965_v41, %v973_v49  ;;  %10352 = vrot.lane.b32.xlu1 %v10351_v54, %s11056_s17  ;;  %v5469_v63 = vrot.slane %v5461_v56, %v11107_v5  ;;  %v5478_v0 = vcombine.low %v972_v47, %v974_v55  ;;  %v925_v3 = vcombine.high %v714_v52, %v714_v52 }
  0x2e   : > { %v924_v1 = vcombine.high %v916_v57, %v916_v57  ;;  %v10341_v4 = vpack.i.bf16 %v5358_v58, %v5341_v44  ;;  %v5479_v8 = vcombine.low %v982_v50, %v990_v59  ;;  %v932_v9 = vrot.slane %v714_v52, %v11107_v5  ;;  %v719_v50 = vld [vmem:[%s11105_s16 + $0x79] sm:$0x3f] }
  0x2f   : > { %v5476_v7 = vrot.slane %v5462_v60, %v11107_v5  ;;  %v5486_v10 = vrot.slane %v5478_v0, %v11107_v5  ;;  %v939_v12 = vrot.slane %v925_v3, %v11107_v5  ;;  %v1024_v16 = vcombine.high %v720_v62, %v720_v62 }
  0x30   : > { %v5427_v13 = vcombine.low %v916_v57, %v924_v1  ;;  %10342 = vrot.lane.b32.xlu0 %v10341_v4, %s11056_s17  ;;  %v5493_v18 = vrot.slane %v5479_v8, %v11107_v5  ;;  %v940_v19 = vcombine.high %v932_v9, %v932_v9  ;;  %v5428_v20 = vcombine.low %v923_v61, %v932_v9  ;;  %v725_v4 = vld [vmem:[%s11105_s16 + $0xa9] sm:$0x3f] }
  0x31   : > { %v5477_v17 = vcombine.low %v5469_v63, %v5476_v7  ;;  %v941_v22 = vcombine.high %v939_v12, %v939_v12  ;;  %v1031_v25 = vrot.slane %v720_v62, %v11107_v5  ;;  %v1038_v26 = vrot.slane %v1024_v16, %v11107_v5  ;;  %v724_v63 = vld [vmem:[%s11105_s16 + $0xa1] sm:$0xff]  ;;  %v726_v16 = vld [vmem:[%s11105_s16 + $0xb1] sm:$0xff] }
  0x32   : > { %v5435_v24 = vrot.slane %v5427_v13, %v11107_v5  ;;  %v5494_v27 = vcombine.low %v5486_v10, %v5493_v18  ;;  %v5442_v28 = vrot.slane %v5428_v20, %v11107_v5  ;;  %v5444_v6 = vcombine.low %v940_v19, %v939_v12 }
  0x33   : > { %v1041_v31 = vcombine.high %v721_v14, %v721_v14  ;;  %v5445_v32 = vcombine.low %v941_v22, %v949_v35  ;;  %v1039_v33 = vcombine.high %v1031_v25, %v1031_v25  ;;  %v1040_v36 = vcombine.high %v1038_v26, %v1038_v26 }
  0x34   : > { %v1048_v37 = vrot.slane %v721_v14, %v11107_v5  ;;  %v10361_v39 = vpack.i.bf16 %v5494_v27, %v5477_v17  ;;  %v5443_v40 = vcombine.low %v5435_v24, %v5442_v28  ;;  %v5452_v41 = vrot.slane %v5444_v6, %v11107_v5 }
  0x35   : > { %v1055_v43 = vrot.slane %v1041_v31, %v11107_v5  ;;  %v5459_v44 = vrot.slane %v5445_v32, %v11107_v5  ;;  %v11236_v47 = vrot.slane %v11227_v30, %v11107_v5  ;;  %v5529_v35 = vcombine.low %v1031_v25, %v1039_v33 }
  0x36   : > { %v1056_v46 = vcombine.high %v1048_v37, %v1048_v37  ;;  %10362 = vrot.lane.b32.xlu1 %v10361_v39, %s11056_s17  ;;  %v5530_v49 = vcombine.low %v1038_v26, %v1040_v36  ;;  %v975_v52 = vcombine.high %v11193_v34, %v11193_v34  ;;  %v991_v53 = vcombine.high %v718_v38, %v718_v38  ;;  %v723_v39 = vld [vmem:[%s11105_s16 + $0x99] sm:$0x3f] }
  0x37   : > { %v998_v54 = vrot.slane %v718_v38, %v11107_v5  ;;  %v5460_v55 = vcombine.low %v5452_v41, %v5459_v44  ;;  %v5537_v56 = vrot.slane %v5529_v35, %v11107_v5  ;;  %v5547_v58 = vcombine.low %v1055_v43, %v11236_v47 }
  0x38   : > { %v5546_v57 = vcombine.low %v1048_v37, %v1056_v46  ;;  %v5544_v59 = vrot.slane %v5530_v49, %v11107_v5  ;;  %v989_v60 = vrot.slane %v975_v52, %v11107_v5  ;;  %v1005_v61 = vrot.slane %v991_v53, %v11107_v5 }
  0x39   : > { %v1006_v62 = vcombine.high %v998_v54, %v998_v54  ;;  %v10356_v34 = vpack.i.bf16 %v5460_v55, %v5443_v40  ;;  %v5561_v1 = vrot.slane %v5547_v58, %v11107_v5  ;;  %v1008_v3 = vcombine.high %v719_v50, %v719_v50 }
  0x3a   : > { %v5554_v0 = vrot.slane %v5546_v57, %v11107_v5  ;;  %v5545_v7 = vcombine.low %v5537_v56, %v5544_v59  ;;  %v1007_v8 = vcombine.high %v1005_v61, %v1005_v61  ;;  %v1015_v9 = vrot.slane %v719_v50, %v11107_v5  ;;  %v729_v59 = vld [vmem:[%s11105_s16 + $0xc9] sm:$0x3f] }
  0x3b   : > { %v5495_v10 = vcombine.low %v989_v60, %v998_v54  ;;  %10357 = vrot.lane.b32.xlu0 %v10356_v34, %s11056_s17  ;;  %v1022_v13 = vrot.slane %v1008_v3, %v11107_v5  ;;  %v5496_v14 = vcombine.low %v1006_v62, %v1005_v61  ;;  %v1090_v17 = vcombine.high %v724_v63, %v724_v63 }
  0x3c   : > { %v5562_v12 = vcombine.low %v5554_v0, %v5561_v1  ;;  %v1023_v18 = vcombine.high %v1015_v9, %v1015_v9  ;;  %v5512_v20 = vcombine.low %v1007_v8, %v1015_v9  ;;  %v1107_v22 = vcombine.high %v725_v4, %v725_v4  ;;  %v730_v0 = vld [vmem:[%s11105_s16 + $0xd1] sm:$0xff] }
  0x3d   : > { %v5503_v19 = vrot.slane %v5495_v10, %v11107_v5  ;;  %v5510_v25 = vrot.slane %v5496_v14, %v11107_v5  ;;  %v1104_v26 = vrot.slane %v1090_v17, %v11107_v5  ;;  %v1114_v27 = vrot.slane %v725_v4, %v11107_v5 }
  0x3e   : > { %v10371_v24 = vpack.i.bf16 %v5562_v12, %v5545_v7  ;;  %v5513_v28 = vcombine.low %v1023_v18, %v1022_v13  ;;  %v5520_v6 = vrot.slane %v5512_v20, %v11107_v5  ;;  %v1121_v31 = vrot.slane %v1107_v22, %v11107_v5 }
  0x3f   : > { %v1123_v32 = vcombine.high %v726_v16, %v726_v16  ;;  %v5511_v33 = vcombine.low %v5503_v19, %v5510_v25  ;;  %v1106_v36 = vcombine.high %v1104_v26, %v1104_v26  ;;  %v1122_v37 = vcombine.high %v1114_v27, %v1114_v27 }
  0x40   : > { %10372 = vrot.lane.b32.xlu1 %v10371_v24, %s11056_s17  ;;  %v1130_v38 = vrot.slane %v726_v16, %v11107_v5  ;;  %v5527_v40 = vrot.slane %v5513_v28, %v11107_v5  ;;  %v1057_v43 = vcombine.high %v11227_v30, %v11227_v30  ;;  %v11273_v44 = vcombine.high %v11236_v47, %v11236_v47  ;;  %v11305_v16 = vld [vmem:[%s11105_s16 + $0xd9] sm:$0x3f] }
  0x41   : > { %v11267_v41 = vrot.slane %v1123_v32, %v11107_v5  ;;  %v5597_v35 = vcombine.low %v1104_v26, %v1106_v36  ;;  %v5598_v49 = vcombine.low %v1114_v27, %v1122_v37  ;;  %v1074_v54 = vcombine.high %v723_v39, %v723_v39  ;;  %v727_v28 = vld [vmem:[%s11105_s16 + $0xb9] sm:$0x3f] }
  0x42   : > { %v1138_v46 = vcombine.high %v1130_v38, %v1130_v38  ;;  %v5614_v50 = vcombine.low %v1121_v31, %v1130_v38  ;;  %v5528_v52 = vcombine.low %v5520_v6, %v5527_v40  ;;  %v11276_v53 = vrot.slane %v1057_v43, %v11107_v5  ;;  %v728_v6 = vld [vmem:[%s11105_s16 + $0xc1] sm:$0xff] }
  0x43   : > { %v1081_v55 = vrot.slane %v723_v39, %v11107_v5  ;;  %v5605_v56 = vrot.slane %v5597_v35, %v11107_v5  ;;  %v5612_v30 = vrot.slane %v5598_v49, %v11107_v5  ;;  %v1088_v62 = vrot.slane %v1074_v54, %v11107_v5 }
  0x44   : > { %v5615_v57 = vcombine.low %v1138_v46, %v11267_v41  ;;  %v5622_v58 = vrot.slane %v5614_v50, %v11107_v5  ;;  %v10366_v60 = vpack.i.bf16 %v5528_v52, %v5511_v33  ;;  %v11286_v61 = vcombine.high %v11276_v53, %v11276_v53 }
  0x45   : > { %v1089_v34 = vcombine.high %v1081_v55, %v1081_v55  ;;  %v5613_v1 = vcombine.low %v5605_v56, %v5612_v30  ;;  %v11292_v4 = vrot.slane %v724_v63, %v11107_v5  ;;  %v5563_v7 = vcombine.low %v11273_v44, %v11276_v53 }
  0x46   : > { %v5629_v3 = vrot.slane %v5615_v57, %v11107_v5  ;;  %10367 = vrot.lane.b32.xlu0 %v10366_v60, %s11056_s17  ;;  %v5564_v8 = vcombine.low %v11286_v61, %v1081_v55  ;;  %v1173_v10 = vcombine.high %v729_v59, %v729_v59  ;;  %v1180_v12 = vrot.slane %v729_v59, %v11107_v5  ;;  %v1223_v59 = vld [vmem:[%s11105_s16 + $0xa] sm:$0x3f] }
  0x47   : > { %v5580_v9 = vcombine.low %v1089_v34, %v1088_v62  ;;  %v11301_v14 = vcombine.high %v11292_v4, %v11292_v4  ;;  %v5571_v63 = vrot.slane %v5563_v7, %v11107_v5  ;;  %v1189_v17 = vcombine.high %v730_v0, %v730_v0 }
  0x48   : > { %v5630_v13 = vcombine.low %v5622_v58, %v5629_v3  ;;  %v5578_v18 = vrot.slane %v5564_v8, %v11107_v5  ;;  %v1187_v20 = vrot.slane %v1173_v10, %v11107_v5  ;;  %v1188_v22 = vcombine.high %v1180_v12, %v1180_v12  ;;  %v1222_v58 = vld [vmem:[%s11105_s16 + $0x2] sm:$0xff] }
  0x49   : > { %v5588_v19 = vrot.slane %v5580_v9, %v11107_v5  ;;  %v5581_v25 = vcombine.low %v11292_v4, %v11301_v14  ;;  %v1196_v26 = vrot.slane %v730_v0, %v11107_v5  ;;  %v1203_v27 = vrot.slane %v1189_v17, %v11107_v5 }
  0x4a   : > { %v10381_v24 = vpack.i.bf16 %v5630_v13, %v5613_v1  ;;  %v5579_v31 = vcombine.low %v5571_v63, %v5578_v18  ;;  %v11318_v32 = vrot.slane %v11305_v16, %v11107_v5  ;;  %v5665_v33 = vcombine.low %v1180_v12, %v1188_v22 }
  0x4b   : > { %v1139_v36 = vcombine.high %v11267_v41, %v11267_v41  ;;  %v5595_v37 = vrot.slane %v5581_v25, %v11107_v5  ;;  %v1204_v38 = vcombine.high %v1196_v26, %v1196_v26  ;;  %v1205_v39 = vcombine.high %v1203_v27, %v1203_v27 }
  0x4c   : > { %10382 = vrot.lane.b32.xlu1 %v10381_v24, %s11056_s17  ;;  %v5666_v40 = vcombine.low %v1187_v20, %v1196_v26  ;;  %v5673_v43 = vrot.slane %v5665_v33, %v11107_v5  ;;  %v1140_v46 = vcombine.high %v727_v28, %v727_v28  ;;  %v1147_v35 = vrot.slane %v727_v28, %v11107_v5  ;;  %v1224_v20 = vld [vmem:[%s11105_s16 + $0x12] sm:$0xff] }
  0x4d   : > { %v1156_v49 = vcombine.high %v728_v6, %v728_v6  ;;  %v5596_v50 = vcombine.low %v5588_v19, %v5595_v37  ;;  %v5682_v54 = vcombine.low %v1204_v38, %v1203_v27  ;;  %v5683_v41 = vcombine.low %v1205_v39, %v11318_v32  ;;  %v1226_v27 = vld [vmem:[%s11105_s16 + $0x22] sm:$0xff] }
  0x4e   : > { %v5680_v52 = vrot.slane %v5666_v40, %v11107_v5  ;;  %v1154_v55 = vrot.slane %v1140_v46, %v11107_v5  ;;  %v1155_v56 = vcombine.high %v1147_v35, %v1147_v35  ;;  %v1163_v30 = vrot.slane %v728_v6, %v11107_v5  ;;  %v1227_v40 = vld [vmem:[%s11105_s16 + $0x2a] sm:$0x3f] }
  0x4f   : > { %v1170_v57 = vrot.slane %v1156_v49, %v11107_v5  ;;  %v10376_v60 = vpack.i.bf16 %v5596_v50, %v5579_v31  ;;  %v5690_v34 = vrot.slane %v5682_v54, %v11107_v5  ;;  %v5697_v0 = vrot.slane %v5683_v41, %v11107_v5 }
  0x50   : > { %v5681_v62 = vcombine.low %v5673_v43, %v5680_v52  ;;  %v1171_v1 = vcombine.high %v1163_v30, %v1163_v30  ;;  %v5631_v7 = vcombine.low %v1139_v36, %v1147_v35  ;;  %v5632_v8 = vcombine.low %v1155_v56, %v1154_v55  ;;  %v1228_v55 = vld [vmem:[%s11105_s16 + $0x32] sm:$0xff] }
  0x51   : > { %v1172_v3 = vcombine.high %v1170_v57, %v1170_v57  ;;  %10377 = vrot.lane.b32.xlu0 %v10376_v60, %s11056_s17  ;;  %v5698_v9 = vcombine.low %v5690_v34, %v5697_v0  ;;  %v1278_v10 = vcombine.high %v1222_v58, %v1222_v58  ;;  %v1285_v12 = vrot.slane %v1222_v58, %v11107_v5 }
  0x52   : > { %v1295_v13 = vcombine.high %v1223_v59, %v1223_v59  ;;  %v5639_v63 = vrot.slane %v5631_v7, %v11107_v5  ;;  %v5646_v17 = vrot.slane %v5632_v8, %v11107_v5  ;;  %v5648_v18 = vcombine.low %v1163_v30, %v1171_v1 }
  0x53   : > { %v5649_v19 = vcombine.low %v1170_v57, %v1172_v3  ;;  %v10391_v22 = vpack.i.bf16 %v5698_v9, %v5681_v62  ;;  %v1292_v24 = vrot.slane %v1278_v10, %v11107_v5  ;;  %v1293_v25 = vcombine.high %v1285_v12, %v1285_v12  ;;  %v1225_v10 = vld [vmem:[%s11105_s16 + $0x1a] sm:$0x3f] }
  0x54   : > { %v1302_v26 = vrot.slane %v1223_v59, %v11107_v5  ;;  %v5647_v28 = vcombine.low %v5639_v63, %v5646_v17  ;;  %v5656_v6 = vrot.slane %v5648_v18, %v11107_v5  ;;  %v1309_v33 = vrot.slane %v1295_v13, %v11107_v5 }
  0x55   : > { %v5663_v31 = vrot.slane %v5649_v19, %v11107_v5  ;;  %10392 = vrot.lane.b32.xlu1 %v10391_v22, %s11056_s17  ;;  %v1294_v36 = vcombine.high %v1292_v24, %v1292_v24  ;;  %v11348_v38 = vrot.slane %v1224_v20, %v11107_v5  ;;  %v5782_v39 = vcombine.low %v1285_v12, %v1293_v25 }
  0x56   : > { %v1310_v37 = vcombine.high %v1302_v26, %v1302_v26  ;;  %v1206_v46 = vcombine.high %v11305_v16, %v11305_v16  ;;  %v1221_v35 = vcombine.high %v11318_v32, %v11318_v32  ;;  %v1344_v49 = vcombine.high %v1226_v27, %v1226_v27 }
  0x57   : > { %v5664_v43 = vcombine.low %v5656_v6, %v5663_v31  ;;  %v5783_v50 = vcombine.low %v1292_v24, %v1294_v36  ;;  %v5790_v52 = vrot.slane %v5782_v39, %v11107_v5  ;;  %v5800_v41 = vcombine.low %v1309_v33, %v11348_v38  ;;  %v9999_v6 = vld [vmem:[%s11105_s16 + $0x19] sm:$0x3f] }
  0x58   : > { %v5799_v54 = vcombine.low %v1302_v26, %v1310_v37  ;;  %v1220_v30 = vrot.slane %v1206_v46, %v11107_v5  ;;  %v11360_v57 = vrot.slane %v1344_v49, %v11107_v5  ;;  %v1361_v58 = vcombine.high %v1227_v40, %v1227_v40 }
  0x59   : > { %v10386_v56 = vpack.i.bf16 %v5664_v43, %v5647_v28  ;;  %v5797_v16 = vrot.slane %v5783_v50, %v11107_v5  ;;  %v5814_v59 = vrot.slane %v5800_v41, %v11107_v5  ;;  %v1368_v60 = vrot.slane %v1227_v40, %v11107_v5 }
  0x5a   : > { %v5807_v32 = vrot.slane %v5799_v54, %v11107_v5  ;;  %v5699_v62 = vcombine.low %v1221_v35, %v1220_v30  ;;  %v11369_v34 = vcombine.high %v11360_v57, %v11360_v57  ;;  %v1375_v0 = vrot.slane %v1361_v58, %v11107_v5 }
  0x5b   : > { %10387 = vrot.lane.b32.xlu0 %v10386_v56, %s11056_s17  ;;  %v1377_v1 = vcombine.high %v1228_v55, %v1228_v55  ;;  %v5798_v3 = vcombine.low %v5790_v52, %v5797_v16  ;;  %v1376_v8 = vcombine.high %v1368_v60, %v1368_v60  ;;  %v11373_v9 = vrot.slane %v1228_v55, %v11107_v5 }
  0x5c   : > { %v5815_v7 = vcombine.low %v5807_v32, %v5814_v59  ;;  %v5706_v12 = vrot.slane %v5699_v62, %v11107_v5  ;;  %v5850_v63 = vcombine.low %v11360_v57, %v11369_v34  ;;  %v1311_v17 = vcombine.high %v1224_v20, %v1224_v20 }
  0x5d   : > { %v11378_v13 = vrot.slane %v1377_v1, %v11107_v5  ;;  %v11384_v19 = vcombine.high %v11373_v9, %v11373_v9  ;;  %v5851_v22 = vcombine.low %v1368_v60, %v1376_v8  ;;  %v5867_v24 = vcombine.low %v1375_v0, %v11373_v9  ;;  %v9970_v0 = vld [vmem:[%s11105_s16 + $0x10] sm:$0xff]  ;;  %v9971_v1 = vld [vmem:[%s11105_s16 + $0x18] sm:$0x3f] }
  0x5e   : > { %v10396_v18 = vpack.i.bf16 %v5815_v7, %v5798_v3  ;;  %v11389_v25 = vrot.slane %v5850_v63, %v11107_v5  ;;  %v11392_v26 = vrot.slane %v1311_v17, %v11107_v5  ;;  %v11396_v28 = vcombine.high %v11348_v38, %v11348_v38  ;;  %v9972_v17 = vld [vmem:[%s11105_s16 + $0x20] sm:$0xff] }
  0x5f   : > { %5755 = vrot.lane.b32.xlu0 %v5706_v12, %s11056_s17  ;;  %v1328_v20 = vcombine.high %v1225_v10, %v1225_v10  ;;  %v5865_v31 = vrot.slane %v5851_v22, %v11107_v5  ;;  %v5868_v33 = vcombine.low %v11384_v19, %v11378_v13  ;;  %v5875_v36 = vrot.slane %v5867_v24, %v11107_v5 }
  0x60   : > { %10397 = vrot.lane.b32.xlu1 %v10396_v18, %s11057_s18  ;;  %v1335_v37 = vrot.slane %v1225_v10, %v11107_v5  ;;  %v11407_v39 = vcombine.high %v11392_v26, %v11392_v26  ;;  %v11411_v43 = vrot.slane %v1226_v27, %v11107_v5  ;;  %v5816_v46 = vcombine.low %v11396_v28, %v11392_v26 }
  0x61   : > { %v1342_v40 = vrot.slane %v1328_v20, %v11107_v5  ;;  %v5866_v35 = vcombine.low %v11389_v25, %v5865_v31  ;;  %v11417_v49 = vrot.slane %v5868_v33, %v11107_v5  ;;  %v2332_v52 = vcombine.high %v9999_v6, %v9999_v6 }
  0x62   : > { %v1343_v50 = vcombine.high %v1335_v37, %v1335_v37  ;;  %v11421_v54 = vcombine.high %v11411_v43, %v11411_v43  ;;  %v5817_v41 = vcombine.low %v11407_v39, %v1335_v37  ;;  %v5824_v27 = vrot.slane %v5816_v46, %v11107_v5 }
  0x63   : > { %v2339_v55 = vrot.slane %v9999_v6, %v11107_v5  ;;  %v5883_v56 = vcombine.low %v5875_v36, %v11417_v49  ;;  %v2346_v58 = vrot.slane %v2332_v52, %v11107_v5  ;;  %v6764_v16 = vcombine.low %v11141_v42, %v11150_v51 }
  0x64   : > { %v5833_v30 = vcombine.low %v1343_v50, %v1342_v40  ;;  %v5831_v32 = vrot.slane %v5817_v41, %v11107_v5  ;;  %v5834_v59 = vcombine.low %v11411_v43, %v11421_v54  ;;  %v6765_v62 = vcombine.low %v11162_v2, %v11169_v11  ;;  %v10055_v40 = vld [vmem:[%s11105_s16 + $0x28] sm:$0x3f] }
  0x65   : > { %v2347_v60 = vcombine.high %v2339_v55, %v2339_v55  ;;  %v10406_v3 = vpack.i.bf16 %v5883_v56, %v5866_v35  ;;  %v6772_v8 = vrot.slane %v6764_v16, %v11107_v5  ;;  %v6782_v10 = vcombine.low %v2346_v58, %v11177_v21  ;;  %v11456_v56 = vld [vmem:[%s11105_s16 + $0x30] sm:$0xff] }
  0x66   : > { %v5841_v7 = vrot.slane %v5833_v30, %v11107_v5  ;;  %v5832_v12 = vcombine.low %v5824_v27, %v5831_v32  ;;  %v11441_v42 = vrot.slane %v5834_v59, %v11107_v5  ;;  %v6779_v51 = vrot.slane %v6765_v62, %v11107_v5 }
  0x67   : > { %v6781_v63 = vcombine.low %v2339_v55, %v2347_v60  ;;  %10407 = vrot.lane.b32.xlu1 %v10406_v3, %s11057_s18  ;;  %v6796_v2 = vrot.slane %v6782_v10, %v11107_v5  ;;  %v1797_v11 = vcombine.high %v9970_v0, %v9970_v0  ;;  %v1804_v18 = vrot.slane %v9970_v0, %v11107_v5  ;;  %v10027_v60 = vld [vmem:[%s11105_s16 + $0x1a] sm:$0x3f] }
  0x68   : > { %v1814_v22 = vcombine.high %v9971_v1, %v9971_v1  ;;  %v5849_v24 = vcombine.low %v5841_v7, %v11441_v42  ;;  %v6780_v21 = vcombine.low %v6772_v8, %v6779_v51  ;;  %v1821_v6 = vrot.slane %v9971_v1, %v11107_v5 }
  0x69   : > { %v6789_v20 = vrot.slane %v6781_v63, %v11107_v5  ;;  %v1811_v31 = vrot.slane %v1797_v11, %v11107_v5  ;;  %v1812_v33 = vcombine.high %v1804_v18, %v1804_v18  ;;  %v1837_v37 = vrot.slane %v9972_v17, %v11107_v5 }
  0x6a   : > { %v1828_v36 = vrot.slane %v1814_v22, %v11107_v5  ;;  %v10401_v46 = vpack.i.bf16 %v5849_v24, %v5832_v12  ;;  %v1829_v50 = vcombine.high %v1821_v6, %v1821_v6  ;;  %v3352_v52 = vcombine.high %v9972_v17, %v9972_v17 }
  0x6b   : > { %v6797_v35 = vcombine.low %v6789_v20, %v6796_v2  ;;  %v1813_v41 = vcombine.high %v1811_v31, %v1811_v31  ;;  %v6273_v27 = vcombine.low %v1804_v18, %v1812_v33  ;;  %v11458_v30 = vcombine.high %v1837_v37, %v1837_v37  ;;  %v10111_v33 = vld [vmem:[%s11105_s16 + $0x2a] sm:$0x3f] }
  0x6c   : > { %v6291_v55 = vcombine.low %v1828_v36, %v1837_v37  ;;  %10402 = vrot.lane.b32.xlu0 %v10401_v46, %s11057_s18  ;;  %v6290_v16 = vcombine.low %v1821_v6, %v1829_v50  ;;  %v11462_v32 = vrot.slane %v3352_v52, %v11107_v5  ;;  %v3369_v59 = vcombine.high %v10055_v40, %v10055_v40 }
  0x6d   : > { %v10416_v58 = vpack.i.bf16 %v6797_v35, %v6780_v21  ;;  %v6274_v62 = vcombine.low %v1811_v31, %v1813_v41  ;;  %v6281_v0 = vrot.slane %v6273_v27, %v11107_v5  ;;  %v3376_v3 = vrot.slane %v10055_v40, %v11107_v5  ;;  %v10083_v27 = vld [vmem:[%s11105_s16 + $0x29] sm:$0x3f] }
  0x6e   : > { %v6305_v1 = vrot.slane %v6291_v55, %v11107_v5  ;;  %v6298_v7 = vrot.slane %v6290_v16, %v11107_v5  ;;  %v11472_v8 = vcombine.high %v11462_v32, %v11462_v32  ;;  %v3383_v10 = vrot.slane %v3369_v59, %v11107_v5 }
  0x6f   : > { %10417 = vrot.lane.b32.xlu1 %v10416_v58, %s11058_s19  ;;  %v11477_v12 = vrot.slane %v11456_v56, %v11107_v5  ;;  %v6288_v51 = vrot.slane %v6274_v62, %v11107_v5  ;;  %v3384_v63 = vcombine.high %v3376_v3, %v3376_v3  ;;  %v7746_v17 = vcombine.low %v1837_v37, %v11458_v30 }
  0x70   : > { %v2850_v2 = vcombine.high %v10027_v60, %v10027_v60  ;;  %v6306_v11 = vcombine.low %v6298_v7, %v6305_v1  ;;  %v7747_v18 = vcombine.low %v11462_v32, %v11472_v8  ;;  %v2857_v24 = vrot.slane %v10027_v60, %v11107_v5  ;;  %v9973_v1 = vld [vmem:[%s11105_s16 + $0x28] sm:$0x3f] }
  0x71   : > { %v7764_v22 = vcombine.low %v3383_v10, %v11477_v12  ;;  %v6289_v21 = vcombine.low %v6281_v0, %v6288_v51  ;;  %v7754_v20 = vrot.slane %v7746_v17, %v11107_v5  ;;  %v7763_v6 = vcombine.low %v3376_v3, %v3384_v63 }
  0x72   : > { %v2864_v31 = vrot.slane %v2850_v2, %v11107_v5  ;;  %v7761_v36 = vrot.slane %v7747_v18, %v11107_v5  ;;  %v2865_v40 = vcombine.high %v2857_v24, %v2857_v24  ;;  %v7255_v46 = vcombine.low %v11348_v38, %v11396_v28 }
  0x73   : > { %v7778_v37 = vrot.slane %v7764_v22, %v11107_v5  ;;  %v10411_v35 = vpack.i.bf16 %v6306_v11, %v6289_v21  ;;  %v7771_v50 = vrot.slane %v7763_v6, %v11107_v5  ;;  %v7256_v52 = vcombine.low %v11392_v26, %v11407_v39  ;;  %v1238_v6 = vld [vmem:[%s11105_s16 + $0x82] sm:$0xff] }
  0x74   : > { %v7273_v41 = vcombine.low %v2864_v31, %v11411_v43  ;;  %v7762_v55 = vcombine.low %v7754_v20, %v7761_v36  ;;  %v7263_v58 = vrot.slane %v7255_v46, %v11107_v5  ;;  %v7272_v16 = vcombine.low %v2857_v24, %v2865_v40 }
  0x75   : > { %v4405_v59 = vcombine.high %v10111_v33, %v10111_v33  ;;  %10412 = vrot.lane.b32.xlu0 %v10411_v35, %s11059_s20  ;;  %v7779_v60 = vcombine.low %v7771_v50, %v7778_v37  ;;  %v7270_v38 = vrot.slane %v7256_v52, %v11107_v5  ;;  %v4412_v62 = vrot.slane %v10111_v33, %v11107_v5  ;;  %v1239_v52 = vld [vmem:[%s11105_s16 + $0x8a] sm:$0x3f] }
  0x76   : > { %v7287_v28 = vrot.slane %v7273_v41, %v11107_v5  ;;  %v7280_v26 = vrot.slane %v7272_v16, %v11107_v5  ;;  %v8744_v43 = vcombine.low %v11441_v42, %v11389_v25  ;;  %v3887_v0 = vcombine.high %v10083_v27, %v10083_v27  ;;  %v11535_v16 = vld [vmem:[%s11105_s16 + $0x92] sm:$0xff] }
  0x77   : > { %v4419_v39 = vrot.slane %v4405_v59, %v11107_v5  ;;  %v10426_v3 = vpack.i.bf16 %v7779_v60, %v7762_v55  ;;  %v7271_v7 = vcombine.low %v7263_v58, %v7270_v38  ;;  %v4420_v10 = vcombine.high %v4412_v62, %v4412_v62 }
  0x78   : > { %v3894_v51 = vrot.slane %v10083_v27, %v11107_v5  ;;  %v7288_v63 = vcombine.low %v7280_v26, %v7287_v28  ;;  %v3901_v2 = vrot.slane %v3887_v0, %v11107_v5  ;;  %v8253_v11 = vcombine.low %v11204_v48, %v11144_v45  ;;  %v10001_v26 = vld [vmem:[%s11105_s16 + $0x29] sm:$0x3f] }
  0x79   : > { %v8746_v17 = vcombine.low %v4419_v39, %v11373_v9  ;;  %10427 = vrot.lane.b32.xlu1 %v10426_v3, %s11060_s21  ;;  %v8745_v25 = vcombine.low %v4412_v62, %v4420_v10  ;;  %v1847_v18 = vcombine.high %v9973_v1, %v9973_v1  ;;  %v1854_v20 = vrot.slane %v9973_v1, %v11107_v5 }
  0x7a   : > { %v3902_v42 = vcombine.high %v3894_v51, %v3894_v51  ;;  %v10421_v22 = vpack.i.bf16 %v7288_v63, %v7271_v7  ;;  %v8255_v21 = vcombine.low %v3901_v2, %v11120_v15  ;;  %v11521_v48 = vcombine.high %v11477_v12, %v11477_v12 }
  0x7b   : > { %v8760_v24 = vrot.slane %v8746_v17, %v11107_v5  ;;  %v8753_v31 = vrot.slane %v8745_v25, %v11107_v5  ;;  %v1861_v45 = vrot.slane %v1847_v18, %v11107_v5  ;;  %v1862_v15 = vcombine.high %v1854_v20, %v1854_v20 }
  0x7c   : > { %v8254_v33 = vcombine.low %v3894_v51, %v3902_v42  ;;  %10422 = vrot.lane.b32.xlu0 %v10421_v22, %s11061_s22  ;;  %v8269_v36 = vrot.slane %v8255_v21, %v11107_v5  ;;  %v6307_v37 = vcombine.low %v11458_v30, %v11462_v32  ;;  %v6308_v40 = vcombine.low %v11472_v8, %v1854_v20  ;;  %v11023_v51 = vld [vmem:[%s11105_s16 + $0x21] sm:$0xff]  ;;  %v9986_v20 = vld [vmem:[%s11105_s16 + $0x90] sm:$0xff] }
  0x7d   : > { %v8761_v46 = vcombine.low %v8753_v31, %v8760_v24  ;;  %v6325_v50 = vcombine.low %v11477_v12, %v11521_v48  ;;  %v1542_v41 = vcombine.high %v1238_v6, %v1238_v6  ;;  %v6324_v58 = vcombine.low %v1862_v15, %v1861_v45 }
  0x7e   : > { %v8262_v35 = vrot.slane %v8254_v33, %v11107_v5  ;;  %v6315_v27 = vrot.slane %v6307_v37, %v11107_v5  ;;  %v6322_v55 = vrot.slane %v6308_v40, %v11107_v5  ;;  %v1549_v30 = vrot.slane %v1238_v6, %v11107_v5 }
  0x7f   : > { %v10436_v32 = vpack.i.bf16 %v8761_v46, %v8744_v43  ;;  %v6339_v59 = vrot.slane %v6325_v50, %v11107_v5  ;;  %v1556_v60 = vrot.slane %v1542_v41, %v11107_v5  ;;  %v6332_v38 = vrot.slane %v6324_v58, %v11107_v5  ;;  %v9987_v46 = vld [vmem:[%s11105_s16 + $0x98] sm:$0x3f] }
  0x80   : > { %v8270_v8 = vcombine.low %v8262_v35, %v8269_v36  ;;  %v6323_v12 = vcombine.low %v6315_v27, %v6322_v55  ;;  %v1557_v28 = vcombine.high %v1549_v30, %v1549_v30  ;;  %v1559_v62 = vcombine.high %v1239_v52, %v1239_v52 }
  0x81   : > { %10437 = vrot.lane.b32.xlu1 %v10436_v32, %s11062_s23  ;;  %v1558_v0 = vcombine.high %v1556_v60, %v1556_v60  ;;  %v1566_v43 = vrot.slane %v1239_v52, %v11107_v5  ;;  %v11546_v1 = vrot.slane %v11535_v16, %v11107_v5  ;;  %v6340_v3 = vcombine.low %v6332_v38, %v6339_v59 }
  0x82   : > { %v10431_v39 = vpack.i.bf16 %v8270_v8, %v8253_v11  ;;  %v1573_v7 = vrot.slane %v1559_v62, %v11107_v5  ;;  %v6020_v10 = vcombine.low %v1549_v30, %v1557_v28  ;;  %v2348_v63 = vcombine.high %v11023_v51, %v11023_v51  ;;  %v11552_v11 = vld [vmem:[%s11105_s16 + $0x31] sm:$0xff]  ;;  %v11570_v30 = vld [vmem:[%s11105_s16 + $0xa0] sm:$0xff] }
  0x83   : > { %v1574_v17 = vcombine.high %v1566_v43, %v1566_v43  ;;  %v6021_v2 = vcombine.low %v1556_v60, %v1558_v0  ;;  %v2365_v25 = vcombine.high %v10001_v26, %v10001_v26  ;;  %v2372_v42 = vrot.slane %v10001_v26, %v11107_v5  ;;  %v10029_v26 = vld [vmem:[%s11105_s16 + $0x2a] sm:$0x3f] }
  0x84   : > { %10432 = vrot.lane.b32.xlu0 %v10431_v39, %s11063_s24  ;;  %v10446_v18 = vpack.i.bf16 %v6340_v3, %v6323_v12  ;;  %v6028_v22 = vrot.slane %v6020_v10, %v11107_v5  ;;  %v6038_v24 = vcombine.low %v1573_v7, %v11546_v1  ;;  %v2362_v21 = vrot.slane %v2348_v63, %v11107_v5 }
  0x85   : > { %v6035_v6 = vrot.slane %v6021_v2, %v11107_v5  ;;  %v6037_v31 = vcombine.low %v1566_v43, %v1574_v17  ;;  %v2379_v33 = vrot.slane %v2365_v25, %v11107_v5  ;;  %v2380_v45 = vcombine.high %v2372_v42, %v2372_v42 }
  0x86   : > { %10447 = vrot.lane.b32.xlu1 %v10446_v18, %s11059_s20  ;;  %v6052_v36 = vrot.slane %v6038_v24, %v11107_v5  ;;  %v2364_v15 = vcombine.high %v2362_v21, %v2362_v21  ;;  %v2388_v37 = vrot.slane %v11552_v11, %v11107_v5  ;;  %v6798_v40 = vcombine.low %v11187_v29, %v2362_v21 }
  0x87   : > { %v6036_v35 = vcombine.low %v6028_v22, %v6035_v6  ;;  %v6045_v50 = vrot.slane %v6037_v31, %v11107_v5  ;;  %v6815_v52 = vcombine.low %v2380_v45, %v2379_v33  ;;  %v2061_v41 = vcombine.high %v9986_v20, %v9986_v20 }
  0x88   : > { %v2396_v27 = vcombine.high %v2388_v37, %v2388_v37  ;;  %v6799_v55 = vcombine.low %v2364_v15, %v2372_v42  ;;  %v6806_v58 = vrot.slane %v6798_v40, %v11107_v5  ;;  %v2068_v32 = vrot.slane %v9986_v20, %v11107_v5  ;;  %v10015_v20 = vld [vmem:[%s11105_s16 + $0x99] sm:$0x3f] }
  0x89   : > { %v6053_v8 = vcombine.low %v6045_v50, %v6052_v36  ;;  %v6823_v59 = vrot.slane %v6815_v52, %v11107_v5  ;;  %v2075_v29 = vrot.slane %v2061_v41, %v11107_v5  ;;  %v2078_v60 = vcombine.high %v9987_v46, %v9987_v46 }
  0x8a   : > { %v6813_v12 = vrot.slane %v6799_v55, %v11107_v5  ;;  %v6816_v38 = vcombine.low %v2388_v37, %v2396_v27  ;;  %v2076_v28 = vcombine.high %v2068_v32, %v2068_v32  ;;  %v2085_v62 = vrot.slane %v9987_v46, %v11107_v5 }
  0x8b   : > { %v10441_v39 = vpack.i.bf16 %v6053_v8, %v6036_v35  ;;  %v2077_v0 = vcombine.high %v2075_v29, %v2075_v29  ;;  %v2092_v43 = vrot.slane %v2078_v60, %v11107_v5  ;;  %v11581_v3 = vrot.slane %v11570_v30, %v11107_v5 }
  0x8c   : > { %v6814_v7 = vcombine.low %v6806_v58, %v6813_v12  ;;  %v6830_v10 = vrot.slane %v6816_v38, %v11107_v5  ;;  %v2093_v51 = vcombine.high %v2085_v62, %v2085_v62  ;;  %v6511_v63 = vcombine.low %v2068_v32, %v2076_v28 }
  0x8d   : > { %10442 = vrot.lane.b32.xlu0 %v10441_v39, %s11057_s18  ;;  %v6512_v17 = vcombine.low %v2075_v29, %v2077_v0  ;;  %v6529_v2 = vcombine.low %v2092_v43, %v11581_v3  ;;  %v2883_v25 = vcombine.high %v10029_v26, %v10029_v26  ;;  %v2890_v42 = vrot.slane %v10029_v26, %v11107_v5 }
  0x8e   : > { %v6831_v18 = vcombine.low %v6823_v59, %v6830_v10  ;;  %v6519_v22 = vrot.slane %v6511_v63, %v11107_v5  ;;  %v6528_v24 = vcombine.low %v2085_v62, %v2093_v51  ;;  %v7289_v21 = vcombine.low %v11421_v54, %v11360_v57 }
  0x8f   : > { %v6526_v6 = vrot.slane %v6512_v17, %v11107_v5  ;;  %v6543_v31 = vrot.slane %v6529_v2, %v11107_v5  ;;  %v2897_v33 = vrot.slane %v2883_v25, %v11107_v5  ;;  %v2898_v45 = vcombine.high %v2890_v42, %v2890_v42 }
  0x90   : > { %v10456_v36 = vpack.i.bf16 %v6831_v18, %v6814_v7  ;;  %v6536_v15 = vrot.slane %v6528_v24, %v11107_v5  ;;  %v7290_v37 = vcombine.low %v11369_v34, %v2890_v42  ;;  %v7297_v40 = vrot.slane %v7289_v21, %v11107_v5 }
  0x91   : > { %v6527_v46 = vcombine.low %v6519_v22, %v6526_v6  ;;  %v7306_v35 = vcombine.low %v2898_v45, %v2897_v33  ;;  %v7307_v57 = vcombine.low %v11373_v9, %v11384_v19  ;;  %v2596_v54 = vcombine.high %v10015_v20, %v10015_v20  ;;  %v10057_v19 = vld [vmem:[%s11105_s16 + $0x38] sm:$0x3f]  ;;  %v11649_v22 = vld [vmem:[%s11105_s16 + $0xa2] sm:$0xff] }
  0x92   : > { %10457 = vrot.lane.b32.xlu1 %v10456_v36, %s11058_s19  ;;  %v6544_v50 = vcombine.low %v6536_v15, %v6543_v31  ;;  %v7304_v52 = vrot.slane %v7290_v37, %v11107_v5  ;;  %v2603_v41 = vrot.slane %v10015_v20, %v11107_v5  ;;  %v7002_v27 = vcombine.low %v11236_v47, %v11273_v44  ;;  %v11614_v44 = vld [vmem:[%s11105_s16 + $0x40] sm:$0xff] }
  0x93   : > { %v7314_v34 = vrot.slane %v7306_v35, %v11107_v5  ;;  %v7321_v55 = vrot.slane %v7307_v57, %v11107_v5  ;;  %v2610_v58 = vrot.slane %v2596_v54, %v11107_v5  ;;  %v7003_v9 = vcombine.low %v11276_v53, %v11286_v61  ;;  %v11024_v54 = vld [vmem:[%s11105_s16 + $0x31] sm:$0xff] }
  0x94   : > { %v10451_v32 = vpack.i.bf16 %v6544_v50, %v6527_v46  ;;  %v7305_v8 = vcombine.low %v7297_v40, %v7304_v52  ;;  %v2611_v59 = vcombine.high %v2603_v41, %v2603_v41  ;;  %v7010_v29 = vrot.slane %v7002_v27, %v11107_v5  ;;  %v10085_v46 = vld [vmem:[%s11105_s16 + $0x39] sm:$0x3f] }
  0x95   : > { %v7322_v60 = vcombine.low %v7314_v34, %v7321_v55  ;;  %v7017_v12 = vrot.slane %v7003_v9, %v11107_v5  ;;  %v7020_v47 = vcombine.low %v2610_v58, %v11292_v4  ;;  %v3385_v38 = vcombine.high %v11456_v56, %v11456_v56  ;;  %v10043_v4 = vld [vmem:[%s11105_s16 + $0x9a] sm:$0x3f]  ;;  %v11680_v55 = vld [vmem:[%s11105_s16 + $0x41] sm:$0xff] }
  0x96   : > { %10452 = vrot.lane.b32.xlu0 %v10451_v32, %s11059_s20  ;;  %v7019_v53 = vcombine.low %v2603_v41, %v2611_v59  ;;  %v3402_v61 = vcombine.high %v10057_v19, %v10057_v19  ;;  %v3409_v28 = vrot.slane %v10057_v19, %v11107_v5  ;;  %v11629_v10 = vrot.slane %v11614_v44, %v11107_v5 }
  0x97   : > { %v10466_v62 = vpack.i.bf16 %v7322_v60, %v7305_v8  ;;  %v7018_v26 = vcombine.low %v7010_v29, %v7017_v12  ;;  %v7034_v39 = vrot.slane %v7020_v47, %v11107_v5  ;;  %v11622_v0 = vrot.slane %v3385_v38, %v11107_v5 }
  0x98   : > { %v7027_v43 = vrot.slane %v7019_v53, %v11107_v5  ;;  %v3416_v7 = vrot.slane %v3402_v61, %v11107_v5  ;;  %v3417_v56 = vcombine.high %v3409_v28, %v3409_v28  ;;  %v3097_v17 = vcombine.high %v11535_v16, %v11535_v16  ;;  %v10071_v53 = vld [vmem:[%s11105_s16 + $0xa8] sm:$0x3f] }
  0x99   : > { %10467 = vrot.lane.b32.xlu1 %v10466_v62, %s11061_s22  ;;  %v11634_v51 = vcombine.high %v11622_v0, %v11622_v0  ;;  %v7780_v63 = vcombine.low %v11521_v48, %v11622_v0  ;;  %v11642_v2 = vcombine.high %v11546_v1, %v11546_v1  ;;  %v11646_v42 = vcombine.high %v11629_v10, %v11629_v10 }
  0x9a   : > { %v7035_v25 = vcombine.low %v7027_v43, %v7034_v39  ;;  %v7797_v18 = vcombine.low %v3417_v56, %v3416_v7  ;;  %v3114_v24 = vcombine.high %v10043_v4, %v10043_v4  ;;  %v11654_v16 = vrot.slane %v3097_v17, %v11107_v5  ;;  %v11701_v43 = vld [vmem:[%s11105_s16 + $0xb0] sm:$0xff] }
  0x9b   : > { %v7781_v21 = vcombine.low %v11634_v51, %v3409_v28  ;;  %v7788_v48 = vrot.slane %v7780_v63, %v11107_v5  ;;  %v3121_v20 = vrot.slane %v10043_v4, %v11107_v5  ;;  %v7798_v31 = vcombine.low %v11629_v10, %v11646_v42 }
  0x9c   : > { %v10461_v6 = vpack.i.bf16 %v7035_v25, %v7018_v26  ;;  %v7805_v33 = vrot.slane %v7797_v18, %v11107_v5  ;;  %v3128_v45 = vrot.slane %v3114_v24, %v11107_v5  ;;  %v11664_v15 = vcombine.high %v11654_v16, %v11654_v16 }
  0x9d   : > { %v7795_v36 = vrot.slane %v7781_v21, %v11107_v5  ;;  %v3129_v37 = vcombine.high %v3121_v20, %v3121_v20  ;;  %v11668_v40 = vrot.slane %v11649_v22, %v11107_v5  ;;  %v7812_v35 = vrot.slane %v7798_v31, %v11107_v5 }
  0x9e   : > { %10462 = vrot.lane.b32.xlu0 %v10461_v6, %s11058_s19  ;;  %v7493_v57 = vcombine.low %v11546_v1, %v11642_v2  ;;  %v3903_v50 = vcombine.high %v11024_v54, %v11024_v54  ;;  %v7494_v41 = vcombine.low %v11654_v16, %v11664_v15  ;;  %v3920_v32 = vcombine.high %v10085_v46, %v10085_v46 }
  0x9f   : > { %v7796_v52 = vcombine.low %v7788_v48, %v7795_v36  ;;  %v7510_v27 = vcombine.low %v3121_v20, %v3129_v37  ;;  %v7511_v34 = vcombine.low %v3128_v45, %v11668_v40  ;;  %v7813_v58 = vcombine.low %v7805_v33, %v7812_v35  ;;  %v10113_v48 = vld [vmem:[%s11105_s16 + $0x3a] sm:$0x3f]  ;;  %v11733_v35 = vld [vmem:[%s11105_s16 + $0x42] sm:$0xff] }
  0xa0   : > { %v7501_v9 = vrot.slane %v7493_v57, %v11107_v5  ;;  %v3917_v19 = vrot.slane %v3903_v50, %v11107_v5  ;;  %v7508_v1 = vrot.slane %v7494_v41, %v11107_v5  ;;  %v3927_v29 = vrot.slane %v10085_v46, %v11107_v5  ;;  %v10098_v57 = vld [vmem:[%s11105_s16 + $0xa1] sm:$0xff] }
  0xa1   : > { %v7518_v8 = vrot.slane %v7510_v27, %v11107_v5  ;;  %v7525_v59 = vrot.slane %v7511_v34, %v11107_v5  ;;  %v10476_v60 = vpack.i.bf16 %v7813_v58, %v7796_v52  ;;  %v3934_v47 = vrot.slane %v3920_v32, %v11107_v5 }
  0xa2   : > { %v3919_v12 = vcombine.high %v3917_v19, %v3917_v19  ;;  %v11691_v38 = vrot.slane %v11680_v55, %v11107_v5  ;;  %v7509_v61 = vcombine.low %v7501_v9, %v7508_v1  ;;  %v3935_v62 = vcombine.high %v3927_v29, %v3927_v29  ;;  %v10099_v1 = vld [vmem:[%s11105_s16 + $0xa9] sm:$0x3f] }
  0xa3   : > { %v7526_v28 = vcombine.low %v7518_v8, %v7525_v59  ;;  %v8271_v26 = vcombine.low %v11128_v23, %v3917_v19  ;;  %10477 = vrot.lane.b32.xlu1 %v10476_v60, %s11060_s21  ;;  %v3616_v7 = vcombine.high %v11570_v30, %v11570_v30  ;;  %v11707_v56 = vcombine.high %v11581_v3, %v11581_v3 }
  0xa4   : > { %v11698_v39 = vcombine.high %v11691_v38, %v11691_v38  ;;  %v8272_v4 = vcombine.low %v3919_v12, %v3927_v29  ;;  %v8288_v23 = vcombine.low %v3935_v62, %v3934_v47  ;;  %v3633_v25 = vcombine.high %v10071_v53, %v10071_v53 }
  0xa5   : > { %v10471_v63 = vpack.i.bf16 %v7526_v28, %v7509_v61  ;;  %v8279_v17 = vrot.slane %v8271_v26, %v11107_v5  ;;  %v11714_v21 = vrot.slane %v3616_v7, %v11107_v5  ;;  %v3640_v30 = vrot.slane %v10071_v53, %v11107_v5 }
  0xa6   : > { %v8286_v18 = vrot.slane %v8272_v4, %v11107_v5  ;;  %v8289_v24 = vcombine.low %v11691_v38, %v11698_v39  ;;  %v8296_v20 = vrot.slane %v8288_v23, %v11107_v5  ;;  %v3647_v6 = vrot.slane %v3633_v25, %v11107_v5  ;;  %v11763_v4 = vld [vmem:[%s11105_s16 + $0xb1] sm:$0xff] }
  0xa7   : > { %10472 = vrot.lane.b32.xlu0 %v10471_v63, %s11061_s22  ;;  %v11723_v31 = vrot.slane %v11701_v43, %v11107_v5  ;;  %v7984_v33 = vcombine.low %v11581_v3, %v11707_v56  ;;  %v11730_v37 = vcombine.high %v11714_v21, %v11714_v21  ;;  %v3648_v46 = vcombine.high %v3640_v30, %v3640_v30 }
  0xa8   : > { %v8287_v45 = vcombine.low %v8279_v17, %v8286_v18  ;;  %v8303_v36 = vrot.slane %v8289_v24, %v11107_v5  ;;  %v11740_v52 = vcombine.high %v11378_v13, %v11378_v13  ;;  %v4438_v3 = vcombine.high %v10113_v48, %v10113_v48  ;;  %v1241_v18 = vld [vmem:[%s11105_s16 + $0x9a] sm:$0x3f] }
  0xa9   : > { %v7992_v54 = vrot.slane %v7984_v33, %v11107_v5  ;;  %v8002_v50 = vcombine.low %v3647_v6, %v11723_v31  ;;  %v7985_v27 = vcombine.low %v11714_v21, %v11730_v37  ;;  %v8001_v34 = vcombine.low %v3640_v30, %v3648_v46 }
  0xaa   : > { %v8304_v41 = vcombine.low %v8296_v20, %v8303_v36  ;;  %v4445_v58 = vrot.slane %v10113_v48, %v11107_v5  ;;  %v4452_v19 = vrot.slane %v4438_v3, %v11107_v5  ;;  %v11749_v32 = vrot.slane %v11733_v35, %v11107_v5 }
  0xab   : > { %v8016_v9 = vrot.slane %v8002_v50, %v11107_v5  ;;  %v4134_v13 = vcombine.high %v10098_v57, %v10098_v57  ;;  %v7999_v59 = vrot.slane %v7985_v27, %v11107_v5  ;;  %v8009_v29 = vrot.slane %v8001_v34, %v11107_v5 }
  0xac   : > { %v10486_v8 = vpack.i.bf16 %v8304_v41, %v8287_v45  ;;  %v4453_v60 = vcombine.high %v4445_v58, %v4445_v58  ;;  %v11756_v12 = vcombine.high %v11749_v32, %v11749_v32  ;;  %v8763_v47 = vcombine.low %v11740_v52, %v4445_v58 }
  0xad   : > { %v4141_v53 = vrot.slane %v10098_v57, %v11107_v5  ;;  %v4148_v61 = vrot.slane %v4134_v13, %v11107_v5  ;;  %v8000_v28 = vcombine.low %v7992_v54, %v7999_v59  ;;  %v8017_v62 = vcombine.low %v8009_v29, %v8016_v9  ;;  %v10127_v59 = vld [vmem:[%s11105_s16 + $0xaa] sm:$0x3f] }
  0xae   : > { %10487 = vrot.lane.b32.xlu1 %v10486_v8, %s11063_s24  ;;  %v8779_v26 = vcombine.low %v4453_v60, %v4452_v19  ;;  %v4151_v7 = vcombine.high %v10099_v1, %v10099_v1  ;;  %v8777_v63 = vrot.slane %v8763_v47, %v11107_v5  ;;  %v8780_v17 = vcombine.low %v11749_v32, %v11756_v12 }
  0xaf   : > { %v4149_v23 = vcombine.high %v4141_v53, %v4141_v53  ;;  %v4150_v25 = vcombine.high %v4148_v61, %v4148_v61  ;;  %v10481_v24 = vpack.i.bf16 %v8017_v62, %v8000_v28  ;;  %v4158_v48 = vrot.slane %v10099_v1, %v11107_v5 }
  0xb0   : > { %v8787_v30 = vrot.slane %v8779_v26, %v11107_v5  ;;  %v4165_v20 = vrot.slane %v4151_v7, %v11107_v5  ;;  %v8778_v6 = vcombine.low %v11417_v49, %v8777_v63  ;;  %v11774_v33 = vrot.slane %v8780_v17, %v11107_v5 }
  0xb1   : > { %v11778_v45 = vrot.slane %v11763_v4, %v11107_v5  ;;  %v8475_v36 = vcombine.low %v4141_v53, %v4149_v23  ;;  %10482 = vrot.lane.b32.xlu0 %v10481_v24, %s11060_s21  ;;  %v4166_v46 = vcombine.high %v4158_v48, %v4158_v48  ;;  %v8476_v57 = vcombine.low %v4148_v61, %v4150_v25  ;;  %v11800_v61 = vld [vmem:[%s11105_s16 + $0xb2] sm:$0xff]  ;;  %v9989_v25 = vld [vmem:[%s11105_s16 + $0xa8] sm:$0x3f] }
  0xb2   : > { %v1592_v54 = vcombine.high %v1241_v18, %v1241_v18  ;;  %v8795_v50 = vcombine.low %v8787_v30, %v11774_v33  ;;  %v1599_v41 = vrot.slane %v1241_v18, %v11107_v5  ;;  %v11789_v9 = vcombine.high %v11668_v40, %v11668_v40 }
  0xb3   : > { %v8483_v3 = vrot.slane %v8475_v36, %v11107_v5  ;;  %v8493_v49 = vcombine.low %v4165_v20, %v11778_v45  ;;  %v8490_v27 = vrot.slane %v8476_v57, %v11107_v5  ;;  %v8492_v34 = vcombine.low %v4158_v48, %v4166_v46 }
  0xb4   : > { %v1606_v58 = vrot.slane %v1592_v54, %v11107_v5  ;;  %v10496_v19 = vpack.i.bf16 %v8795_v50, %v8778_v6  ;;  %v1607_v13 = vcombine.high %v1599_v41, %v1599_v41  ;;  %v6054_v8 = vcombine.low %v11642_v2, %v11654_v16 }
  0xb5   : > { %v8507_v1 = vrot.slane %v8493_v49, %v11107_v5  ;;  %v8491_v29 = vcombine.low %v8483_v3, %v8490_v27  ;;  %v8500_v60 = vrot.slane %v8492_v34, %v11107_v5  ;;  %v6055_v47 = vcombine.low %v11664_v15, %v1599_v41  ;;  %v9975_v49 = vld [vmem:[%s11105_s16 + $0x38] sm:$0x3f] }
  0xb6   : > { %v6072_v53 = vcombine.low %v11668_v40, %v11789_v9  ;;  %10497 = vrot.lane.b32.xlu1 %v10496_v19, %s11062_s23  ;;  %v6062_v28 = vrot.slane %v6054_v8, %v11107_v5  ;;  %v6071_v62 = vcombine.low %v1607_v13, %v1606_v58  ;;  %v4652_v2 = vcombine.high %v11649_v22, %v11649_v22 }
  0xb7   : > { %v8508_v16 = vcombine.low %v8500_v60, %v8507_v1  ;;  %v6069_v26 = vrot.slane %v6055_v47, %v11107_v5  ;;  %v4669_v63 = vcombine.high %v10127_v59, %v10127_v59  ;;  %v4676_v17 = vrot.slane %v10127_v59, %v11107_v5 }
  0xb8   : > { %v6086_v7 = vrot.slane %v6072_v53, %v11107_v5  ;;  %v6079_v15 = vrot.slane %v6071_v62, %v11107_v5  ;;  %v11810_v40 = vrot.slane %v4652_v2, %v11107_v5  ;;  %v11815_v23 = vrot.slane %v11800_v61, %v11107_v5 }
  0xb9   : > { %v10491_v22 = vpack.i.bf16 %v8508_v16, %v8491_v29  ;;  %v6070_v18 = vcombine.low %v6062_v28, %v6069_v26  ;;  %v4683_v24 = vrot.slane %v4669_v63, %v11107_v5  ;;  %v4684_v20 = vcombine.high %v4676_v17, %v4676_v17  ;;  %v10017_v16 = vld [vmem:[%s11105_s16 + $0xa9] sm:$0x3f] }
  0xba   : > { %v6087_v30 = vcombine.low %v6079_v15, %v6086_v7  ;;  %v11821_v48 = vcombine.high %v11810_v40, %v11810_v40  ;;  %v2111_v36 = vcombine.high %v9989_v25, %v9989_v25  ;;  %v2118_v46 = vrot.slane %v9989_v25, %v11107_v5  ;;  %v11025_v15 = vld [vmem:[%s11105_s16 + $0xa1] sm:$0xff] }
  0xbb   : > { %10492 = vrot.lane.b32.xlu0 %v10491_v22, %s11063_s24  ;;  %v8984_v6 = vcombine.low %v4683_v24, %v11815_v23  ;;  %v8983_v50 = vcombine.low %v4676_v17, %v4684_v20  ;;  %v11830_v3 = vcombine.high %v11723_v31, %v11723_v31  ;;  %v6545_v58 = vcombine.low %v11707_v56, %v11714_v21 }
  0xbc   : > { %v10506_v57 = vpack.i.bf16 %v6087_v30, %v6070_v18  ;;  %v8967_v54 = vcombine.low %v11810_v40, %v11821_v48  ;;  %v2125_v27 = vrot.slane %v2111_v36, %v11107_v5  ;;  %v2126_v34 = vcombine.high %v2118_v46, %v2118_v46 }
  0xbd   : > { %v8998_v41 = vrot.slane %v8984_v6, %v11107_v5  ;;  %v8991_v1 = vrot.slane %v8983_v50, %v11107_v5  ;;  %v6546_v13 = vcombine.low %v11730_v37, %v2118_v46  ;;  %v6563_v8 = vcombine.low %v11723_v31, %v11830_v3  ;;  %v10003_v46 = vld [vmem:[%s11105_s16 + $0x39] sm:$0x3f] }
  0xbe   : > { %10507 = vrot.lane.b32.xlu1 %v10506_v57, %s11057_s18  ;;  %v11839_v19 = vrot.slane %v8967_v54, %v11107_v5  ;;  %v6553_v59 = vrot.slane %v6545_v58, %v11107_v5  ;;  %v6562_v29 = vcombine.low %v2126_v34, %v2125_v27  ;;  %v1880_v60 = vcombine.high %v9975_v49, %v9975_v49 }
  0xbf   : > { %v1887_v56 = vrot.slane %v9975_v49, %v11107_v5  ;;  %v8999_v47 = vcombine.low %v8991_v1, %v8998_v41  ;;  %v6560_v53 = vrot.slane %v6546_v13, %v11107_v5  ;;  %v6577_v28 = vrot.slane %v6563_v8, %v11107_v5 }
  0xc0   : > { %v8982_v21 = vcombine.low %v6086_v7, %v11839_v19  ;;  %v6570_v62 = vrot.slane %v6562_v29, %v11107_v5  ;;  %v1894_v37 = vrot.slane %v1880_v60, %v11107_v5  ;;  %v1896_v31 = vcombine.high %v11614_v44, %v11614_v44 }
  0xc1   : > { %v1895_v2 = vcombine.high %v1887_v56, %v1887_v56  ;;  %v6561_v63 = vcombine.low %v6553_v59, %v6560_v53  ;;  %v6341_v7 = vcombine.low %v11622_v0, %v11634_v51  ;;  %v2612_v17 = vcombine.high %v11025_v15, %v11025_v15 }
  0xc2   : > { %v10501_v26 = vpack.i.bf16 %v8999_v47, %v8982_v21  ;;  %v6578_v25 = vcombine.low %v6570_v62, %v6577_v28  ;;  %v11859_v22 = vrot.slane %v1896_v31, %v11107_v5  ;;  %v6358_v24 = vcombine.low %v1894_v37, %v11629_v10  ;;  %v10045_v47 = vld [vmem:[%s11105_s16 + $0xaa] sm:$0x3f] }
  0xc3   : > { %v6342_v18 = vcombine.low %v1887_v56, %v1895_v2  ;;  %v6349_v44 = vrot.slane %v6341_v7, %v11107_v5  ;;  %v2626_v30 = vrot.slane %v2612_v17, %v11107_v5  ;;  %v2629_v20 = vcombine.high %v10017_v16, %v10017_v16 }
  0xc4   : > { %10502 = vrot.lane.b32.xlu0 %v10501_v26, %s11062_s23  ;;  %v10516_v6 = vpack.i.bf16 %v6578_v25, %v6561_v63  ;;  %v6359_v0 = vcombine.low %v11646_v42, %v11859_v22  ;;  %v6366_v51 = vrot.slane %v6358_v24, %v11107_v5  ;;  %v2636_v54 = vrot.slane %v10017_v16, %v11107_v5 }
  0xc5   : > { %v6356_v36 = vrot.slane %v6342_v18, %v11107_v5  ;;  %v2628_v57 = vcombine.high %v2626_v30, %v2626_v30  ;;  %v2643_v10 = vrot.slane %v2629_v20, %v11107_v5  ;;  %v11874_v50 = vcombine.high %v11778_v45, %v11778_v45 }
  0xc6   : > { %10517 = vrot.lane.b32.xlu1 %v10516_v6, %s11059_s20  ;;  %v6373_v41 = vrot.slane %v6359_v0, %v11107_v5  ;;  %v7036_v42 = vcombine.low %v11301_v14, %v2626_v30  ;;  %v2381_v27 = vcombine.high %v11552_v11, %v11552_v11  ;;  %v2644_v34 = vcombine.high %v2636_v54, %v2636_v54  ;;  %v10031_v30 = vld [vmem:[%s11105_s16 + $0x3a] sm:$0x3f] }
  0xc7   : > { %v6357_v49 = vcombine.low %v6349_v44, %v6356_v36  ;;  %v7037_v58 = vcombine.low %v2628_v57, %v2636_v54  ;;  %v7054_v1 = vcombine.low %v11778_v45, %v11874_v50  ;;  %v2398_v13 = vcombine.high %v10003_v46, %v10003_v46  ;;  %v11026_v54 = vld [vmem:[%s11105_s16 + $0x32] sm:$0xff] }
  0xc8   : > { %v6374_v8 = vcombine.low %v6366_v51, %v6373_v41  ;;  %v7044_v59 = vrot.slane %v7036_v42, %v11107_v5  ;;  %v2395_v29 = vrot.slane %v2381_v27, %v11107_v5  ;;  %v2405_v60 = vrot.slane %v10003_v46, %v11107_v5 }
  0xc9   : > { %v7051_v56 = vrot.slane %v7037_v58, %v11107_v5  ;;  %v7053_v21 = vcombine.low %v2644_v34, %v2643_v10  ;;  %v7068_v14 = vrot.slane %v7054_v1, %v11107_v5  ;;  %v2412_v11 = vrot.slane %v2398_v13, %v11107_v5 }
  0xca   : > { %v10511_v53 = vpack.i.bf16 %v6374_v8, %v6357_v49  ;;  %v2397_v28 = vcombine.high %v2395_v29, %v2395_v29  ;;  %v2413_v62 = vcombine.high %v2405_v60, %v2405_v60  ;;  %v2414_v45 = vcombine.high %v11680_v55, %v11680_v55  ;;  %v10073_v8 = vld [vmem:[%s11105_s16 + $0xb8] sm:$0x3f] }
  0xcb   : > { %v7052_v37 = vcombine.low %v7044_v59, %v7051_v56  ;;  %v7061_v2 = vrot.slane %v7053_v21, %v11107_v5  ;;  %v6849_v31 = vcombine.low %v2412_v11, %v11691_v38  ;;  %v3147_v7 = vcombine.high %v10045_v47, %v10045_v47 }
  0xcc   : > { %10512 = vrot.lane.b32.xlu0 %v10511_v53, %s11059_s20  ;;  %v11896_v16 = vrot.slane %v2414_v45, %v11107_v5  ;;  %v6832_v26 = vcombine.low %v2395_v29, %v2397_v28  ;;  %v6833_v63 = vcombine.low %v2405_v60, %v2413_v62  ;;  %v3154_v55 = vrot.slane %v10045_v47, %v11107_v5  ;;  %v11936_v28 = vld [vmem:[%s11105_s16 + $0xc0] sm:$0xff] }
  0xcd   : > { %v7069_v15 = vcombine.low %v7061_v2, %v7068_v14  ;;  %v6857_v17 = vrot.slane %v6849_v31, %v11107_v5  ;;  %v11902_v25 = vcombine.high %v11815_v23, %v11815_v23  ;;  %v3161_v44 = vrot.slane %v3147_v7, %v11107_v5 }
  0xce   : > { %v6840_v38 = vrot.slane %v6832_v26, %v11107_v5  ;;  %v6847_v18 = vrot.slane %v6833_v63, %v11107_v5  ;;  %v6850_v24 = vcombine.low %v11698_v39, %v11896_v16  ;;  %v3162_v6 = vcombine.high %v3154_v55, %v3154_v55 }
  0xcf   : > { %v10526_v20 = vpack.i.bf16 %v7069_v15, %v7052_v37  ;;  %v7527_v36 = vcombine.low %v11789_v9, %v11810_v40  ;;  %v7528_v0 = vcombine.low %v11821_v48, %v3154_v55  ;;  %v7545_v57 = vcombine.low %v11815_v23, %v11902_v25 }
  0xd0   : > { %v6848_v51 = vcombine.low %v6840_v38, %v6847_v18  ;;  %v6864_v46 = vrot.slane %v6850_v24, %v11107_v5  ;;  %v2899_v10 = vcombine.high %v11026_v54, %v11026_v54  ;;  %v7544_v41 = vcombine.low %v3162_v6, %v3161_v44  ;;  %v10060_v38 = vld [vmem:[%s11105_s16 + $0x50] sm:$0xff] }
  0xd1   : > { %10527 = vrot.lane.b32.xlu1 %v10526_v20, %s11058_s19  ;;  %v7535_v39 = vrot.slane %v7527_v36, %v11107_v5  ;;  %v7542_v49 = vrot.slane %v7528_v0, %v11107_v5  ;;  %v2916_v42 = vcombine.high %v10031_v30, %v10031_v30  ;;  %v7559_v40 = vrot.slane %v7545_v57, %v11107_v5 }
  0xd2   : > { %v6865_v9 = vcombine.low %v6857_v17, %v6864_v46  ;;  %v2913_v48 = vrot.slane %v2899_v10, %v11107_v5  ;;  %v2923_v27 = vrot.slane %v10031_v30, %v11107_v5  ;;  %v7552_v58 = vrot.slane %v7544_v41, %v11107_v5  ;;  %v10101_v41 = vld [vmem:[%s11105_s16 + $0xb9] sm:$0x3f] }
  0xd3   : > { %v7543_v34 = vcombine.low %v7535_v39, %v7542_v49  ;;  %v2930_v1 = vrot.slane %v2916_v42, %v11107_v5  ;;  %v2932_v13 = vcombine.high %v11733_v35, %v11733_v35  ;;  %v3649_v56 = vcombine.high %v11701_v43, %v11701_v43 }
  0xd4   : > { %v10521_v59 = vpack.i.bf16 %v6865_v9, %v6848_v51  ;;  %v2915_v29 = vcombine.high %v2913_v48, %v2913_v48  ;;  %v2931_v60 = vcombine.high %v2923_v27, %v2923_v27  ;;  %v7560_v21 = vcombine.low %v7552_v58, %v7559_v40 }
  0xd5   : > { %v11931_v14 = vrot.slane %v2932_v13, %v11107_v5  ;;  %v7340_v11 = vcombine.low %v2930_v1, %v11749_v32  ;;  %v11939_v35 = vrot.slane %v3649_v56, %v11107_v5  ;;  %v3666_v62 = vcombine.high %v10073_v8, %v10073_v8  ;;  %v10059_v32 = vld [vmem:[%s11105_s16 + $0x48] sm:$0x3f] }
  0xd6   : > { %10522 = vrot.lane.b32.xlu0 %v10521_v59, %s11058_s19  ;;  %v7323_v47 = vcombine.low %v2913_v48, %v2915_v29  ;;  %v7324_v53 = vcombine.low %v2923_v27, %v2931_v60  ;;  %v10536_v45 = vpack.i.bf16 %v7560_v21, %v7543_v34  ;;  %v3673_v2 = vrot.slane %v10073_v8, %v11107_v5  ;;  %v11995_v1 = vld [vmem:[%s11105_s16 + $0xc1] sm:$0xff] }
  0xd7   : > { %v7341_v43 = vcombine.low %v11756_v12, %v11931_v14  ;;  %v7348_v37 = vrot.slane %v7340_v11, %v11107_v5  ;;  %v11950_v63 = vcombine.high %v11939_v35, %v11939_v35  ;;  %v3680_v7 = vrot.slane %v3666_v62, %v11107_v5  ;;  %v10087_v62 = vld [vmem:[%s11105_s16 + $0x49] sm:$0x3f] }
  0xd8   : > { %v7331_v31 = vrot.slane %v7323_v47, %v11107_v5  ;;  %v7338_v26 = vrot.slane %v7324_v53, %v11107_v5  ;;  %10537 = vrot.lane.b32.xlu1 %v10536_v45, %s11061_s22  ;;  %v3681_v12 = vcombine.high %v3673_v2, %v3673_v2  ;;  %v11957_v17 = vrot.slane %v11936_v28, %v11107_v5 }
  0xd9   : > { %v7355_v15 = vrot.slane %v7341_v43, %v11107_v5  ;;  %v8018_v55 = vcombine.low %v11830_v3, %v11939_v35  ;;  %v8019_v24 = vcombine.low %v11950_v63, %v3673_v2  ;;  %v11965_v44 = vcombine.high %v11859_v22, %v11859_v22 }
  0xda   : > { %v7339_v18 = vcombine.low %v7331_v31, %v7338_v26  ;;  %v3435_v30 = vcombine.high %v10059_v32, %v10059_v32  ;;  %v11969_v6 = vcombine.high %v11957_v17, %v11957_v17  ;;  %v8035_v0 = vcombine.low %v3681_v12, %v3680_v7 }
  0xdb   : > { %v7356_v20 = vcombine.low %v7348_v37, %v7355_v15  ;;  %v8026_v36 = vrot.slane %v8018_v55, %v11107_v5  ;;  %v8033_v3 = vrot.slane %v8019_v24, %v11107_v5  ;;  %v3442_v51 = vrot.slane %v10059_v32, %v11107_v5  ;;  %v10088_v32 = vld [vmem:[%s11105_s16 + $0x51] sm:$0xff] }
  0xdc   : > { %v3449_v46 = vrot.slane %v3435_v30, %v11107_v5  ;;  %v3451_v57 = vcombine.high %v10060_v38, %v10060_v38  ;;  %v8036_v10 = vcombine.low %v11957_v17, %v11969_v6  ;;  %v8043_v39 = vrot.slane %v8035_v0, %v11107_v5 }
  0xdd   : > { %v10531_v54 = vpack.i.bf16 %v7356_v20, %v7339_v18  ;;  %v11979_v49 = vrot.slane %v10060_v38, %v11107_v5  ;;  %v8034_v42 = vcombine.low %v8026_v36, %v8033_v3  ;;  %v3450_v9 = vcombine.high %v3442_v51, %v3442_v51 }
  0xde   : > { %v11983_v40 = vrot.slane %v3451_v57, %v11107_v5  ;;  %v7814_v48 = vcombine.low %v11859_v22, %v11965_v44  ;;  %v8050_v27 = vrot.slane %v8036_v10, %v11107_v5  ;;  %v4167_v13 = vcombine.high %v11763_v4, %v11763_v4 }
  0xdf   : > { %10532 = vrot.lane.b32.xlu0 %v10531_v54, %s11061_s22  ;;  %v11991_v34 = vcombine.high %v11979_v49, %v11979_v49  ;;  %v7831_v58 = vcombine.low %v3449_v46, %v11979_v49  ;;  %v7815_v8 = vcombine.low %v3442_v51, %v3450_v9  ;;  %v4184_v59 = vcombine.high %v10101_v41, %v10101_v41 }
  0xe0   : > { %v7822_v22 = vrot.slane %v7814_v48, %v11107_v5  ;;  %v8051_v29 = vcombine.low %v8043_v39, %v8050_v27  ;;  %v12004_v21 = vrot.slane %v4167_v13, %v11107_v5  ;;  %v4191_v47 = vrot.slane %v10101_v41, %v11107_v5  ;;  %v10129_v39 = vld [vmem:[%s11105_s16 + $0xba] sm:$0x3f]  ;;  %v12056_v13 = vld [vmem:[%s11105_s16 + $0xc2] sm:$0xff] }
  0xe1   : > { %v7832_v60 = vcombine.low %v11991_v34, %v11983_v40  ;;  %v7839_v56 = vrot.slane %v7831_v58, %v11107_v5  ;;  %v7829_v11 = vrot.slane %v7815_v8, %v11107_v5  ;;  %v4198_v4 = vrot.slane %v4184_v59, %v11107_v5 }
  0xe2   : > { %v12011_v53 = vrot.slane %v11995_v1, %v11107_v5  ;;  %v10546_v45 = vpack.i.bf16 %v8051_v29, %v8034_v42  ;;  %v12017_v37 = vcombine.high %v12004_v21, %v12004_v21  ;;  %v8509_v2 = vcombine.low %v11874_v50, %v12004_v21 }
  0xe3   : > { %v7846_v43 = vrot.slane %v7832_v60, %v11107_v5  ;;  %v7830_v31 = vcombine.low %v7822_v22, %v7829_v11  ;;  %v4199_v26 = vcombine.high %v4191_v47, %v4191_v47  ;;  %v12028_v15 = vcombine.high %v11896_v16, %v11896_v16 }
  0xe4   : > { %v12024_v7 = vcombine.high %v12011_v53, %v12011_v53  ;;  %10547 = vrot.lane.b32.xlu1 %v10546_v45, %s11060_s21  ;;  %v8510_v55 = vcombine.low %v12017_v37, %v4191_v47  ;;  %v8517_v38 = vrot.slane %v8509_v2, %v11107_v5  ;;  %v3953_v50 = vcombine.high %v10087_v62, %v10087_v62 }
  0xe5   : > { %v7847_v12 = vcombine.low %v7839_v56, %v7846_v43  ;;  %v8526_v18 = vcombine.low %v4199_v26, %v4198_v4  ;;  %v3960_v30 = vrot.slane %v10087_v62, %v11107_v5  ;;  %v3969_v20 = vcombine.high %v10088_v32, %v10088_v32  ;;  %v10115_v4 = vld [vmem:[%s11105_s16 + $0x4a] sm:$0x3f]  ;;  %v10116_v43 = vld [vmem:[%s11105_s16 + $0x52] sm:$0xff] }
  0xe6   : > { %v8527_v24 = vcombine.low %v12011_v53, %v12024_v7  ;;  %v8524_v0 = vrot.slane %v8510_v55, %v11107_v5  ;;  %v3967_v3 = vrot.slane %v3953_v50, %v11107_v5  ;;  %v12039_v51 = vrot.slane %v10088_v32, %v11107_v5 }
  0xe7   : > { %v10541_v36 = vpack.i.bf16 %v7847_v12, %v7830_v31  ;;  %v8534_v46 = vrot.slane %v8526_v18, %v11107_v5  ;;  %v3968_v54 = vcombine.high %v3960_v30, %v3960_v30  ;;  %v12044_v10 = vrot.slane %v3969_v20, %v11107_v5 }
  0xe8   : > { %v8541_v57 = vrot.slane %v8527_v24, %v11107_v5  ;;  %v8525_v41 = vcombine.low %v8517_v38, %v8524_v0  ;;  %v12050_v42 = vcombine.high %v12039_v51, %v12039_v51  ;;  %v8305_v9 = vcombine.low %v11896_v16, %v12028_v15  ;;  %v1243_v0 = vld [vmem:[%s11105_s16 + $0xaa] sm:$0x3f] }
  0xe9   : > { %10542 = vrot.lane.b32.xlu0 %v10541_v36, %s11060_s21  ;;  %v8322_v48 = vcombine.low %v3967_v3, %v12039_v51  ;;  %v8306_v58 = vcombine.low %v3960_v30, %v3968_v54  ;;  %v4685_v8 = vcombine.high %v11800_v61, %v11800_v61  ;;  %v4702_v60 = vcombine.high %v10129_v39, %v10129_v39 }
  0xea   : > { %v8542_v27 = vcombine.low %v8534_v46, %v8541_v57  ;;  %v8313_v22 = vrot.slane %v8305_v9, %v11107_v5  ;;  %v8323_v59 = vcombine.low %v12050_v42, %v12044_v10  ;;  %v4709_v47 = vrot.slane %v10129_v39, %v11107_v5 }
  0xeb   : > { %v8330_v29 = vrot.slane %v8322_v48, %v11107_v5  ;;  %v8320_v16 = vrot.slane %v8306_v58, %v11107_v5  ;;  %v12066_v11 = vrot.slane %v4685_v8, %v11107_v5  ;;  %v4716_v61 = vrot.slane %v4702_v60, %v11107_v5 }
  0xec   : > { %v10556_v56 = vpack.i.bf16 %v8542_v27, %v8525_v41  ;;  %v8337_v62 = vrot.slane %v8323_v59, %v11107_v5  ;;  %v12074_v45 = vrot.slane %v12056_v13, %v11107_v5  ;;  %v12079_v2 = vcombine.high %v11931_v14, %v11931_v14 }
  0xed   : > { %v8321_v32 = vcombine.low %v8313_v22, %v8320_v16  ;;  %v12084_v31 = vcombine.high %v12066_v11, %v12066_v11  ;;  %v4717_v26 = vcombine.high %v4709_v47, %v4709_v47  ;;  %v9000_v12 = vcombine.low %v11902_v25, %v12066_v11 }
  0xee   : > { %10557 = vrot.lane.b32.xlu1 %v10556_v56, %s11063_s24  ;;  %v8338_v55 = vcombine.low %v8330_v29, %v8337_v62  ;;  %v12090_v38 = vcombine.high %v12074_v45, %v12074_v45  ;;  %v4471_v50 = vcombine.high %v10115_v4, %v10115_v4  ;;  %v4478_v18 = vrot.slane %v10115_v4, %v11107_v5  ;;  %v1229_v56 = vld [vmem:[%s11105_s16 + $0x3a] sm:$0x3f] }
  0xef   : > { %v9001_v24 = vcombine.low %v12084_v31, %v4709_v47  ;;  %v9008_v30 = vrot.slane %v9000_v12, %v11107_v5  ;;  %v9017_v20 = vcombine.low %v4717_v26, %v4716_v61  ;;  %v4487_v36 = vcombine.high %v10116_v43, %v10116_v43 }
  0xf0   : > { %v10551_v3 = vpack.i.bf16 %v8338_v55, %v8321_v32  ;;  %v9018_v46 = vcombine.low %v12074_v45, %v12090_v38  ;;  %v4485_v25 = vrot.slane %v4471_v50, %v11107_v5  ;;  %v4486_v57 = vcombine.high %v4478_v18, %v4478_v18  ;;  %v9991_v32 = vld [vmem:[%s11105_s16 + $0xb8] sm:$0x3f] }
  0xf1   : > { %v9015_v54 = vrot.slane %v9001_v24, %v11107_v5  ;;  %v9025_v39 = vrot.slane %v9017_v20, %v11107_v5  ;;  %v12102_v41 = vrot.slane %v10116_v43, %v11107_v5  ;;  %v12105_v9 = vrot.slane %v4487_v36, %v11107_v5 }
  0xf2   : > { %10552 = vrot.lane.b32.xlu0 %v10551_v3, %s11063_s24  ;;  %v9032_v48 = vrot.slane %v9018_v46, %v11107_v5  ;;  %v8796_v27 = vcombine.low %v11931_v14, %v12079_v2  ;;  %v8797_v58 = vcombine.low %v4478_v18, %v4486_v57  ;;  %v1625_v8 = vcombine.high %v1243_v0, %v1243_v0 }
  0xf3   : > { %v9016_v22 = vcombine.low %v9008_v30, %v9015_v54  ;;  %v12113_v59 = vcombine.high %v12102_v41, %v12102_v41  ;;  %v8813_v29 = vcombine.low %v4485_v25, %v12102_v41  ;;  %v1632_v60 = vrot.slane %v1243_v0, %v11107_v5 }
  0xf4   : > { %v9033_v16 = vcombine.low %v9025_v39, %v9032_v48  ;;  %v8804_v47 = vrot.slane %v8796_v27, %v11107_v5  ;;  %v8811_v4 = vrot.slane %v8797_v58, %v11107_v5  ;;  %v1639_v62 = vrot.slane %v1625_v8, %v11107_v5 }
  0xf5   : > { %v8814_v14 = vcombine.low %v12113_v59, %v12105_v9  ;;  %v8821_v61 = vrot.slane %v8813_v29, %v11107_v5  ;;  %v1640_v43 = vcombine.high %v1632_v60, %v1632_v60  ;;  %v1394_v50 = vcombine.high %v1229_v56, %v1229_v56 }
  0xf6   : > { %v10566_v26 = vpack.i.bf16 %v9033_v16, %v9016_v22  ;;  %v8812_v12 = vcombine.low %v8804_v47, %v8811_v4  ;;  %v6105_v55 = vcombine.low %v1639_v62, %v11815_v23  ;;  %v1401_v20 = vrot.slane %v1229_v56, %v11107_v5  ;;  %v9977_v4 = vld [vmem:[%s11105_s16 + $0x48] sm:$0x3f] }
  0xf7   : > { %v8828_v18 = vrot.slane %v8814_v14, %v11107_v5  ;;  %v6089_v24 = vcombine.low %v1632_v60, %v1640_v43  ;;  %v1408_v0 = vrot.slane %v1394_v50, %v11107_v5  ;;  %v2144_v3 = vcombine.high %v9991_v32, %v9991_v32 }
  0xf8   : > { %10567 = vrot.lane.b32.xlu1 %v10566_v26, %s11062_s23  ;;  %v6113_v36 = vrot.slane %v6105_v55, %v11107_v5  ;;  %v2151_v46 = vrot.slane %v9991_v32, %v11107_v5  ;;  %v1409_v23 = vcombine.high %v1401_v20, %v1401_v20  ;;  %v5884_v54 = vcombine.low %v11740_v52, %v1401_v20  ;;  %v10019_v26 = vld [vmem:[%s11105_s16 + $0xb9] sm:$0x3f] }
  0xf9   : > { %v8829_v25 = vcombine.low %v8821_v61, %v8828_v18  ;;  %v6103_v57 = vrot.slane %v6089_v24, %v11107_v5  ;;  %v2158_v48 = vrot.slane %v2144_v3, %v11107_v5  ;;  %v2160_v60 = vcombine.high %v11936_v28, %v11936_v28 }
  0xfa   : > { %v6121_v39 = vcombine.low %v6113_v36, %v9008_v30  ;;  %v2159_v27 = vcombine.high %v2151_v46, %v2151_v46  ;;  %v5885_v22 = vcombine.low %v1409_v23, %v1408_v0  ;;  %v5892_v29 = vrot.slane %v5884_v54, %v11107_v5  ;;  %v10005_v23 = vld [vmem:[%s11105_s16 + $0x49] sm:$0x3f] }
  0xfb   : > { %v10561_v58 = vpack.i.bf16 %v8829_v25, %v8812_v12  ;;  %v6104_v8 = vcombine.low %v11839_v19, %v6103_v57  ;;  %v6579_v56 = vcombine.low %v11939_v35, %v11950_v63  ;;  %v6596_v62 = vcombine.low %v2158_v48, %v11957_v17 }
  0xfc   : > { %v6580_v16 = vcombine.low %v2151_v46, %v2159_v27  ;;  %v5899_v30 = vrot.slane %v5885_v22, %v11107_v5  ;;  %v5917_v19 = vcombine.low %v11774_v33, %v8804_v47  ;;  %v12147_v14 = vrot.slane %v2160_v60, %v11107_v5 }
  0xfd   : > { %10562 = vrot.lane.b32.xlu0 %v10561_v58, %s11062_s23  ;;  %v10576_v52 = vpack.i.bf16 %v6121_v39, %v6104_v8  ;;  %v6587_v28 = vrot.slane %v6579_v56, %v11107_v5  ;;  %v6604_v63 = vrot.slane %v6596_v62, %v11107_v5  ;;  %v1913_v43 = vcombine.high %v9977_v4, %v9977_v4 }
  0xfe   : > { %v6594_v61 = vrot.slane %v6580_v16, %v11107_v5  ;;  %v5900_v35 = vcombine.low %v5892_v29, %v5899_v30  ;;  %v1920_v32 = vrot.slane %v9977_v4, %v11107_v5  ;;  %v6597_v33 = vcombine.low %v11969_v6, %v12147_v14 }
  0xff   : > { %10577 = vrot.lane.b32.xlu1 %v10576_v52, %s11057_s18  ;;  %v12159_v17 = vcombine.high %v11983_v40, %v11983_v40  ;;  %v6392_v47 = vcombine.low %v11979_v49, %v11991_v34  ;;  %v1927_v50 = vrot.slane %v1913_v43, %v11107_v5  ;;  %v2662_v0 = vcombine.high %v10019_v26, %v10019_v26 }
 0x100   : > { %v6595_v12 = vcombine.low %v6587_v28, %v6594_v61  ;;  %v10571_v55 = vpack.i.bf16 %v5917_v19, %v5900_v35  ;;  %v1928_v18 = vcombine.high %v1920_v32, %v1920_v32  ;;  %v6375_v24 = vcombine.low %v11965_v44, %v1920_v32 }
 0x101   : > { %v6611_v20 = vrot.slane %v6597_v33, %v11107_v5  ;;  %v6393_v36 = vcombine.low %v11983_v40, %v12159_v17  ;;  %v6400_v6 = vrot.slane %v6392_v47, %v11107_v5  ;;  %v2669_v34 = vrot.slane %v10019_v26, %v11107_v5  ;;  %v10033_v33 = vld [vmem:[%s11105_s16 + $0x4a] sm:$0x3f] }
 0x102   : > { %10572 = vrot.lane.b32.xlu0 %v10571_v55, %s11057_s18  ;;  %v6376_v3 = vcombine.low %v1928_v18, %v1927_v50  ;;  %v6383_v49 = vrot.slane %v6375_v24, %v11107_v5  ;;  %v2678_v46 = vcombine.high %v11995_v1, %v11995_v1  ;;  %v2676_v57 = vrot.slane %v2662_v0, %v11107_v5 }
 0x103   : > { %v6612_v25 = vcombine.low %v6604_v63, %v6611_v20  ;;  %v6407_v44 = vrot.slane %v6393_v36, %v11107_v5  ;;  %v7070_v40 = vcombine.low %v12004_v21, %v12017_v37  ;;  %v2677_v39 = vcombine.high %v2669_v34, %v2669_v34 }
 0x104   : > { %v6390_v54 = vrot.slane %v6376_v3, %v11107_v5  ;;  %v12181_v48 = vrot.slane %v2678_v46, %v11107_v5  ;;  %v7087_v8 = vcombine.low %v2676_v57, %v12011_v53  ;;  %v2431_v21 = vcombine.high %v10005_v23, %v10005_v23  ;;  %v10047_v53 = vld [vmem:[%s11105_s16 + $0xba] sm:$0x3f]  ;;  %v10075_v57 = vld [vmem:[%s11105_s16 + $0xc8] sm:$0x3f] }
 0x105   : > { %v10586_v27 = vpack.i.bf16 %v6612_v25, %v6595_v12  ;;  %v6408_v58 = vcombine.low %v6400_v6, %v6407_v44  ;;  %v7078_v1 = vrot.slane %v7070_v40, %v11107_v5  ;;  %v7071_v29 = vcombine.low %v2669_v34, %v2677_v39  ;;  %v10076_v39 = vld [vmem:[%s11105_s16 + $0xd0] sm:$0xff] }
 0x106   : > { %v6391_v22 = vcombine.low %v6383_v49, %v6390_v54  ;;  %v7088_v60 = vcombine.low %v12024_v7, %v12181_v48  ;;  %v7095_v37 = vrot.slane %v7087_v8, %v11107_v5  ;;  %v2438_v56 = vrot.slane %v10005_v23, %v11107_v5 }
 0x107   : > { %10587 = vrot.lane.b32.xlu1 %v10586_v27, %s11059_s20  ;;  %v12192_v16 = vcombine.high %v12044_v10, %v12044_v10  ;;  %v6883_v4 = vcombine.low %v12039_v51, %v12050_v42  ;;  %v7085_v30 = vrot.slane %v7071_v29, %v11107_v5  ;;  %v2445_v62 = vrot.slane %v2431_v21, %v11107_v5 }
 0x108   : > { %v10581_v52 = vpack.i.bf16 %v6408_v58, %v6391_v22  ;;  %v7102_v7 = vrot.slane %v7088_v60, %v11107_v5  ;;  %v2446_v19 = vcombine.high %v2438_v56, %v2438_v56  ;;  %v6866_v28 = vcombine.low %v12028_v15, %v2438_v56 }
 0x109   : > { %v6884_v61 = vcombine.low %v12044_v10, %v12192_v16  ;;  %v6891_v35 = vrot.slane %v6883_v4, %v11107_v5  ;;  %v7086_v51 = vcombine.low %v7078_v1, %v7085_v30  ;;  %v3180_v63 = vcombine.high %v10047_v53, %v10047_v53 }
 0x10a   : > { %10582 = vrot.lane.b32.xlu0 %v10581_v52, %s11059_s20  ;;  %v7103_v42 = vcombine.low %v7095_v37, %v7102_v7  ;;  %v3187_v43 = vrot.slane %v10047_v53, %v11107_v5  ;;  %v6867_v32 = vcombine.low %v2446_v19, %v2445_v62  ;;  %v6874_v26 = vrot.slane %v6866_v28, %v11107_v5  ;;  %v10061_v52 = vld [vmem:[%s11105_s16 + $0x58] sm:$0x3f]  ;;  %v10062_v28 = vld [vmem:[%s11105_s16 + $0x60] sm:$0xff] }
 0x10b   : > { %v6898_v12 = vrot.slane %v6884_v61, %v11107_v5  ;;  %v3196_v15 = vcombine.high %v12056_v13, %v12056_v13  ;;  %v3194_v10 = vrot.slane %v3180_v63, %v11107_v5  ;;  %v7561_v50 = vcombine.low %v12066_v11, %v12084_v31 }
 0x10c   : > { %v10596_v47 = vpack.i.bf16 %v7103_v42, %v7086_v51  ;;  %v3195_v55 = vcombine.high %v3187_v43, %v3187_v43  ;;  %v6881_v18 = vrot.slane %v6867_v32, %v11107_v5  ;;  %v2949_v0 = vcombine.high %v10033_v33, %v10033_v33 }
 0x10d   : > { %v6899_v24 = vcombine.low %v6891_v35, %v6898_v12  ;;  %v12216_v20 = vrot.slane %v3196_v15, %v11107_v5  ;;  %v7569_v13 = vrot.slane %v7561_v50, %v11107_v5  ;;  %v7578_v6 = vcombine.low %v3194_v10, %v12074_v45 }
 0x10e   : > { %10597 = vrot.lane.b32.xlu1 %v10596_v47, %s11058_s19  ;;  %v7562_v36 = vcombine.low %v3187_v43, %v3195_v55  ;;  %v6882_v3 = vcombine.low %v6874_v26, %v6881_v18  ;;  %v2956_v49 = vrot.slane %v10033_v33, %v11107_v5  ;;  %v12226_v34 = vcombine.high %v12105_v9, %v12105_v9 }
 0x10f   : > { %v7579_v11 = vcombine.low %v12090_v38, %v12216_v20  ;;  %v7586_v25 = vrot.slane %v7578_v6, %v11107_v5  ;;  %v2963_v44 = vrot.slane %v2949_v0, %v11107_v5  ;;  %v7374_v45 = vcombine.low %v12102_v41, %v12113_v59 }
 0x110   : > { %v7576_v46 = vrot.slane %v7562_v36, %v11107_v5  ;;  %v10591_v40 = vpack.i.bf16 %v6899_v24, %v6882_v3  ;;  %v2964_v38 = vcombine.high %v2956_v49, %v2956_v49  ;;  %v7357_v54 = vcombine.low %v12079_v2, %v2956_v49 }
 0x111   : > { %v7593_v23 = vrot.slane %v7579_v11, %v11107_v5  ;;  %v7375_v58 = vcombine.low %v12105_v9, %v12226_v34  ;;  %v7382_v1 = vrot.slane %v7374_v45, %v11107_v5  ;;  %v12242_v8 = vcombine.high %v12147_v14, %v12147_v14 }
 0x112   : > { %v7577_v27 = vcombine.low %v7569_v13, %v7576_v46  ;;  %10592 = vrot.lane.b32.xlu0 %v10591_v40, %s11058_s19  ;;  %v7358_v59 = vcombine.low %v2964_v38, %v2963_v44  ;;  %v7365_v22 = vrot.slane %v7357_v54, %v11107_v5  ;;  %v3699_v2 = vcombine.high %v10075_v57, %v10075_v57  ;;  %v10104_v38 = vld [vmem:[%s11105_s16 + $0xd1] sm:$0xff] }
 0x113   : > { %v7594_v41 = vcombine.low %v7586_v25, %v7593_v23  ;;  %v7389_v29 = vrot.slane %v7375_v58, %v11107_v5  ;;  %v3706_v60 = vrot.slane %v10075_v57, %v11107_v5  ;;  %v3715_v9 = vcombine.high %v10076_v39, %v10076_v39  ;;  %v10103_v23 = vld [vmem:[%s11105_s16 + $0xc9] sm:$0x3f] }
 0x114   : > { %v12249_v21 = vrot.slane %v10076_v39, %v11107_v5  ;;  %v7372_v56 = vrot.slane %v7358_v59, %v11107_v5  ;;  %v3713_v4 = vrot.slane %v3699_v2, %v11107_v5  ;;  %v8052_v53 = vcombine.low %v12147_v14, %v12242_v8 }
 0x115   : > { %v10606_v37 = vpack.i.bf16 %v7594_v41, %v7577_v27  ;;  %v7390_v30 = vcombine.low %v7382_v1, %v7389_v29  ;;  %v3714_v7 = vcombine.high %v3706_v60, %v3706_v60  ;;  %v12257_v62 = vrot.slane %v3715_v9, %v11107_v5  ;;  %v10089_v1 = vld [vmem:[%s11105_s16 + $0x59] sm:$0x3f] }
 0x116   : > { %v12261_v19 = vcombine.high %v12249_v21, %v12249_v21  ;;  %v7373_v61 = vcombine.low %v7365_v22, %v7372_v56  ;;  %v8060_v35 = vrot.slane %v8052_v53, %v11107_v5  ;;  %v8069_v51 = vcombine.low %v3713_v4, %v12249_v21  ;;  %v12316_v22 = vld [vmem:[%s11105_s16 + $0x20] sm:$0xff] }
 0x117   : > { %10607 = vrot.lane.b32.xlu1 %v10606_v37, %s11061_s22  ;;  %v8053_v42 = vcombine.low %v3706_v60, %v3714_v7  ;;  %v3468_v63 = vcombine.high %v10061_v52, %v10061_v52  ;;  %v3475_v43 = vrot.slane %v10061_v52, %v11107_v5  ;;  %v3484_v12 = vcombine.high %v10062_v28, %v10062_v28  ;;  %v10090_v37 = vld [vmem:[%s11105_s16 + $0x61] sm:$0xff] }
 0x118   : > { %v8070_v14 = vcombine.low %v12261_v19, %v12257_v62  ;;  %v10601_v32 = vpack.i.bf16 %v7390_v30, %v7373_v61  ;;  %v8077_v26 = vrot.slane %v8069_v51, %v11107_v5  ;;  %v12272_v15 = vrot.slane %v10062_v28, %v11107_v5  ;;  %v191_v30 = vld [vmem:[%s11105_s16 + $0x28] sm:$0x3f] }
 0x119   : > { %v8067_v33 = vrot.slane %v8053_v42, %v11107_v5  ;;  %v3482_v10 = vrot.slane %v3468_v63, %v11107_v5  ;;  %v3483_v55 = vcombine.high %v3475_v43, %v3475_v43  ;;  %v12279_v50 = vrot.slane %v3484_v12, %v11107_v5 }
 0x11a   : > { %v8084_v47 = vrot.slane %v8070_v14, %v11107_v5  ;;  %10602 = vrot.lane.b32.xlu0 %v10601_v32, %s11061_s22  ;;  %v12283_v18 = vcombine.high %v12272_v15, %v12272_v15  ;;  %v7848_v24 = vcombine.low %v12159_v17, %v3475_v43  ;;  %v12310_v54 = vcombine.high %v12181_v48, %v12181_v48  ;;  %v192_v32 = vld [vmem:[%s11105_s16 + $0x30] sm:$0xff] }
 0x11b   : > { %v8068_v36 = vcombine.low %v8060_v35, %v8067_v33  ;;  %v7849_v6 = vcombine.low %v3483_v55, %v3482_v10  ;;  %v12288_v0 = vcombine.high %v12279_v50, %v12279_v50  ;;  %v4217_v39 = vcombine.high %v10103_v23, %v10103_v23 }
 0x11c   : > { %v8085_v13 = vcombine.low %v8077_v26, %v8084_v47  ;;  %v7856_v3 = vrot.slane %v7848_v24, %v11107_v5  ;;  %v7865_v11 = vcombine.low %v12272_v15, %v12283_v18  ;;  %v4224_v27 = vrot.slane %v10103_v23, %v11107_v5 }
 0x11d   : > { %v7863_v46 = vrot.slane %v7849_v6, %v11107_v5  ;;  %v7866_v17 = vcombine.low %v12279_v50, %v12288_v0  ;;  %v4231_v58 = vrot.slane %v4217_v39, %v11107_v5  ;;  %v4233_v59 = vcombine.high %v10104_v38, %v10104_v38 }
 0x11e   : > { %v10616_v49 = vpack.i.bf16 %v8085_v13, %v8068_v36  ;;  %v12297_v25 = vrot.slane %v7865_v11, %v11107_v5  ;;  %v4232_v41 = vcombine.high %v4224_v27, %v4224_v27  ;;  %v12319_v2 = vrot.slane %v10104_v38, %v11107_v5 }
 0x11f   : > { %v7864_v44 = vcombine.low %v7856_v3, %v7863_v46  ;;  %v12301_v45 = vrot.slane %v7866_v17, %v11107_v5  ;;  %v8543_v29 = vcombine.low %v12181_v48, %v12310_v54  ;;  %v12324_v60 = vrot.slane %v4233_v59, %v11107_v5  ;;  %v188_v46 = vld [vmem:[%s11105_s16 + $0x10] sm:$0xff] }
 0x120   : > { %14285 = vst [vmem:[#allocation3_spill] sm:$0xff] %v12297_v25  ;;  %10617 = vrot.lane.b32.xlu1 %v10616_v49, %s11060_s21  ;;  %v8544_v9 = vcombine.low %v4224_v27, %v4232_v41  ;;  %v3986_v56 = vcombine.high %v10089_v1, %v10089_v1  ;;  %v12329_v4 = vcombine.high %v12319_v2, %v12319_v2  ;;  %v186_v49 = vld [vmem:[%s11105_s16] sm:$0xff] }
 0x121   : > { %14286 = vst [vmem:[#allocation4_spill] sm:$0xff] %v12301_v45  ;;  %v7881_v57 = vcombine.low %v12297_v25, %v12301_v45  ;;  %v8551_v53 = vrot.slane %v8543_v29, %v11107_v5  ;;  %v8560_v52 = vcombine.low %v4231_v58, %v12319_v2  ;;  %v308_v7 = vcombine.high %v12316_v22, %v12316_v22  ;;  %v196_v45 = vld [vmem:[%s11105_s16 + $0x50] sm:$0xff] }
 0x122   : > { %v8558_v48 = vrot.slane %v8544_v9, %v11107_v5  ;;  %v3993_v28 = vrot.slane %v10089_v1, %v11107_v5  ;;  %v4000_v61 = vrot.slane %v3986_v56, %v11107_v5  ;;  %v8561_v35 = vcombine.low %v12329_v4, %v12324_v60  ;;  %v12380_v56 = vpop.permute.xlu1 %10347 }
 0x123   : > { %v10611_v40 = vpack.i.bf16 %v7881_v57, %v7864_v44  ;;  %v8568_v51 = vrot.slane %v8560_v52, %v11107_v5  ;;  %v4002_v42 = vcombine.high %v10090_v37, %v10090_v37  ;;  %v12343_v63 = vrot.slane %v10090_v37, %v11107_v5  ;;  %v187_v52 = vld [vmem:[%s11105_s16 + $0x8] sm:$0x3f] }
 0x124   : > { %v4001_v14 = vcombine.high %v3993_v28, %v3993_v28  ;;  %v8339_v43 = vcombine.low %v12192_v16, %v3993_v28  ;;  %v325_v26 = vcombine.high %v191_v30, %v191_v30  ;;  %v8559_v12 = vcombine.low %v8551_v53, %v8558_v48  ;;  %v12385_v48 = vld [vmem:[%s11105_s16 + $0x18] sm:$0x3f] }
 0x125   : > { %10612 = vrot.lane.b32.xlu0 %v10611_v40, %s11060_s21  ;;  %v8575_v33 = vrot.slane %v8561_v35, %v11107_v5  ;;  %v12349_v47 = vrot.slane %v4002_v42, %v11107_v5  ;;  %v322_v10 = vrot.slane %v308_v7, %v11107_v5  ;;  %v332_v55 = vrot.slane %v191_v30, %v11107_v5 }
 0x126   : > { %v12355_v24 = vcombine.high %v12343_v63, %v12343_v63  ;;  %v8340_v36 = vcombine.low %v4001_v14, %v4000_v61  ;;  %v8347_v6 = vrot.slane %v8339_v43, %v11107_v5  ;;  %v341_v3 = vcombine.high %v192_v32, %v192_v32 }
 0x127   : > { %v8576_v13 = vcombine.low %v8568_v51, %v8575_v33  ;;  %v12359_v16 = vcombine.high %v12349_v47, %v12349_v47  ;;  %v348_v11 = vrot.slane %v192_v32, %v11107_v5  ;;  %v339_v57 = vrot.slane %v325_v26, %v11107_v5  ;;  %v10131_v32 = vld [vmem:[%s11105_s16 + $0xca] sm:$0x3f] }
 0x128   : > { %v8354_v17 = vrot.slane %v8340_v36, %v11107_v5  ;;  %v8356_v44 = vcombine.low %v12343_v63, %v12355_v24  ;;  %v324_v38 = vcombine.high %v322_v10, %v322_v10  ;;  %v340_v39 = vcombine.high %v332_v55, %v332_v55 }
 0x129   : > { %v10626_v40 = vpack.i.bf16 %v8576_v13, %v8559_v12  ;;  %v8357_v23 = vcombine.low %v12349_v47, %v12359_v16  ;;  %v242_v58 = vcombine.high %v186_v49, %v186_v49  ;;  %v12373_v1 = vrot.slane %v188_v46, %v11107_v5  ;;  %v10132_v13 = vld [vmem:[%s11105_s16 + $0xd2] sm:$0xff] }
 0x12a   : > { %v8364_v27 = vrot.slane %v8356_v44, %v11107_v5  ;;  %v8355_v41 = vcombine.low %v8347_v6, %v8354_v17  ;;  %v12378_v29 = vrot.slane %v341_v3, %v11107_v5  ;;  %v356_v9 = vcombine.high %v348_v11, %v348_v11 }
 0x12b   : > { %10627 = vrot.lane.b32.xlu1 %v10626_v40, %s11063_s24  ;;  %v8371_v59 = vrot.slane %v8357_v23, %v11107_v5  ;;  %v275_v37 = vcombine.high %v188_v46, %v188_v46  ;;  %v4935_v53 = vcombine.low %v339_v57, %v348_v11  ;;  %v249_v30 = vrot.slane %v186_v49, %v11107_v5 }
 0x12c   : > { %v290_v28 = vcombine.high %v12373_v1, %v12373_v1  ;;  %v10350_v61 = vunpack.i.h.bf16 %v12380_v56  ;;  %v12391_v51 = vcombine.low %v322_v10, %v324_v38  ;;  %v12393_v42 = vcombine.low %v332_v55, %v340_v39 }
 0x12d   : > { %v8372_v7 = vcombine.low %v8364_v27, %v8371_v59  ;;  %v289_v35 = vrot.slane %v275_v37, %v11107_v5  ;;  %v256_v14 = vrot.slane %v242_v58, %v11107_v5  ;;  %v259_v26 = vcombine.high %v187_v52, %v187_v52 }
 0x12e   : > { %v12399_v33 = vrot.slane %v12385_v48, %v11107_v5  ;;  %v12403_v6 = vcombine.low %v356_v9, %v12378_v29  ;;  %v4943_v10 = vrot.slane %v4935_v53, %v11107_v5  ;;  %v257_v55 = vcombine.high %v249_v30, %v249_v30 }
 0x12f   : > { %v10621_v43 = vpack.i.bf16 %v8372_v7, %v8355_v41  ;;  %v291_v12 = vcombine.high %v289_v35, %v289_v35  ;;  %v4884_v36 = vcombine.low %v290_v28, %v289_v35  ;;  %v266_v3 = vrot.slane %v187_v52, %v11107_v5  ;;  %v10117_v41 = vld [vmem:[%s11105_s16 + $0x5a] sm:$0x3f] }
 0x130   : > { %v12412_v46 = vcombine.high %v12216_v20, %v12216_v20  ;;  %v4735_v17 = vcombine.high %v10131_v32, %v10131_v32  ;;  %v4933_v44 = vrot.slane %v12393_v42, %v11107_v5  ;;  %v258_v57 = vcombine.high %v256_v14, %v256_v14 }
 0x131   : > { %10622 = vrot.lane.b32.xlu0 %v10621_v43, %s11063_s24  ;;  %v4885_v11 = vcombine.low %v291_v12, %v12399_v33  ;;  %v4892_v49 = vrot.slane %v4884_v36, %v11107_v5  ;;  %v4742_v40 = vrot.slane %v10131_v32, %v11107_v5  ;;  %v4751_v23 = vcombine.high %v10132_v13, %v10132_v13  ;;  %v10118_v32 = vld [vmem:[%s11105_s16 + $0x62] sm:$0xff] }
 0x132   : > { %v273_v38 = vrot.slane %v259_v26, %v11107_v5  ;;  %v4749_v27 = vrot.slane %v4735_v17, %v11107_v5  ;;  %v12421_v58 = vrot.slane %v10132_v13, %v11107_v5  ;;  %v274_v59 = vcombine.high %v266_v3, %v266_v3 }
 0x133   : > { %v4899_v39 = vrot.slane %v4885_v11, %v11107_v5  ;;  %v4850_v9 = vcombine.low %v249_v30, %v257_v55  ;;  %v4750_v37 = vcombine.high %v4742_v40, %v4742_v40  ;;  %v12425_v53 = vrot.slane %v4751_v23, %v11107_v5 }
 0x134   : > { %v12431_v7 = vcombine.high %v12421_v58, %v12421_v58  ;;  %v9034_v28 = vcombine.low %v12216_v20, %v12412_v46  ;;  %v9051_v35 = vcombine.low %v4749_v27, %v12421_v58  ;;  %v4851_v42 = vcombine.low %v256_v14, %v258_v57 }
 0x135   : > { %v12427_v52 = vcombine.low %v4892_v49, %v4899_v39  ;;  %v9035_v43 = vcombine.low %v4742_v40, %v4750_v37  ;;  %v4504_v26 = vcombine.high %v10117_v41, %v10117_v41  ;;  %v4868_v30 = vcombine.low %v273_v38, %v12373_v1 }
 0x136   : > { %v9042_v12 = vrot.slane %v9034_v28, %v11107_v5  ;;  %v9052_v36 = vcombine.low %v12431_v7, %v12425_v53  ;;  %v9059_v13 = vrot.slane %v9051_v35, %v11107_v5  ;;  %v4867_v55 = vcombine.low %v266_v3, %v274_v59  ;;  %v193_v28 = vld [vmem:[%s11105_s16 + $0x38] sm:$0x3f] }
 0x137   : > { %v9049_v11 = vrot.slane %v9035_v43, %v11107_v5  ;;  %v4511_v20 = vrot.slane %v10117_v41, %v11107_v5  ;;  %v4518_v49 = vrot.slane %v4504_v26, %v11107_v5  ;;  %v4926_v14 = vrot.slane %v12391_v51, %v11107_v5  ;;  %v10338_v43 = vpop.permute.xlu0 %10337 }
 0x138   : > { %v9066_v1 = vrot.slane %v9052_v36, %v11107_v5  ;;  %v4520_v17 = vcombine.high %v10118_v32, %v10118_v32  ;;  %v12449_v57 = vrot.slane %v10118_v32, %v11107_v5  ;;  %v4950_v3 = vrot.slane %v12403_v6, %v11107_v5 }
 0x139   : > { %v9050_v40 = vcombine.low %v9042_v12, %v9049_v11  ;;  %v4519_v23 = vcombine.high %v4511_v20, %v4511_v20  ;;  %v8830_v38 = vcombine.low %v12226_v34, %v4511_v20  ;;  %v4858_v39 = vrot.slane %v4850_v9, %v11107_v5  ;;  %v194_v34 = vld [vmem:[%s11105_s16 + $0x40] sm:$0xff] }
 0x13a   : > { %v9067_v27 = vcombine.low %v9059_v13, %v9066_v1  ;;  %v12456_v41 = vrot.slane %v4520_v17, %v11107_v5  ;;  %v12460_v51 = vcombine.high %v12449_v57, %v12449_v57  ;;  %v4865_v59 = vrot.slane %v4851_v42, %v11107_v5 }
 0x13b   : > { %v4875_v37 = vrot.slane %v4867_v55, %v11107_v5  ;;  %v4882_v6 = vrot.slane %v4868_v30, %v11107_v5  ;;  %v8831_v35 = vcombine.low %v4519_v23, %v4518_v49  ;;  %v8838_v26 = vrot.slane %v8830_v38, %v11107_v5 }
 0x13c   : > { %v10636_v32 = vpack.i.bf16 %v9067_v27, %v9050_v40  ;;  %v12469_v9 = vcombine.high %v12456_v41, %v12456_v41  ;;  %v8847_v12 = vcombine.low %v12449_v57, %v12460_v51  ;;  %v10349_v42 = vunpack.i.l.bf16 %v12380_v56 }
 0x13d   : > { %v4934_v36 = vcombine.low %v4926_v14, %v4933_v44  ;;  %v4951_v13 = vcombine.low %v4943_v10, %v4950_v3  ;;  %v8845_v30 = vrot.slane %v8831_v35, %v11107_v5  ;;  %v358_v55 = vcombine.high %v193_v28, %v193_v28  ;;  %v1245_v3 = vld [vmem:[%s11105_s16 + $0xba] sm:$0x3f] }
 0x13e   : > { %v365_v11 = vrot.slane %v193_v28, %v11107_v5  ;;  %10637 = vrot.lane.b32.xlu1 %v10636_v32, %s11062_s23  ;;  %v8848_v20 = vcombine.low %v12456_v41, %v12469_v9  ;;  %v8855_v49 = vrot.slane %v8847_v12, %v11107_v5  ;;  %v10339_v1 = vunpack.i.l.bf16 %v10338_v43 }
 0x13f   : > { %v4866_v17 = vcombine.low %v4858_v39, %v4865_v59  ;;  %v374_v40 = vcombine.high %v194_v34, %v194_v34  ;;  %v10340_v23 = vunpack.i.h.bf16 %v10338_v43  ;;  %v4883_v44 = vcombine.low %v4875_v37, %v4882_v6  ;;  %v12498_v43 = vpop.permute.xlu1 %10352 }
 0x140   : > { %v8846_v10 = vcombine.low %v8838_v26, %v8845_v30  ;;  %v8862_v14 = vrot.slane %v8848_v20, %v11107_v5  ;;  %v12484_v38 = vsel %vm9219_vm0, %v4934_v36, %v10349_v42  ;;  %v357_v27 = vcombine.high %v12378_v29, %v12378_v29  ;;  %v12501_v29 = vpop.permute.xlu0 %10342  ;;  %v1231_v20 = vld [vmem:[%s11105_s16 + $0x4a] sm:$0x3f] }
 0x141   : > { %14287 = vst [vmem:[#allocation5_spill] sm:$0xff] %v12484_v38  ;;  %v381_v28 = vrot.slane %v194_v34, %v11107_v5  ;;  %v12492_v39 = vsel %vm9219_vm0, %v4951_v13, %v10350_v61  ;;  %v372_v59 = vrot.slane %v358_v55, %v11107_v5  ;;  %v373_v37 = vcombine.high %v365_v11, %v365_v11  ;;  %v1246_v34 = vld [vmem:[%s11105_s16 + $0xc2] sm:$0xff] }
 0x142   : > { %14288 = vst [vmem:[#allocation6_spill] sm:$0xff] %v12492_v39  ;;  %v8863_v6 = vcombine.low %v8855_v49, %v8862_v14  ;;  %v12496_v35 = vsel %vm9219_vm0, %v4866_v17, %v10339_v1  ;;  %v388_v32 = vrot.slane %v374_v40, %v11107_v5  ;;  %v1658_v26 = vcombine.high %v1245_v3, %v1245_v3 }
 0x143   : > { %v12505_v56 = vsel %vm9219_vm0, %v4883_v44, %v10340_v23  ;;  %v389_v36 = vcombine.high %v381_v28, %v381_v28  ;;  %v12509_v13 = vcombine.low %v357_v27, %v365_v11  ;;  %v292_v30 = vcombine.high %v12385_v48, %v12385_v48 }
 0x144   : > { %14289 = vst [vmem:[#allocation7_spill] sm:$0xff] %v12505_v56  ;;  %v10631_v42 = vpack.i.bf16 %v8863_v6, %v8846_v10  ;;  %v1665_v55 = vrot.slane %v1245_v3, %v11107_v5  ;;  %v12515_v49 = vcombine.low %v373_v37, %v372_v59  ;;  %v1672_v17 = vrot.slane %v1658_v26, %v11107_v5  ;;  %v1232_v3 = vld [vmem:[%s11105_s16 + $0x52] sm:$0xff] }
 0x145   : > { %v1674_v40 = vcombine.high %v1246_v34, %v1246_v34  ;;  %v390_v23 = vcombine.high %v388_v32, %v388_v32  ;;  %v1681_v11 = vrot.slane %v1246_v34, %v11107_v5  ;;  %v315_v10 = vrot.slane %v12316_v22, %v11107_v5 }
 0x146   : > { %10632 = vrot.lane.b32.xlu0 %v10631_v42, %s11062_s23  ;;  %v1673_v44 = vcombine.high %v1665_v55, %v1665_v55  ;;  %v6122_v48 = vcombine.low %v12084_v31, %v1665_v55  ;;  %v1427_v27 = vcombine.high %v1231_v20, %v1231_v20  ;;  %v1434_v59 = vrot.slane %v1231_v20, %v11107_v5  ;;  %v12532_v31 = vld [vmem:[%s11105_s16 + $0x5a] sm:$0x3f] }
 0x147   : > { %v1688_v14 = vrot.slane %v1674_v40, %v11107_v5  ;;  %v12527_v37 = vcombine.low %v381_v28, %v389_v36  ;;  %v306_v6 = vrot.slane %v292_v30, %v11107_v5  ;;  %v1689_v26 = vcombine.high %v1681_v11, %v1681_v11  ;;  %14290 = vst [vmem:[#allocation8_spill] sm:$0xff] %v12532_v31  ;;  %v195_v40 = vld [vmem:[%s11105_s16 + $0x48] sm:$0x3f] }
 0x148   : > { %v6123_v42 = vcombine.low %v1673_v44, %v1672_v17  ;;  %v6130_v1 = vrot.slane %v6122_v48, %v11107_v5  ;;  %v1441_v22 = vrot.slane %v1427_v27, %v11107_v5  ;;  %v1442_v55 = vcombine.high %v1434_v59, %v1434_v59 }
 0x149   : > { %v1690_v34 = vcombine.high %v1688_v14, %v1688_v14  ;;  %v6139_v12 = vcombine.low %v1681_v11, %v1689_v26  ;;  %v1443_v20 = vcombine.high %v1232_v3, %v1232_v3  ;;  %v1450_v28 = vrot.slane %v1232_v3, %v11107_v5 }
 0x14a   : > { %v6137_v61 = vrot.slane %v6123_v42, %v11107_v5  ;;  %v307_v36 = vcombine.high %v12399_v33, %v12399_v33  ;;  %v323_v30 = vcombine.high %v315_v10, %v315_v10  ;;  %v5918_v44 = vcombine.low %v1434_v59, %v1442_v55 }
 0x14b   : > { %v6140_v17 = vcombine.low %v1688_v14, %v1690_v34  ;;  %v6147_v48 = vrot.slane %v6139_v12, %v11107_v5  ;;  %v1457_v25 = vrot.slane %v1443_v20, %v11107_v5  ;;  %v1458_v27 = vcombine.high %v1450_v28, %v1450_v28 }
 0x14c   : > { %v12545_v38 = vrot.slane %v12532_v31, %v11107_v5  ;;  %v391_v11 = vcombine.high %v195_v40, %v195_v40  ;;  %v6138_v26 = vcombine.low %v6130_v1, %v6137_v61  ;;  %v5919_v42 = vcombine.low %v1441_v22, %v1450_v28  ;;  %v199_v28 = vld [vmem:[%s11105_s16 + $0x68] sm:$0x3f] }
 0x14d   : > { %v6154_v3 = vrot.slane %v6140_v17, %v11107_v5  ;;  %v4970_v39 = vcombine.low %v388_v32, %v390_v23  ;;  %v1459_v33 = vcombine.high %v1457_v25, %v1457_v25  ;;  %v5926_v14 = vrot.slane %v5918_v44, %v11107_v5  ;;  %v12566_v44 = vld [vmem:[%s11105_s16 + $0x58] sm:$0x3f] }
 0x14e   : > { %14291 = vst [vmem:[#allocation9_spill] sm:$0xff] %v12545_v38  ;;  %v5935_v59 = vcombine.low %v1458_v27, %v1457_v25  ;;  %v398_v12 = vrot.slane %v195_v40, %v11107_v5  ;;  %v407_v34 = vcombine.high %v196_v45, %v196_v45  ;;  %v5933_v20 = vrot.slane %v5919_v42, %v11107_v5 }
 0x14f   : > { %v6155_v55 = vcombine.low %v6147_v48, %v6154_v3  ;;  %v4901_v31 = vcombine.low %v307_v36, %v306_v6  ;;  %v4902_v56 = vcombine.low %v315_v10, %v323_v30  ;;  %v5936_v61 = vcombine.low %v1459_v33, %v12545_v38  ;;  %v200_v36 = vld [vmem:[%s11105_s16 + $0x70] sm:$0xff]  ;;  %14292 = vst [vmem:[#allocation10_spill] sm:$0xff] %v12566_v44  ;;  %v12573_v3 = vpop.permute.xlu0 %10357 }
 0x150   : > { %v5943_v1 = vrot.slane %v5935_v59, %v11107_v5  ;;  %v4960_v32 = vrot.slane %v12509_v13, %v11107_v5  ;;  %v405_v25 = vrot.slane %v391_v11, %v11107_v5  ;;  %v4967_v40 = vrot.slane %v12515_v49, %v11107_v5 }
 0x151   : > { %v10646_v22 = vpack.i.bf16 %v6155_v55, %v6138_v26  ;;  %v414_v17 = vrot.slane %v196_v45, %v11107_v5  ;;  %v5934_v6 = vcombine.low %v5926_v14, %v5933_v20  ;;  %v5950_v10 = vrot.slane %v5936_v61, %v11107_v5 }
 0x152   : > { %v4977_v30 = vrot.slane %v12527_v37, %v11107_v5  ;;  %v406_v13 = vcombine.high %v398_v12, %v398_v12  ;;  %v421_v48 = vrot.slane %v407_v34, %v11107_v5  ;;  %v457_v27 = vcombine.high %v199_v28, %v199_v28 }
 0x153   : > { %10647 = vrot.lane.b32.xlu1 %v10646_v22, %s11057_s18  ;;  %v4984_v49 = vrot.slane %v4970_v39, %v11107_v5  ;;  %v4909_v45 = vrot.slane %v4901_v31, %v11107_v5  ;;  %v4916_v11 = vrot.slane %v4902_v56, %v11107_v5  ;;  %v5951_v26 = vcombine.low %v5943_v1, %v5950_v10  ;;  %v202_v56 = vld [vmem:[%s11105_s16 + $0x80] sm:$0xff] }
 0x154   : > { %v4987_v37 = vcombine.low %v405_v25, %v414_v17  ;;  %v471_v42 = vrot.slane %v457_v27, %v11107_v5  ;;  %v473_v33 = vcombine.high %v200_v36, %v200_v36  ;;  %v12577_v14 = vrot.slane %v200_v36, %v11107_v5  ;;  %v9993_v25 = vld [vmem:[%s11105_s16 + $0xc8] sm:$0x3f]  ;;  %v9979_v36 = vld [vmem:[%s11105_s16 + $0x58] sm:$0x3f] }
 0x155   : > { %v12579_v59 = vcombine.low %v4960_v32, %v4967_v40  ;;  %v12583_v39 = vrot.slane %v12566_v44, %v11107_v5  ;;  %v422_v31 = vcombine.high %v414_v17, %v414_v17  ;;  %v10641_v34 = vpack.i.bf16 %v5951_v26, %v5934_v6 }
 0x156   : > { %v423_v55 = vcombine.high %v421_v48, %v421_v48  ;;  %v12586_v20 = vcombine.low %v398_v12, %v406_v13  ;;  %v12589_v61 = vrot.slane %v473_v33, %v11107_v5  ;;  %v488_v1 = vcombine.high %v12577_v14, %v12577_v14 }
 0x157   : > { %14293 = vst [vmem:[#allocation11_spill] sm:$0xff] %v12583_v39  ;;  %v12594_v32 = vcombine.low %v4977_v30, %v4984_v49  ;;  %v12596_v22 = vcombine.low %v4909_v45, %v4916_v11  ;;  %10642 = vrot.lane.b32.xlu0 %v10641_v34, %s11057_s18  ;;  %v5054_v28 = vcombine.low %v471_v42, %v12577_v14 }
 0x158   : > { %v12603_v17 = vrot.slane %v4987_v37, %v11107_v5  ;;  %v506_v6 = vcombine.high %v202_v56, %v202_v56  ;;  %v5055_v10 = vcombine.low %v488_v1, %v12589_v61  ;;  %v12607_v30 = vcombine.low %v422_v31, %v421_v48  ;;  %v203_v37 = vld [vmem:[%s11105_s16 + $0x88] sm:$0x3f] }
 0x159   : > { %v12610_v13 = vrot.slane %v5054_v28, %v11107_v5  ;;  %v2177_v27 = vcombine.high %v9993_v25, %v9993_v25  ;;  %v4994_v49 = vrot.slane %v12586_v20, %v11107_v5  ;;  %v5004_v45 = vcombine.low %v423_v55, %v12583_v39  ;;  %v204_v39 = vld [vmem:[%s11105_s16 + $0x90] sm:$0xff] }
 0x15a   : > { %v12616_v11 = vrot.slane %v5055_v10, %v11107_v5  ;;  %v2184_v26 = vrot.slane %v9993_v25, %v11107_v5  ;;  %v12623_v48 = vcombine.high %v12257_v62, %v12257_v62  ;;  %v6630_v33 = vcombine.low %v12249_v21, %v12261_v19  ;;  %v12632_v25 = vld [vmem:[%s11105_s16 + $0x68] sm:$0x3f] }
 0x15b   : > { %14294 = vst [vmem:[#allocation12_spill] sm:$0xff] %v12610_v13  ;;  %v2191_v42 = vrot.slane %v2177_v27, %v11107_v5  ;;  %v1946_v31 = vcombine.high %v9979_v36, %v9979_v36  ;;  %v513_v34 = vrot.slane %v202_v56, %v11107_v5  ;;  %v520_v55 = vrot.slane %v506_v6, %v11107_v5 }
 0x15c   : > { %14295 = vst [vmem:[#allocation13_spill] sm:$0xff] %v12616_v11  ;;  %v2192_v1 = vcombine.high %v2184_v26, %v2184_v26  ;;  %14296 = vst [vmem:[#allocation14_spill] sm:$0xff] %v12632_v25  ;;  %v6613_v28 = vcombine.low %v12242_v8, %v2184_v26  ;;  %v6631_v10 = vcombine.low %v12257_v62, %v12623_v48 }
 0x15d   : > { %v6638_v27 = vrot.slane %v6630_v33, %v11107_v5  ;;  %v1953_v21 = vrot.slane %v9979_v36, %v11107_v5  ;;  %v523_v19 = vcombine.high %v203_v37, %v203_v37  ;;  %v530_v56 = vrot.slane %v203_v37, %v11107_v5 }
 0x15e   : > { %v6614_v6 = vcombine.low %v2192_v1, %v2191_v42  ;;  %v1960_v40 = vrot.slane %v1946_v31, %v11107_v5  ;;  %v6621_v20 = vrot.slane %v6613_v28, %v11107_v5  ;;  %v6645_v12 = vrot.slane %v6631_v10, %v11107_v5  ;;  %v12652_v42 = vld [vmem:[%s11105_s16 + $0xa0] sm:$0xff] }
 0x15f   : > { %v1961_v23 = vcombine.high %v1953_v21, %v1953_v21  ;;  %v12645_v8 = vrot.slane %v12632_v25, %v11107_v5  ;;  %v521_v62 = vcombine.high %v513_v34, %v513_v34  ;;  %v6426_v37 = vcombine.low %v12283_v18, %v12279_v50 }
 0x160   : > { %v6628_v26 = vrot.slane %v6614_v6, %v11107_v5  ;;  %v6410_v36 = vcombine.low %v1960_v40, %v12272_v15  ;;  %v522_v33 = vcombine.high %v520_v55, %v520_v55  ;;  %v6646_v31 = vcombine.low %v6638_v27, %v6645_v12  ;;  %v207_v12 = vld [vmem:[%s11105_s16 + $0xa8] sm:$0x3f] }
 0x161   : > { %14297 = vst [vmem:[#allocation15_spill] sm:$0xff] %v12645_v8  ;;  %v6409_v1 = vcombine.low %v1953_v21, %v1961_v23  ;;  %v6427_v28 = vcombine.low %v12288_v0, %v12645_v8  ;;  %v5011_v10 = vrot.slane %v12607_v30, %v11107_v5  ;;  %v6434_v15 = vrot.slane %v6426_v37, %v11107_v5  ;;  %v208_v23 = vld [vmem:[%s11105_s16 + $0xb0] sm:$0xff] }
 0x162   : > { %v6629_v13 = vcombine.low %v6621_v20, %v6628_v26  ;;  %v6424_v6 = vrot.slane %v6410_v36, %v11107_v5  ;;  %v5018_v40 = vrot.slane %v5004_v45, %v11107_v5  ;;  %v572_v0 = vcombine.high %v12652_v42, %v12652_v42  ;;  %v12672_v26 = vpop.permute.xlu1 %10362 }
 0x163   : > { %v6417_v50 = vrot.slane %v6409_v1, %v11107_v5  ;;  %v6441_v18 = vrot.slane %v6427_v28, %v11107_v5  ;;  %v537_v27 = vrot.slane %v523_v19, %v11107_v5  ;;  %v538_v30 = vcombine.high %v530_v56, %v530_v56  ;;  %14298 = vst [vmem:[#allocation16_spill] sm:$0xff] %v12672_v26  ;;  %v10119_v26 = vld [vmem:[%s11105_s16 + $0x6a] sm:$0x3f] }
 0x164   : > { %v12670_v20 = vrot.slane %v204_v39, %v11107_v5  ;;  %v10656_v21 = vpack.i.bf16 %v6646_v31, %v6629_v13  ;;  %v5088_v45 = vcombine.low %v513_v34, %v521_v62  ;;  %v5089_v36 = vcombine.low %v520_v55, %v522_v33 }
 0x165   : > { %v6425_v37 = vcombine.low %v6417_v50, %v6424_v6  ;;  %v6442_v1 = vcombine.low %v6434_v15, %v6441_v18  ;;  %v589_v28 = vcombine.high %v207_v12, %v207_v12  ;;  %v596_v8 = vrot.slane %v207_v12, %v11107_v5  ;;  %v10021_v50 = vld [vmem:[%s11105_s16 + $0xc9] sm:$0x3f] }
 0x166   : > { %10657 = vrot.lane.b32.xlu1 %v10656_v21, %s11059_s20  ;;  %v605_v25 = vcombine.high %v208_v23, %v208_v23  ;;  %v12677_v38 = vrot.slane %v208_v23, %v11107_v5  ;;  %v5002_v19 = vcombine.low %v4994_v49, %v12603_v17  ;;  %v5019_v11 = vcombine.low %v5011_v10, %v5018_v40 }
 0x167   : > { %v10651_v13 = vpack.i.bf16 %v6442_v1, %v6425_v37  ;;  %v586_v31 = vrot.slane %v572_v0, %v11107_v5  ;;  %v14299_v34 = vunpack.i.l.bf16 %v12498_v43  ;;  %v14301_v62 = vunpack.i.h.bf16 %v12498_v43  ;;  %v205_v1 = vld [vmem:[%s11105_s16 + $0x98] sm:$0x3f] }
 0x168   : > { %v14303_v6 = vunpack.i.l.bf16 %v12501_v29  ;;  %v14304_v49 = vunpack.i.h.bf16 %v12501_v29  ;;  %v5103_v43 = vrot.slane %v5089_v36, %v11107_v5  ;;  %v12707_v15 = vcombine.low %v530_v56, %v538_v30 }
 0x169   : > { %v12685_v55 = vsel %vm9219_vm0, %v12579_v59, %v14299_v34  ;;  %v12691_v33 = vsel %vm9219_vm0, %v12594_v32, %v14301_v62  ;;  %v5096_v59 = vrot.slane %v5088_v45, %v11107_v5  ;;  %v5106_v32 = vcombine.low %v537_v27, %v12670_v20  ;;  %10652 = vrot.lane.b32.xlu0 %v10651_v13, %s11059_s20 }
 0x16a   : > { %14300 = vst [vmem:[#allocation17_spill] sm:$0xff] %v12685_v55  ;;  %14302 = vst [vmem:[#allocation18_spill] sm:$0xff] %v12691_v33  ;;  %v12697_v17 = vsel %vm9219_vm0, %v12427_v52, %v14303_v6  ;;  %v12703_v10 = vsel %vm9219_vm0, %v12596_v22, %v14304_v49  ;;  %v12712_v52 = vrot.slane %v589_v28, %v11107_v5  ;;  %v14305_v18 = vunpack.i.l.bf16 %v12573_v3 }
 0x16b   : > { %v604_v40 = vcombine.high %v596_v8, %v596_v8  ;;  %v12715_v29 = vrot.slane %v605_v25, %v11107_v5  ;;  %v620_v22 = vcombine.high %v12677_v38, %v12677_v38  ;;  %v14307_v23 = vunpack.i.h.bf16 %v12573_v3  ;;  %v12732_v25 = vpop.permute.xlu1 %10372 }
 0x16c   : > { %v12725_v12 = vsel %vm9219_vm0, %v5002_v19, %v14305_v18  ;;  %v588_v27 = vcombine.high %v586_v31, %v586_v31  ;;  %v10375_v30 = vunpack.i.h.bf16 %v12732_v25  ;;  %v10374_v21 = vunpack.i.l.bf16 %v12732_v25 }
 0x16d   : > { %14306 = vst [vmem:[#allocation19_spill] sm:$0xff] %v12725_v12  ;;  %v12730_v0 = vsel %vm9219_vm0, %v5019_v11, %v14307_v23  ;;  %v539_v45 = vcombine.high %v204_v39, %v204_v39  ;;  %v5113_v36 = vrot.slane %v12707_v15, %v11107_v5  ;;  %v5120_v37 = vrot.slane %v5106_v32, %v11107_v5  ;;  %v10007_v39 = vld [vmem:[%s11105_s16 + $0x59] sm:$0x3f] }
 0x16e   : > { %14308 = vst [vmem:[#allocation20_spill] sm:$0xff] %v12730_v0  ;;  %v2695_v28 = vcombine.high %v10021_v50, %v10021_v50  ;;  %v2702_v3 = vrot.slane %v10021_v50, %v11107_v5  ;;  %v5104_v11 = vcombine.low %v5096_v59, %v5103_v43  ;;  %v12741_v19 = vcombine.low %v596_v8, %v604_v40  ;;  %v10120_v0 = vld [vmem:[%s11105_s16 + $0x72] sm:$0xff] }
 0x16f   : > { %v5173_v13 = vcombine.low %v12712_v52, %v12677_v38  ;;  %v12746_v34 = vcombine.low %v620_v22, %v12715_v29  ;;  %v12749_v62 = vcombine.low %v586_v31, %v588_v27  ;;  %v554_v6 = vcombine.high %v12670_v20, %v12670_v20  ;;  %v12763_v52 = vld [vmem:[%s11105_s16 + $0x69] sm:$0x3f] }
 0x170   : > { %v2709_v49 = vrot.slane %v2695_v28, %v11107_v5  ;;  %v2710_v15 = vcombine.high %v2702_v3, %v2702_v3  ;;  %v553_v32 = vrot.slane %v539_v45, %v11107_v5  ;;  %v556_v59 = vcombine.high %v205_v1, %v205_v1  ;;  %v12775_v45 = vpop.permute.xlu0 %10367 }
 0x171   : > { %v12757_v8 = vcombine.high %v12324_v60, %v12324_v60  ;;  %v7104_v38 = vcombine.low %v12310_v54, %v2702_v3  ;;  %v7121_v31 = vcombine.low %v12319_v2, %v12329_v4  ;;  %v2464_v40 = vcombine.high %v10007_v39, %v10007_v39  ;;  %14309 = vst [vmem:[#allocation21_spill] sm:$0xff] %v12775_v45 }
 0x172   : > { %v7105_v43 = vcombine.low %v2710_v15, %v2709_v49  ;;  %v2471_v20 = vrot.slane %v10007_v39, %v11107_v5  ;;  %v563_v22 = vrot.slane %v205_v1, %v11107_v5  ;;  %v579_v50 = vrot.slane %v12652_v42, %v11107_v5 }
 0x173   : > { %v7112_v18 = vrot.slane %v7104_v38, %v11107_v5  ;;  %v7122_v23 = vcombine.low %v12324_v60, %v12757_v8  ;;  %v7129_v27 = vrot.slane %v7121_v31, %v11107_v5  ;;  %v2478_v2 = vrot.slane %v2464_v40, %v11107_v5 }
 0x174   : > { %v7119_v54 = vrot.slane %v7105_v43, %v11107_v5  ;;  %v2479_v4 = vcombine.high %v2471_v20, %v2471_v20  ;;  %v555_v28 = vcombine.high %v553_v32, %v553_v32  ;;  %v570_v1 = vrot.slane %v556_v59, %v11107_v5 }
 0x175   : > { %v7136_v3 = vrot.slane %v7122_v23, %v11107_v5  ;;  %v12781_v42 = vrot.slane %v12763_v52, %v11107_v5  ;;  %v6901_v49 = vcombine.low %v2478_v2, %v12343_v63  ;;  %v6917_v15 = vcombine.low %v12355_v24, %v12349_v47  ;;  %v10383_v2 = vpop.permute.xlu1 %10382 }
 0x176   : > { %v7120_v39 = vcombine.low %v7112_v18, %v7119_v54  ;;  %v6900_v60 = vcombine.low %v2471_v20, %v2479_v4  ;;  %v571_v38 = vcombine.high %v563_v22, %v563_v22  ;;  %v587_v43 = vcombine.high %v579_v50, %v579_v50 }
 0x177   : > { %v7137_v31 = vcombine.low %v7129_v27, %v7136_v3  ;;  %v6918_v59 = vcombine.low %v12359_v16, %v12781_v42  ;;  %v5122_v40 = vcombine.low %v554_v6, %v553_v32  ;;  %v6915_v56 = vrot.slane %v6901_v49, %v11107_v5  ;;  %v209_v32 = vld [vmem:[%s11105_s16 + $0xb8] sm:$0x3f] }
 0x178   : > { %v6908_v23 = vrot.slane %v6900_v60, %v11107_v5  ;;  %v6925_v18 = vrot.slane %v6917_v15, %v11107_v5  ;;  %v5121_v20 = vcombine.low %v5113_v36, %v5120_v37  ;;  %v5123_v63 = vcombine.low %v555_v28, %v563_v22 }
 0x179   : > { %v10666_v54 = vpack.i.bf16 %v7137_v31, %v7120_v39  ;;  %v6932_v47 = vrot.slane %v6918_v59, %v11107_v5  ;;  %v12793_v24 = vsel %vm9219_vm0, %v5104_v11, %v10374_v21  ;;  %v12797_v27 = vcombine.high %v12589_v61, %v12589_v61  ;;  %v12807_v21 = vpop.permute.xlu0 %10377  ;;  %v210_v11 = vld [vmem:[%s11105_s16 + $0xc0] sm:$0xff] }
 0x17a   : > { %v5181_v16 = vrot.slane %v5173_v13, %v11107_v5  ;;  %v6916_v6 = vcombine.low %v6908_v23, %v6915_v56  ;;  %v5164_v36 = vrot.slane %v12749_v62, %v11107_v5  ;;  %v5171_v37 = vrot.slane %v12741_v19, %v11107_v5 }
 0x17b   : > { %14310 = vst [vmem:[#allocation22_spill] sm:$0xff] %v12797_v27  ;;  %v5188_v22 = vrot.slane %v12746_v34, %v11107_v5  ;;  %10667 = vrot.lane.b32.xlu1 %v10666_v54, %s11058_s19  ;;  %v6933_v61 = vcombine.low %v6925_v18, %v6932_v47  ;;  %v10385_v4 = vunpack.i.h.bf16 %v10383_v2  ;;  %v5130_v56 = vrot.slane %v5122_v40, %v11107_v5 }
 0x17c   : > { %v5139_v13 = vcombine.low %v571_v38, %v570_v1  ;;  %v5140_v28 = vcombine.low %v579_v50, %v587_v43  ;;  %v5137_v62 = vrot.slane %v5123_v63, %v11107_v5  ;;  %v621_v19 = vcombine.high %v12715_v29, %v12715_v29  ;;  %v10049_v38 = vld [vmem:[%s11105_s16 + $0xca] sm:$0x3f] }
 0x17d   : > { %v10661_v3 = vpack.i.bf16 %v6933_v61, %v6916_v6  ;;  %v622_v39 = vcombine.high %v209_v32, %v209_v32  ;;  %v10384_v34 = vunpack.i.l.bf16 %v10383_v2  ;;  %v10379_v60 = vunpack.i.l.bf16 %v12807_v21 }
 0x17e   : > { %v629_v49 = vrot.slane %v209_v32, %v11107_v5  ;;  %v638_v15 = vcombine.high %v210_v11, %v210_v11  ;;  %v5172_v31 = vcombine.low %v5164_v36, %v5171_v37  ;;  %v5189_v59 = vcombine.low %v5181_v16, %v5188_v22 }
 0x17f   : > { %10662 = vrot.lane.b32.xlu0 %v10661_v3, %s11058_s19  ;;  %v636_v1 = vrot.slane %v622_v39, %v11107_v5  ;;  %v645_v50 = vrot.slane %v210_v11, %v11107_v5  ;;  %v5147_v43 = vrot.slane %v5139_v13, %v11107_v5  ;;  %v5154_v29 = vrot.slane %v5140_v28, %v11107_v5  ;;  %v12846_v13 = vpop.permute.xlu1 %10392 }
 0x180   : > { %v637_v40 = vcombine.high %v629_v49, %v629_v49  ;;  %v652_v23 = vrot.slane %v638_v15, %v11107_v5  ;;  %v5138_v18 = vcombine.low %v5130_v56, %v5137_v62  ;;  %v5190_v54 = vcombine.low %v621_v19, %v629_v49  ;;  %14314 = vst [vmem:[#allocation26_spill] sm:$0xff] %v12846_v13 }
 0x181   : > { %v653_v63 = vcombine.high %v645_v50, %v645_v50  ;;  %v12827_v47 = vsel %vm9219_vm0, %v5121_v20, %v10375_v30  ;;  %v3213_v32 = vcombine.high %v10049_v38, %v10049_v38  ;;  %v12830_v2 = vsel %vm9219_vm0, %v5172_v31, %v10384_v34  ;;  %v10035_v20 = vld [vmem:[%s11105_s16 + $0x5a] sm:$0x3f] }
 0x182   : > { %v654_v16 = vcombine.high %v652_v23, %v652_v23  ;;  %v5191_v6 = vcombine.low %v637_v40, %v636_v1  ;;  %14311 = vst [vmem:[#allocation23_spill] sm:$0xff] %v12830_v2  ;;  %v12833_v36 = vsel %vm9219_vm0, %v5189_v59, %v10385_v4  ;;  %v10380_v37 = vunpack.i.h.bf16 %v12807_v21  ;;  %v12848_v4 = vpop.permute.xlu0 %10387 }
 0x183   : > { %14312 = vst [vmem:[#allocation24_spill] sm:$0xff] %v12833_v36  ;;  %v3220_v22 = vrot.slane %v10049_v38, %v11107_v5  ;;  %v5155_v61 = vcombine.low %v5147_v43, %v5154_v29  ;;  %v5207_v11 = vcombine.low %v645_v50, %v653_v63  ;;  %v3227_v25 = vrot.slane %v3213_v32, %v11107_v5 }
 0x184   : > { %v12840_v30 = vcombine.high %v12425_v53, %v12425_v53  ;;  %v12844_v56 = vsel %vm9219_vm0, %v5138_v18, %v10379_v60  ;;  %14315 = vst [vmem:[#allocation27_spill] sm:$0xff] %v12848_v4  ;;  %v5198_v21 = vrot.slane %v5190_v54, %v11107_v5  ;;  %v5205_v3 = vrot.slane %v5191_v6, %v11107_v5  ;;  %v12858_v60 = vld [vmem:[%s11105_s16 + $0x6a] sm:$0x3f] }
 0x185   : > { %14313 = vst [vmem:[#allocation25_spill] sm:$0xff] %v12844_v56  ;;  %v3228_v28 = vcombine.high %v3220_v22, %v3220_v22  ;;  %v7595_v62 = vcombine.low %v12412_v46, %v3220_v22  ;;  %v5208_v19 = vcombine.low %v652_v23, %v654_v16  ;;  %v7612_v39 = vcombine.low %v12421_v58, %v12431_v7  ;;  %v12867_v58 = vld [vmem:[%s11105_s16 + $0xd0] sm:$0xff]  ;;  %v10398_v22 = vpop.permute.xlu1 %10397 }
 0x186   : > { %v7613_v34 = vcombine.low %v12425_v53, %v12840_v30  ;;  %v2982_v31 = vcombine.high %v10035_v20, %v10035_v20  ;;  %v2989_v59 = vrot.slane %v10035_v20, %v11107_v5  ;;  %v10389_v1 = vunpack.i.l.bf16 %v12848_v4  ;;  %14316 = vst [vmem:[#allocation28_spill] sm:$0xff] %v12867_v58 }
 0x187   : > { %v7596_v49 = vcombine.low %v3228_v28, %v3227_v25  ;;  %v7603_v15 = vrot.slane %v7595_v62, %v11107_v5  ;;  %v5215_v46 = vrot.slane %v5207_v11, %v11107_v5  ;;  %v7620_v50 = vrot.slane %v7612_v39, %v11107_v5  ;;  %v10078_v62 = vld [vmem:[%s11105_s16 + $0xe0] sm:$0xff] }
 0x188   : > { %v7627_v38 = vrot.slane %v7613_v34, %v11107_v5  ;;  %v2996_v7 = vrot.slane %v2982_v31, %v11107_v5  ;;  %v2997_v43 = vcombine.high %v2989_v59, %v2989_v59  ;;  %v12873_v29 = vrot.slane %v12858_v60, %v11107_v5  ;;  %v10134_v25 = vld [vmem:[%s11105_s16 + $0xe2] sm:$0xff] }
 0x189   : > { %v7610_v53 = vrot.slane %v7596_v49, %v11107_v5  ;;  %v5206_v40 = vcombine.low %v5198_v21, %v5205_v3  ;;  %v5222_v23 = vrot.slane %v5208_v19, %v11107_v5  ;;  %v7408_v63 = vcombine.low %v12460_v51, %v12456_v41  ;;  %v10077_v41 = vld [vmem:[%s11105_s16 + $0xd8] sm:$0x3f]  ;;  %v10063_v19 = vld [vmem:[%s11105_s16 + $0x68] sm:$0x3f]  ;;  %v12900_v49 = vpop.permute.xlu0 %5755 }
 0x18a   : > { %v7628_v18 = vcombine.low %v7620_v50, %v7627_v38  ;;  %v7391_v16 = vcombine.low %v2989_v59, %v2997_v43  ;;  %v7392_v6 = vcombine.low %v2996_v7, %v12449_v57  ;;  %v7409_v32 = vcombine.low %v12469_v9, %v12873_v29  ;;  %14320 = vst [vmem:[#allocation32_spill] sm:$0xff] %v12900_v49  ;;  %v12907_v38 = vld [vmem:[%s11105_s16 + $0x78] sm:$0x3f] }
 0x18b   : > { %v7611_v54 = vcombine.low %v7603_v15, %v7610_v53  ;;  %v12882_v11 = vsel %vm9219_vm0, %v5155_v61, %v10380_v37  ;;  %v7416_v21 = vrot.slane %v7408_v63, %v11107_v5  ;;  %v12893_v3 = vcombine.low %v5215_v46, %v5222_v23 }
 0x18c   : > { %14317 = vst [vmem:[#allocation29_spill] sm:$0xff] %v12882_v11  ;;  %v7399_v28 = vrot.slane %v7391_v16, %v11107_v5  ;;  %v7406_v57 = vrot.slane %v7392_v6, %v11107_v5  ;;  %v7423_v9 = vrot.slane %v7409_v32, %v11107_v5  ;;  %v12896_v37 = vsel %vm9219_vm0, %v5206_v40, %v10389_v1 }
 0x18d   : > { %v10676_v51 = vpack.i.bf16 %v7628_v18, %v7611_v54  ;;  %14318 = vst [vmem:[#allocation30_spill] sm:$0xff] %v12893_v3  ;;  %14319 = vst [vmem:[#allocation31_spill] sm:$0xff] %v12896_v37  ;;  %v10399_v61 = vunpack.i.l.bf16 %v10398_v22  ;;  %v3732_v15 = vcombine.high %v10077_v41, %v10077_v41  ;;  %v10400_v31 = vunpack.i.h.bf16 %v10398_v22  ;;  %v14321_v22 = vld [vmem:[#allocation7_spill] sm:$0xff] }
 0x18e   : > { %v7407_v39 = vcombine.low %v7399_v28, %v7406_v57  ;;  %v7424_v34 = vcombine.low %v7416_v21, %v7423_v9  ;;  %v3739_v59 = vrot.slane %v10077_v41, %v11107_v5  ;;  %v3748_v50 = vcombine.high %v10078_v62, %v10078_v62  ;;  %v1247_v3 = vld [vmem:[%s11105_s16 + $0xca] sm:$0x3f] }
 0x18f   : > { %10677 = vrot.lane.b32.xlu1 %v10676_v51, %s11061_s22  ;;  %v12904_v46 = vrot.slane %v10078_v62, %v11107_v5  ;;  %v3746_v53 = vrot.slane %v3732_v15, %v11107_v5  ;;  %v3501_v7 = vcombine.high %v10063_v19, %v10063_v19  ;;  %v3508_v43 = vrot.slane %v10063_v19, %v11107_v5 }
 0x190   : > { %v10671_v1 = vpack.i.bf16 %v7424_v34, %v7407_v39  ;;  %v12913_v40 = vsel %vm9245_vm1, %v12496_v35, %v10399_v61  ;;  %v3747_v23 = vcombine.high %v3739_v59, %v3739_v59  ;;  %v12916_v18 = vrot.slane %v3748_v50, %v11107_v5  ;;  %v10408_v35 = vpop.permute.xlu1 %10407  ;;  %v10403_v61 = vpop.permute.xlu0 %10402 }
 0x191   : > { %v12920_v63 = vcombine.high %v12904_v46, %v12904_v46  ;;  %v8086_v54 = vcombine.low %v12623_v48, %v3739_v59  ;;  %v3515_v16 = vrot.slane %v3501_v7, %v11107_v5  ;;  %v3516_v6 = vcombine.high %v3508_v43, %v3508_v43 }
 0x192   : > { %10672 = vrot.lane.b32.xlu0 %v10671_v1, %s11061_s22  ;;  %v12927_v32 = vrot.slane %v12907_v38, %v11107_v5  ;;  %v12931_v21 = vsel %vm9245_vm1, %v14321_v22, %v10400_v31  ;;  %v12935_v41 = vcombine.high %v12916_v18, %v12916_v18  ;;  %v8087_v51 = vcombine.low %v3747_v23, %v3746_v53  ;;  %v10105_v1 = vld [vmem:[%s11105_s16 + $0xd9] sm:$0x3f] }
 0x193   : > { %v8103_v48 = vcombine.low %v12904_v46, %v12920_v63  ;;  %v8094_v28 = vrot.slane %v8086_v54, %v11107_v5  ;;  %v7882_v57 = vcombine.low %v3508_v43, %v3516_v6  ;;  %v7883_v9 = vcombine.low %v3515_v16, %v12577_v14  ;;  %v14322_v43 = vld [vmem:[#allocation6_spill] sm:$0xff]  ;;  %v14324_v22 = vld [vmem:[#allocation13_spill] sm:$0xff] }
 0x194   : > { %v7900_v62 = vcombine.low %v12797_v27, %v12927_v32  ;;  %v8101_v19 = vrot.slane %v8087_v51, %v11107_v5  ;;  %v8104_v39 = vcombine.low %v12916_v18, %v12935_v41  ;;  %v10410_v15 = vunpack.i.h.bf16 %v10408_v35  ;;  %v10106_v16 = vld [vmem:[%s11105_s16 + $0xe1] sm:$0xff]  ;;  %v10413_v20 = vpop.permute.xlu0 %10412 }
 0x195   : > { %v8111_v34 = vrot.slane %v8103_v48, %v11107_v5  ;;  %v7890_v31 = vrot.slane %v7882_v57, %v11107_v5  ;;  %v7897_v59 = vrot.slane %v7883_v9, %v11107_v5  ;;  %v10409_v50 = vunpack.i.l.bf16 %v10408_v35  ;;  %v14325_v48 = vld [vmem:[#allocation5_spill] sm:$0xff]  ;;  %v10091_v35 = vld [vmem:[%s11105_s16 + $0x69] sm:$0x3f] }
 0x196   : > { %v7914_v14 = vrot.slane %v7900_v62, %v11107_v5  ;;  %v8102_v53 = vcombine.low %v8094_v28, %v8101_v19  ;;  %v8118_v7 = vrot.slane %v8104_v39, %v11107_v5  ;;  %v12954_v23 = vsel %vm9245_vm1, %v14322_v43, %v10410_v15 }
 0x197   : > { %14323 = vst [vmem:[#allocation7_spill] sm:$0xff] %v12954_v23  ;;  %v10405_v54 = vunpack.i.h.bf16 %v10403_v61  ;;  %v7898_v6 = vcombine.low %v7890_v31, %v7897_v59  ;;  %v12960_v57 = vsel %vm9245_vm1, %v14325_v48, %v10409_v50  ;;  %v10404_v9 = vunpack.i.l.bf16 %v10403_v61 }
 0x198   : > { %v7915_v51 = vcombine.low %v14324_v22, %v7914_v14  ;;  %14326 = vst [vmem:[#allocation6_spill] sm:$0xff] %v12960_v57  ;;  %v8119_v62 = vcombine.low %v8111_v34, %v8118_v7  ;;  %v4250_v19 = vcombine.high %v10105_v1, %v10105_v1  ;;  %v4257_v31 = vrot.slane %v10105_v1, %v11107_v5  ;;  %v10092_v14 = vld [vmem:[%s11105_s16 + $0x71] sm:$0xff] }
 0x199   : > { %v12965_v28 = vsel %vm9245_vm1, %v12703_v10, %v10405_v54  ;;  %v12969_v15 = vsel %vm9245_vm1, %v12697_v17, %v10404_v9  ;;  %v4266_v59 = vcombine.high %v10106_v16, %v10106_v16  ;;  %v12975_v34 = vrot.slane %v10106_v16, %v11107_v5  ;;  %v12983_v54 = vld [vmem:[%s11105_s16 + $0x79] sm:$0x3f] }
 0x19a   : > { %v10681_v39 = vpack.i.bf16 %v7915_v51, %v7898_v6  ;;  %v10686_v50 = vpack.i.bf16 %v8119_v62, %v8102_v53  ;;  %v4264_v61 = vrot.slane %v4250_v19, %v11107_v5  ;;  %v4019_v7 = vcombine.high %v10091_v35, %v10091_v35  ;;  %v13000_v62 = vpop.permute.xlu1 %10417 }
 0x19b   : > { %v4265_v10 = vcombine.high %v4257_v31, %v4257_v31  ;;  %v12979_v43 = vrot.slane %v4266_v59, %v11107_v5  ;;  %v8577_v17 = vcombine.low %v12757_v8, %v4257_v31  ;;  %v4026_v1 = vrot.slane %v10091_v35, %v11107_v5 }
 0x19c   : > { %10682 = vrot.lane.b32.xlu0 %v10681_v39, %s11060_s21  ;;  %10687 = vrot.lane.b32.xlu1 %v10686_v50, %s11060_s21  ;;  %v12989_v53 = vcombine.high %v12975_v34, %v12975_v34  ;;  %v4033_v16 = vrot.slane %v4019_v7, %v11107_v5  ;;  %v4035_v6 = vcombine.high %v10092_v14, %v10092_v14  ;;  %v14331_v55 = vunpack.i.l.bf16 %v13000_v62 }
 0x19d   : > { %v12993_v51 = vrot.slane %v10092_v14, %v11107_v5  ;;  %v12997_v48 = vcombine.high %v12979_v43, %v12979_v43  ;;  %v8578_v8 = vcombine.low %v4265_v10, %v4264_v61  ;;  %v8585_v9 = vrot.slane %v8577_v17, %v11107_v5 }
 0x19e   : > { %v4034_v35 = vcombine.high %v4026_v1, %v4026_v1  ;;  %v8594_v19 = vcombine.low %v12975_v34, %v12989_v53  ;;  %v13005_v39 = vrot.slane %v4035_v6, %v11107_v5  ;;  %v13013_v59 = vrot.slane %v12983_v54, %v11107_v5 }
 0x19f   : > { %v13009_v31 = vcombine.high %v12993_v51, %v12993_v51  ;;  %v8592_v14 = vrot.slane %v8578_v8, %v11107_v5  ;;  %v8595_v50 = vcombine.low %v12979_v43, %v12997_v48  ;;  %v8374_v7 = vcombine.low %v4033_v16, %v12993_v51 }
 0x1a0   : > { %14327 = vst [vmem:[#allocation5_spill] sm:$0xff] %v13013_v59  ;;  %v8373_v61 = vcombine.low %v4026_v1, %v4034_v35  ;;  %v8602_v10 = vrot.slane %v8594_v19, %v11107_v5  ;;  %v13022_v17 = vcombine.high %v13005_v39, %v13005_v39  ;;  %v10133_v35 = vld [vmem:[%s11105_s16 + $0xda] sm:$0x3f]  ;;  %v4784_v49 = vcombine.high %v10134_v25, %v10134_v25 }
 0x1a1   : > { %v8390_v6 = vcombine.low %v13009_v31, %v13005_v39  ;;  %v8593_v8 = vcombine.low %v8585_v9, %v8592_v14  ;;  %v8609_v22 = vrot.slane %v8595_v50, %v11107_v5  ;;  %v8388_v16 = vrot.slane %v8374_v7, %v11107_v5 }
 0x1a2   : > { %v8381_v1 = vrot.slane %v8373_v61, %v11107_v5  ;;  %v8391_v19 = vcombine.low %v13022_v17, %v13013_v59  ;;  %v10415_v14 = vunpack.i.h.bf16 %v10413_v20  ;;  %v10414_v50 = vunpack.i.l.bf16 %v10413_v20 }
 0x1a3   : > { %v8398_v45 = vrot.slane %v8390_v6, %v11107_v5  ;;  %v8610_v27 = vcombine.low %v8602_v10, %v8609_v22  ;;  %v4768_v61 = vcombine.high %v10133_v35, %v10133_v35  ;;  %v4775_v7 = vrot.slane %v10133_v35, %v11107_v5  ;;  %v13059_v35 = vld [vmem:[%s11105_s16 + $0x7a] sm:$0x3f] }
 0x1a4   : > { %v8389_v9 = vcombine.low %v8381_v1, %v8388_v16  ;;  %v8405_v13 = vrot.slane %v8391_v19, %v11107_v5  ;;  %v9272_v58 = vsel %vm9271_vm2, %v12913_v40, %v10414_v50  ;;  %v9273_v6 = vsel %vm9271_vm2, %v12931_v21, %v10415_v14  ;;  %14328 = vst [vmem:[#allocation33_spill] sm:$0xff] %v13059_v35  ;;  %v13061_v19 = vpop.permute.xlu1 %10427 }
 0x1a5   : > { %v10696_v44 = vpack.i.bf16 %v8610_v27, %v8593_v8  ;;  %v4782_v10 = vrot.slane %v4768_v61, %v11107_v5  ;;  %v4783_v20 = vcombine.high %v4775_v7, %v4775_v7  ;;  %v13046_v1 = vrot.slane %v10134_v25, %v11107_v5 }
 0x1a6   : > { %v8406_v22 = vcombine.low %v8398_v45, %v8405_v13  ;;  %v13050_v27 = vrot.slane %v4784_v49, %v11107_v5  ;;  %v9068_v40 = vcombine.low %v12840_v30, %v4775_v7  ;;  %v4537_v8 = vcombine.high %v10119_v26, %v10119_v26 }
 0x1a7   : > { %10697 = vrot.lane.b32.xlu1 %v10696_v44, %s11063_s24  ;;  %v4544_v16 = vrot.slane %v10119_v26, %v11107_v5  ;;  %v13056_v45 = vcombine.high %v13046_v1, %v13046_v1  ;;  %v9069_v13 = vcombine.low %v4783_v20, %v4782_v10  ;;  %v4553_v25 = vcombine.high %v10120_v0, %v10120_v0 }
 0x1a8   : > { %v10691_v21 = vpack.i.bf16 %v8406_v22, %v8389_v9  ;;  %v13065_v44 = vcombine.high %v13050_v27, %v13050_v27  ;;  %v9076_v30 = vrot.slane %v9068_v40, %v11107_v5  ;;  %v4551_v49 = vrot.slane %v4537_v8, %v11107_v5 }
 0x1a9   : > { %v4552_v26 = vcombine.high %v4544_v16, %v4544_v16  ;;  %v9083_v9 = vrot.slane %v9069_v13, %v11107_v5  ;;  %v9085_v14 = vcombine.low %v13046_v1, %v13056_v45  ;;  %v13074_v50 = vrot.slane %v10120_v0, %v11107_v5  ;;  %v10423_v13 = vpop.permute.xlu0 %10422 }
 0x1aa   : > { %10692 = vrot.lane.b32.xlu0 %v10691_v21, %s11063_s24  ;;  %v13077_v61 = vrot.slane %v4553_v25, %v11107_v5  ;;  %v9086_v7 = vcombine.low %v13050_v27, %v13065_v44  ;;  %v13083_v22 = vrot.slane %v13059_v35, %v11107_v5  ;;  %v10425_v37 = vunpack.i.h.bf16 %v10423_v13 }
 0x1ab   : > { %v8864_v10 = vcombine.low %v4544_v16, %v4552_v26  ;;  %v9084_v40 = vcombine.low %v9076_v30, %v9083_v9  ;;  %v9093_v8 = vrot.slane %v9085_v14, %v11107_v5  ;;  %v13089_v0 = vcombine.high %v13074_v50, %v13074_v50 }
 0x1ac   : > { %14329 = vst [vmem:[#allocation34_spill] sm:$0xff] %v13083_v22  ;;  %v13093_v21 = vcombine.high %v13077_v61, %v13077_v61  ;;  %v9100_v25 = vrot.slane %v9086_v7, %v11107_v5  ;;  %v8865_v16 = vcombine.low %v4551_v49, %v13074_v50  ;;  %v10424_v7 = vunpack.i.l.bf16 %v10423_v13  ;;  %v1248_v49 = vld [vmem:[%s11105_s16 + $0xd2] sm:$0xff]  ;;  %v13119_v13 = vld [vmem:[%s11105_s16 + $0xda] sm:$0x3f] }
 0x1ad   : > { %v8872_v26 = vrot.slane %v8864_v10, %v11107_v5  ;;  %v8881_v9 = vcombine.low %v13089_v0, %v13077_v61  ;;  %v13106_v10 = vpop.permute.xlu1 %10437  ;;  %v9298_v33 = vsel %vm9297_vm3, %v9272_v58, %v14331_v55  ;;  %14333 = vst [vmem:[#allocation36_spill] sm:$0xff] %v13119_v13  ;;  %v1691_v57 = vcombine.high %v1247_v3, %v1247_v3  ;;  %v13130_v23 = vpop.permute.xlu0 %10432 }
 0x1ae   : > { %v8882_v14 = vcombine.low %v13093_v21, %v13083_v22  ;;  %v9101_v20 = vcombine.low %v9093_v8, %v9100_v25  ;;  %v8879_v12 = vrot.slane %v8865_v16, %v11107_v5  ;;  %v14332_v8 = vunpack.i.h.bf16 %v13000_v62  ;;  %v1234_v62 = vld [vmem:[%s11105_s16 + $0x62] sm:$0xff] }
 0x1af   : > { %v13109_v30 = vrot.slane %v8881_v9, %v11107_v5  ;;  %v13122_v36 = vsel %vm9323_vm4, %v9298_v33, %v10424_v7  ;;  %v1698_v55 = vrot.slane %v1247_v3, %v11107_v5  ;;  %v1707_v58 = vcombine.high %v1248_v49, %v1248_v49 }
 0x1b0   : > { %v8896_v4 = vrot.slane %v8882_v14, %v11107_v5  ;;  %v9299_v25 = vsel %vm9297_vm3, %v9273_v6, %v14332_v8  ;;  %v10706_v16 = vpack.i.bf16 %v9101_v20, %v9084_v40  ;;  %v8880_v2 = vcombine.low %v8872_v26, %v8879_v12  ;;  %v13139_v12 = vld [vmem:[%s11105_s16 + $0x6a] sm:$0x3f]  ;;  %v14335_v20 = vld [vmem:[#allocation9_spill] sm:$0xff] }
 0x1b1   : > { %14330 = vst [vmem:[#allocation35_spill] sm:$0xff] %v13109_v30  ;;  %v13125_v9 = vsel %vm9323_vm4, %v9299_v25, %v10425_v37  ;;  %v1714_v6 = vrot.slane %v1248_v49, %v11107_v5  ;;  %v13136_v33 = vrot.slane %v13119_v13, %v11107_v5  ;;  %v14334_v37 = vld [vmem:[#allocation8_spill] sm:$0xff]  ;;  %v1475_v3 = vcombine.high %v14335_v20, %v14335_v20  ;;  %v13149_v11 = vpop.permute.xlu1 %10447  ;;  %v13158_v59 = vpop.permute.xlu0 %10442 }
 0x1b2   : > { %v8897_v14 = vcombine.low %v13109_v30, %v8896_v4  ;;  %10707 = vrot.lane.b32.xlu1 %v10706_v16, %s11062_s23  ;;  %v1460_v4 = vcombine.high %v14334_v37, %v14334_v37  ;;  %v1705_v26 = vrot.slane %v1691_v57, %v11107_v5  ;;  %v1706_v7 = vcombine.high %v1698_v55, %v1698_v55 }
 0x1b3   : > { %v1721_v8 = vrot.slane %v1707_v58, %v11107_v5  ;;  %v1722_v25 = vcombine.high %v1714_v6, %v1714_v6  ;;  %v1476_v16 = vcombine.high %v1234_v62, %v1234_v62  ;;  %v1483_v30 = vrot.slane %v1234_v62, %v11107_v5 }
 0x1b4   : > { %v10701_v40 = vpack.i.bf16 %v8897_v14, %v8880_v2  ;;  %v1474_v49 = vrot.slane %v1460_v4, %v11107_v5  ;;  %v6156_v56 = vcombine.low %v1698_v55, %v1706_v7  ;;  %v6157_v13 = vcombine.low %v1705_v26, %v1714_v6 }
 0x1b5   : > { %v1723_v37 = vcombine.high %v1721_v8, %v1721_v8  ;;  %v1500_v2 = vrot.slane %v13139_v12, %v11107_v5  ;;  %v6173_v57 = vcombine.low %v1722_v25, %v1721_v8  ;;  %v1490_v14 = vrot.slane %v1476_v16, %v11107_v5  ;;  %v13166_v16 = vpop.permute.xlu1 %10457 }
 0x1b6   : > { %10702 = vrot.lane.b32.xlu0 %v10701_v40, %s11062_s23  ;;  %v1491_v58 = vcombine.high %v1483_v30, %v1483_v30  ;;  %v5952_v20 = vcombine.low %v1475_v3, %v1474_v49  ;;  %v6164_v4 = vrot.slane %v6156_v56, %v11107_v5  ;;  %v6171_v22 = vrot.slane %v6157_v13, %v11107_v5 }
 0x1b7   : > { %v6174_v62 = vcombine.low %v1723_v37, %v13136_v33  ;;  %v1508_v35 = vcombine.high %v1500_v2, %v1500_v2  ;;  %v6181_v55 = vrot.slane %v6173_v57, %v11107_v5  ;;  %v1492_v6 = vcombine.high %v1490_v14, %v1490_v14 }
 0x1b8   : > { %v5953_v40 = vcombine.low %v1483_v30, %v1491_v58  ;;  %v5960_v26 = vrot.slane %v5952_v20, %v11107_v5  ;;  %v6172_v7 = vcombine.low %v6164_v4, %v6171_v22  ;;  %v10440_v56 = vunpack.i.h.bf16 %v13106_v10  ;;  %v9995_v22 = vld [vmem:[%s11105_s16 + $0xd8] sm:$0x3f]  ;;  %v13173_v58 = vld [vmem:[%s11105_s16 + $0xe8] sm:$0x3f] }
 0x1b9   : > { %v6188_v8 = vrot.slane %v6174_v62, %v11107_v5  ;;  %v5970_v3 = vcombine.low %v1500_v2, %v1508_v35  ;;  %v5969_v25 = vcombine.low %v1490_v14, %v1492_v6  ;;  %v10439_v49 = vunpack.i.l.bf16 %v13106_v10  ;;  %v13184_v6 = vpop.permute.xlu0 %10452 }
 0x1ba   : > { %v5967_v13 = vrot.slane %v5953_v40, %v11107_v5  ;;  %v10435_v2 = vunpack.i.h.bf16 %v13130_v23  ;;  %v10434_v10 = vunpack.i.l.bf16 %v13130_v23  ;;  %v14336_v20 = vunpack.i.l.bf16 %v13061_v19 }
 0x1bb   : > { %v6189_v37 = vcombine.low %v6181_v55, %v6188_v8  ;;  %v5984_v30 = vrot.slane %v5970_v3, %v11107_v5  ;;  %v5977_v35 = vrot.slane %v5969_v25, %v11107_v5  ;;  %v14337_v62 = vunpack.i.h.bf16 %v13061_v19  ;;  %v9982_v3 = vld [vmem:[%s11105_s16 + $0x70] sm:$0xff] }
 0x1bc   : > { %v5968_v57 = vcombine.low %v5960_v26, %v5967_v13  ;;  %v9350_v4 = vsel %vm9349_vm5, %v13122_v36, %v14336_v20  ;;  %v2210_v8 = vcombine.high %v9995_v22, %v9995_v22  ;;  %v13193_v19 = vrot.slane %v13173_v58, %v11107_v5 }
 0x1bd   : > { %v10716_v14 = vpack.i.bf16 %v6189_v37, %v6172_v7  ;;  %v9351_v55 = vsel %vm9349_vm5, %v13125_v9, %v14337_v62  ;;  %v5985_v40 = vcombine.low %v5977_v35, %v5984_v30  ;;  %v2217_v7 = vrot.slane %v9995_v22, %v11107_v5  ;;  %v13201_v22 = vld [vmem:[%s11105_s16 + $0x78] sm:$0x3f]  ;;  %v13203_v35 = vpop.permute.xlu1 %10467 }
 0x1be   : > { %v9377_v26 = vsel %vm9375_vm6, %v9351_v55, %v10435_v2  ;;  %v9376_v23 = vsel %vm9375_vm6, %v9350_v4, %v10434_v10  ;;  %v6664_v9 = vcombine.low %v12920_v63, %v12916_v18  ;;  %v2224_v30 = vrot.slane %v2210_v8, %v11107_v5  ;;  %v14338_v63 = vld [vmem:[#allocation14_spill] sm:$0xff] }
 0x1bf   : > { %10717 = vrot.lane.b32.xlu1 %v10716_v14, %s11057_s18  ;;  %v9403_v36 = vsel %vm9401_vm7, %v9377_v26, %v10440_v56  ;;  %v10711_v13 = vpack.i.bf16 %v5985_v40, %v5968_v57  ;;  %v9402_v25 = vsel %vm9401_vm7, %v9376_v23, %v10439_v49  ;;  %v2225_v56 = vcombine.high %v2217_v7, %v2217_v7  ;;  %v14339_v57 = vld [vmem:[#allocation15_spill] sm:$0xff]  ;;  %v13220_v26 = vpop.permute.xlu0 %10462 }
 0x1c0   : > { %v10196_v37 = vpack.c.bf16 %v9403_v36, %v9403_v36  ;;  %v10195_v2 = vpack.c.bf16 %v9402_v25, %v9402_v25  ;;  %v6665_v14 = vcombine.low %v12935_v41, %v13193_v19  ;;  %v6672_v10 = vrot.slane %v6664_v9, %v11107_v5 }
 0x1c1   : > { %10712 = vrot.lane.b32.xlu0 %v10711_v13, %s11057_s18  ;;  %v6648_v18 = vcombine.low %v2224_v30, %v12904_v46  ;;  %v1979_v49 = vcombine.high %v14338_v63, %v14338_v63  ;;  %v1994_v20 = vcombine.high %v14339_v57, %v14339_v57  ;;  %v1995_v4 = vcombine.high %v9982_v3, %v9982_v3 }
 0x1c2   : > { %9530 = vst.msk [vmem:[#allocation2 + $0x4] sm:$0xf] %vm9528_vm8, %v10196_v37  ;;  %9529 = vst.msk [vmem:[#allocation2] sm:$0xf] %vm9528_vm8, %v10195_v2  ;;  %v6647_v62 = vcombine.low %v2217_v7, %v2225_v56  ;;  %v6679_v41 = vrot.slane %v6665_v14, %v11107_v5  ;;  %v2002_v55 = vrot.slane %v9982_v3, %v11107_v5  ;;  %v10450_v36 = vunpack.i.h.bf16 %v13149_v11  ;;  %v13232_v56 = vpop.permute.xlu1 %10477 }
 0x1c3   : > { %v2019_v40 = vrot.slane %v13201_v22, %v11107_v5  ;;  %v6662_v46 = vrot.slane %v6648_v18, %v11107_v5  ;;  %v1993_v8 = vrot.slane %v1979_v49, %v11107_v5  ;;  %v2009_v23 = vrot.slane %v1995_v4, %v11107_v5 }
 0x1c4   : > { %v6655_v7 = vrot.slane %v6647_v62, %v11107_v5  ;;  %v6680_v9 = vcombine.low %v6672_v10, %v6679_v41  ;;  %v2010_v13 = vcombine.high %v2002_v55, %v2002_v55  ;;  %v10449_v30 = vunpack.i.l.bf16 %v13149_v11  ;;  %v10023_v10 = vld [vmem:[%s11105_s16 + $0xd9] sm:$0x3f]  ;;  %v13244_v62 = vld [vmem:[%s11105_s16 + $0xe9] sm:$0x3f] }
 0x1c5   : > { %v2027_v25 = vcombine.high %v2019_v40, %v2019_v40  ;;  %v2011_v3 = vcombine.high %v2009_v23, %v2009_v23  ;;  %v6443_v37 = vcombine.low %v1994_v20, %v1993_v8  ;;  %v13230_v2 = vsel %vm9271_vm2, %v12965_v28, %v10450_v36  ;;  %v10983_v28 = vld [vmem:[%s14243_s1] sm:$0xff]   ;;  %v13252_v8 = vpop.permute.xlu0 %10472  ;;  %v13260_v36 = vld [vmem:[%s11105_s16 + $0x79] sm:$0x3f] }
 0x1c6   : > { %v6663_v14 = vcombine.low %v6655_v7, %v6662_v46  ;;  %v6444_v18 = vcombine.low %v2002_v55, %v2010_v13  ;;  %v10445_v49 = vunpack.i.h.bf16 %v13158_v59  ;;  %v9274_v20 = vsel %vm9271_vm2, %v12969_v15, %v10449_v30 }
 0x1c7   : > { %v6461_v63 = vcombine.low %v2019_v40, %v2027_v25  ;;  %v6451_v57 = vrot.slane %v6443_v37, %v11107_v5  ;;  %v6460_v4 = vcombine.low %v2009_v23, %v2011_v3  ;;  %v10444_v11 = vunpack.i.l.bf16 %v13158_v59 }
 0x1c8   : > { %v10726_v41 = vpack.i.bf16 %v6680_v9, %v6663_v14  ;;  %v6458_v55 = vrot.slane %v6444_v18, %v11107_v5  ;;  %v13250_v46 = vsel %vm9245_vm1, %v12827_v47, %v10445_v49  ;;  %v2728_v23 = vcombine.high %v10023_v10, %v10023_v10  ;;  %v10985_v14 = vld [vmem:[%s14243_s1 + $0x8] sm:$0xff]   ;;  %v13278_v18 = vpop.permute.xlu1 %10487 }
 0x1c9   : > { %v6475_v40 = vrot.slane %v6461_v63, %v11107_v5  ;;  %v6468_v15 = vrot.slane %v6460_v4, %v11107_v5  ;;  %v13257_v59 = vsel %vm9245_vm1, %v12793_v24, %v10444_v11  ;;  %v14269_v9 = vmov 0.0  }
 0x1ca   : > { %10727 = vrot.lane.b32.xlu1 %v10726_v41, %s11059_s20  ;;  %v6459_v7 = vcombine.low %v6451_v57, %v6458_v55  ;;  %10236 = vmatprep.subr.bf16.mxu0 %v14269_v9  ;;  %v2735_v47 = vrot.slane %v10023_v10, %v11107_v5  ;;  %v13267_v13 = vrot.slane %v13244_v62, %v11107_v5  ;;  %v10460_v25 = vunpack.i.h.bf16 %v13166_v16  ;;  %v13294_v55 = vpop.permute.xlu0 %10482 }
 0x1cb   : > { %v6476_v3 = vcombine.low %v6468_v15, %v6475_v40  ;;  %10237 = vmatpush3.bf16.msra.mxu0 %v10983_v28  ;;  %v2742_v24 = vrot.slane %v2728_v23, %v11107_v5  ;;  %v7155_v37 = vcombine.low %v12989_v53, %v12979_v43  ;;  %v2497_v30 = vcombine.high %v12763_v52, %v12763_v52 }
 0x1cc   : > { %v2743_v63 = vcombine.high %v2735_v47, %v2735_v47  ;;  %v7156_v49 = vcombine.low %v12997_v48, %v13267_v13  ;;  %v2512_v10 = vcombine.high %v12781_v42, %v12781_v42  ;;  %v2537_v57 = vrot.slane %v13260_v36, %v11107_v5  ;;  %10238 = vmatprep.subr.bf16.mxu0 %v14269_v9 }
 0x1cd   : > { %v10721_v43 = vpack.i.bf16 %v6476_v3, %v6459_v7  ;;  %v7139_v52 = vcombine.low %v2742_v24, %v12975_v34  ;;  %v7163_v53 = vrot.slane %v7155_v37, %v11107_v5  ;;  %v2511_v4 = vrot.slane %v2497_v30, %v11107_v5  ;;  %10294 = vmatprep.subr.bf16.mxu1 %v14269_v9  ;;  %v13305_v24 = vld [vmem:[%s11105_s16 + $0xea] sm:$0x3f] }
 0x1ce   : > { %v7138_v11 = vcombine.low %v2735_v47, %v2743_v63  ;;  %v7170_v48 = vrot.slane %v7156_v49, %v11107_v5  ;;  %v2545_v42 = vcombine.high %v2537_v57, %v2537_v57  ;;  %v6935_v41 = vcombine.low %v12993_v51, %v13009_v31  ;;  %10297 = vmatpush3.bf16.msra.mxu1 %v10983_v28  ;;  %v10051_v31 = vld [vmem:[%s11105_s16 + $0xda] sm:$0x3f] }
 0x1cf   : > { %10722 = vrot.lane.b32.xlu0 %v10721_v43, %s11059_s20  ;;  %v7153_v34 = vrot.slane %v7139_v52, %v11107_v5  ;;  %v6934_v40 = vcombine.low %v2512_v10, %v2511_v4  ;;  %v6951_v15 = vcombine.low %v13005_v39, %v13022_v17  ;;  %v10459_v23 = vunpack.i.l.bf16 %v13166_v16  ;;  %10239 = vmatpush3.bf16.msra.mxu0 %v10985_v14  ;;  %v13313_v16 = vpop.permute.xlu1 %10497 }
 0x1d0   : > { %v7146_v7 = vrot.slane %v7138_v11, %v11107_v5  ;;  %v7171_v47 = vcombine.low %v7163_v53, %v7170_v48  ;;  %v6949_v3 = vrot.slane %v6935_v41, %v11107_v5  ;;  %v6952_v51 = vcombine.low %v2537_v57, %v2545_v42  ;;  %10240 = vmatprep.subr.bf16.mxu0 %v14269_v9 }
 0x1d1   : > { %v6942_v28 = vrot.slane %v6934_v40, %v11107_v5  ;;  %v6959_v37 = vrot.slane %v6951_v15, %v11107_v5  ;;  %v9300_v39 = vsel %vm9297_vm3, %v9274_v20, %v10459_v23  ;;  %v9301_v17 = vsel %vm9297_vm3, %v13230_v2, %v10460_v25  ;;  %10295 = vmatprep.subr.bf16.mxu1 %v14269_v9  ;;  %v13325_v2 = vld [vmem:[%s11105_s16 + $0x7a] sm:$0x3f] }
 0x1d2   : > { %v7154_v30 = vcombine.low %v7146_v7, %v7153_v34  ;;  %v6966_v63 = vrot.slane %v6952_v51, %v11107_v5  ;;  %v10455_v49 = vunpack.i.h.bf16 %v13184_v6  ;;  %v10454_v10 = vunpack.i.l.bf16 %v13184_v6  ;;  %10298 = vmatpush3.bf16.msra.mxu1 %v10985_v14  ;;  %v13332_v14 = vpop.permute.xlu0 %10492  ;;  %10242 = vmatprep.mubr.msk.bf16.mxu0 %vm11065_vm10, %v14269_v9 }
 0x1d3   : > { %v6950_v57 = vcombine.low %v6942_v28, %v6949_v3  ;;  %v3246_v43 = vcombine.high %v10051_v31, %v10051_v31  ;;  %v3253_v52 = vrot.slane %v10051_v31, %v11107_v5  ;;  %v13322_v20 = vrot.slane %v13305_v24, %v11107_v5  ;;  %10296 = vmatprep.subr.bf16.mxu1 %v14269_v9  ;;  %v10987_v28 = vld [vmem:[%s14243_s1 + $0x10] ss:$0 sps:$4 sm:$0x33]  }
 0x1d4   : > { %v10736_v25 = vpack.i.bf16 %v7171_v47, %v7154_v30  ;;  %v6967_v53 = vcombine.low %v6959_v37, %v6966_v63  ;;  %v9286_v4 = vsel %vm9271_vm2, %v13257_v59, %v10454_v10  ;;  %v9287_v6 = vsel %vm9271_vm2, %v13250_v46, %v10455_v49  ;;  %10270 = vmatprep.mubr.msk.bf16.mxu1 %vm11065_vm10, %v14269_v9 }
 0x1d5   : > { %v3260_v11 = vrot.slane %v3246_v43, %v11107_v5  ;;  %v3261_v48 = vcombine.high %v3253_v52, %v3253_v52  ;;  %v7646_v42 = vcombine.low %v13056_v45, %v13050_v27  ;;  %v7647_v41 = vcombine.low %v13065_v44, %v13322_v20  ;;  %v13349_v44 = vpop.permute.xlu1 %10507 }
 0x1d6   : > { %10737 = vrot.lane.b32.xlu1 %v10736_v25, %s11058_s19  ;;  %v10731_v34 = vpack.i.bf16 %v6967_v53, %v6950_v57  ;;  %v3015_v59 = vcombine.high %v12858_v60, %v12858_v60  ;;  %v3030_v46 = vcombine.high %v12873_v29, %v12873_v29  ;;  %v3055_v40 = vrot.slane %v13325_v2, %v11107_v5 }
 0x1d7   : > { %v7629_v15 = vcombine.low %v3253_v52, %v3261_v48  ;;  %v7630_v23 = vcombine.low %v3260_v11, %v13046_v1  ;;  %v7654_v27 = vrot.slane %v7646_v42, %v11107_v5  ;;  %v7661_v45 = vrot.slane %v7647_v41, %v11107_v5  ;;  %v10079_v52 = vld [vmem:[%s11105_s16 + $0xe8] sm:$0x3f]  ;;  %v10080_v48 = vld [vmem:[%s11105_s16 + $0xf0] sm:$0xff]  ;;  %v13378_v42 = vld [vmem:[%s11105_s16 + $0xf8] sm:$0x3f] }
 0x1d8   : > { %10732 = vrot.lane.b32.xlu0 %v10731_v34, %s11058_s19  ;;  %v3029_v7 = vrot.slane %v3015_v59, %v11107_v5  ;;  %v3063_v60 = vcombine.high %v3055_v40, %v3055_v40  ;;  %v7426_v29 = vcombine.low %v13074_v50, %v13089_v0  ;;  %v7442_v47 = vcombine.low %v13077_v61, %v13093_v21  ;;  %v13365_v61 = vpop.permute.xlu0 %10502 }
 0x1d9   : > { %v7637_v1 = vrot.slane %v7629_v15, %v11107_v5  ;;  %v7644_v3 = vrot.slane %v7630_v23, %v11107_v5  ;;  %v7662_v51 = vcombine.low %v7654_v27, %v7661_v45  ;;  %v10470_v31 = vunpack.i.h.bf16 %v13203_v35  ;;  %v13386_v59 = vpop.permute.xlu1 %10517  ;;  %v10066_v23 = vld [vmem:[%s11105_s16 + $0x80] sm:$0xff] }
 0x1da   : > { %v7425_v37 = vcombine.low %v3030_v46, %v3029_v7  ;;  %v7440_v0 = vrot.slane %v7426_v29, %v11107_v5  ;;  %v7443_v30 = vcombine.low %v3055_v40, %v3063_v60  ;;  %v7450_v63 = vrot.slane %v7442_v47, %v11107_v5 }
 0x1db   : > { %v7645_v49 = vcombine.low %v7637_v1, %v7644_v3  ;;  %v10469_v10 = vunpack.i.l.bf16 %v13203_v35  ;;  %v13369_v57 = vsel %vm9323_vm4, %v9301_v17, %v10470_v31  ;;  %v10465_v43 = vunpack.i.h.bf16 %v13220_v26  ;;  %v13408_v31 = vld [vmem:[%s11105_s16 + $0x88] sm:$0x3f] }
 0x1dc   : > { %v7433_v25 = vrot.slane %v7425_v37, %v11107_v5  ;;  %v7457_v53 = vrot.slane %v7443_v30, %v11107_v5  ;;  %v10464_v11 = vunpack.i.l.bf16 %v13220_v26  ;;  %v9705_v34 = vsel %vm9703_vm9, %v10987_v28, 0  ;;  %v13404_v47 = vpop.permute.xlu0 %10512 }
 0x1dd   : > { %v10746_v41 = vpack.i.bf16 %v7662_v51, %v7645_v49  ;;  %v13381_v35 = vsel %vm9323_vm4, %v9300_v39, %v10469_v10  ;;  %v13384_v17 = vsel %vm9297_vm3, %v9287_v6, %v10465_v43  ;;  %10241 = vmatpush3.bf16.msra.mxu0 %v9705_v34  ;;  %v3765_v26 = vcombine.high %v10079_v52, %v10079_v52  ;;  %v13420_v43 = vpop.permute.xlu1 %10527 }
 0x1de   : > { %v7441_v46 = vcombine.low %v7433_v25, %v7440_v0  ;;  %v7458_v40 = vcombine.low %v7450_v63, %v7457_v53  ;;  %v13389_v15 = vsel %vm9297_vm3, %v9286_v4, %v10464_v11  ;;  %v3772_v39 = vrot.slane %v10079_v52, %v11107_v5  ;;  %10299 = vmatpush3.bf16.msra.mxu1 %v9705_v34 }
 0x1df   : > { %10747 = vrot.lane.b32.xlu1 %v10746_v41, %s11061_s22  ;;  %v3781_v27 = vcombine.high %v10080_v48, %v10080_v48  ;;  %v3788_v6 = vrot.slane %v10080_v48, %v11107_v5  ;;  %v13397_v45 = vrot.slane %v13378_v42, %v11107_v5  ;;  %v3779_v60 = vrot.slane %v3765_v26, %v11107_v5 }
 0x1e0   : > { %v10741_v7 = vpack.i.bf16 %v7458_v40, %v7441_v46  ;;  %v3534_v4 = vcombine.high %v12907_v38, %v12907_v38  ;;  %v3549_v29 = vcombine.high %v12927_v32, %v12927_v32  ;;  %v3780_v1 = vcombine.high %v3772_v39, %v3772_v39 }
 0x1e1   : > { %v3795_v3 = vrot.slane %v3781_v27, %v11107_v5  ;;  %v3796_v51 = vcombine.high %v3788_v6, %v3788_v6  ;;  %v3550_v28 = vcombine.high %v10066_v23, %v10066_v23  ;;  %v8121_v37 = vcombine.low %v3779_v60, %v3788_v6 }
 0x1e2   : > { %10742 = vrot.lane.b32.xlu0 %v10741_v7, %s11061_s22  ;;  %v3548_v0 = vrot.slane %v3534_v4, %v11107_v5  ;;  %v13413_v38 = vrot.slane %v10066_v23, %v11107_v5  ;;  %v8120_v63 = vcombine.low %v3772_v39, %v3780_v1  ;;  %v3574_v53 = vrot.slane %v13408_v31, %v11107_v5  ;;  %v13439_v39 = vpop.permute.xlu0 %10522 }
 0x1e3   : > { %v3797_v30 = vcombine.high %v3795_v3, %v3795_v3  ;;  %v8137_v49 = vcombine.low %v3796_v51, %v3795_v3  ;;  %v13418_v10 = vrot.slane %v3550_v28, %v11107_v5  ;;  %v8135_v52 = vrot.slane %v8121_v37, %v11107_v5  ;;  %v10992_v51 = vld [vmem:[#allocation2] sm:$0xff]   ;;  %v10107_v28 = vld [vmem:[%s11105_s16 + $0xe9] sm:$0x3f] }
 0x1e4   : > { %v13425_v25 = vcombine.high %v13413_v38, %v13413_v38  ;;  %v7916_v11 = vcombine.low %v3549_v29, %v3548_v0  ;;  %v8128_v48 = vrot.slane %v8120_v63, %v11107_v5  ;;  %v3582_v40 = vcombine.high %v3574_v53, %v3574_v53  ;;  %10243 = vmatmul.mubr.msk.bf16.vlgmr.msra.gmra.mrb[0].mxu0 %vm9663_vm11, %v10992_v51 }
 0x1e5   : > { %v8138_v41 = vcombine.low %v3797_v30, %v13397_v45  ;;  %v8145_v34 = vrot.slane %v8137_v49, %v11107_v5  ;;  %v13434_v46 = vcombine.high %v13418_v10, %v13418_v10  ;;  %v10480_v60 = vunpack.i.h.bf16 %v13232_v56  ;;  %v10108_v49 = vld [vmem:[%s11105_s16 + $0xf1] sm:$0xff]  ;;  %10246 = vmatprep.mubr.msk.bf16.mxu0 %vm11065_vm10, %v14269_v9 }
 0x1e6   : > { %v7917_v26 = vcombine.low %v13413_v38, %v13425_v25  ;;  %v7924_v23 = vrot.slane %v7916_v11, %v11107_v5  ;;  %v8136_v27 = vcombine.low %v8128_v48, %v8135_v52  ;;  %v7934_v29 = vcombine.low %v3574_v53, %v3582_v40  ;;  %v13460_v52 = vpop.permute.xlu1 %10537 }
 0x1e7   : > { %v8152_v6 = vrot.slane %v8138_v41, %v11107_v5  ;;  %v7933_v7 = vcombine.low %v13418_v10, %v13434_v46  ;;  %v10479_v1 = vunpack.i.l.bf16 %v13232_v56  ;;  %v10475_v3 = vunpack.i.h.bf16 %v13252_v8  ;;  %v13470_v41 = vld [vmem:[%s11105_s16 + $0xf9] sm:$0x3f] }
 0x1e8   : > { %v7931_v4 = vrot.slane %v7917_v26, %v11107_v5  ;;  %v13456_v30 = vsel %vm9349_vm5, %v13369_v57, %v10480_v60  ;;  %v10474_v63 = vunpack.i.l.bf16 %v13252_v8  ;;  %v7948_v56 = vrot.slane %v7934_v29, %v11107_v5  ;;  %14340 = vst [vmem:[#allocation8_spill] sm:$0xff] %v13470_v41  ;;  %v14342_v60 = vld [vmem:[#allocation5_spill] sm:$0xff] }
 0x1e9   : > { %v8153_v37 = vcombine.low %v8145_v34, %v8152_v6  ;;  %v7941_v0 = vrot.slane %v7933_v7, %v11107_v5  ;;  %v9352_v11 = vsel %vm9349_vm5, %v13381_v35, %v10479_v1  ;;  %v13467_v48 = vsel %vm9323_vm4, %v13384_v17, %v10475_v3  ;;  %v10094_v17 = vld [vmem:[%s11105_s16 + $0x81] sm:$0xff]  ;;  %v13480_v6 = vpop.permute.xlu0 %10532 }
 0x1ea   : > { %v7932_v53 = vcombine.low %v7924_v23, %v7931_v4  ;;  %v13474_v8 = vsel %vm9323_vm4, %v13389_v15, %v10474_v63  ;;  %v4283_v34 = vcombine.high %v10107_v28, %v10107_v28  ;;  %v4290_v26 = vrot.slane %v10107_v28, %v11107_v5  ;;  %v13494_v28 = vld [vmem:[%s11105_s16 + $0x89] sm:$0x3f] }
 0x1eb   : > { %v10756_v57 = vpack.i.bf16 %v8153_v37, %v8136_v27  ;;  %v7949_v40 = vcombine.low %v7941_v0, %v7948_v56  ;;  %v4299_v35 = vcombine.high %v10108_v49, %v10108_v49  ;;  %v4306_v23 = vrot.slane %v10108_v49, %v11107_v5  ;;  %14343 = vst [vmem:[#allocation14_spill] sm:$0xff] %v13494_v28 }
 0x1ec   : > { %v4297_v27 = vrot.slane %v4283_v34, %v11107_v5  ;;  %v13486_v15 = vrot.slane %v13470_v41, %v11107_v5  ;;  %v4052_v7 = vcombine.high %v12983_v54, %v12983_v54  ;;  %v4067_v4 = vcombine.high %v14342_v60, %v14342_v60  ;;  %v13502_v54 = vpop.permute.xlu1 %10547 }
 0x1ed   : > { %10757 = vrot.lane.b32.xlu1 %v10756_v57, %s11060_s21  ;;  %v10751_v29 = vpack.i.bf16 %v7949_v40, %v7932_v53  ;;  %v4298_v1 = vcombine.high %v4290_v26, %v4290_v26  ;;  %v4313_v3 = vrot.slane %v4299_v35, %v11107_v5  ;;  %v4314_v51 = vcombine.high %v4306_v23, %v4306_v23 }
 0x1ee   : > { %14341 = vst [vmem:[#allocation9_spill] sm:$0xff] %v13486_v15  ;;  %v8612_v37 = vcombine.low %v4297_v27, %v4306_v23  ;;  %v4066_v0 = vrot.slane %v4052_v7, %v11107_v5  ;;  %v4068_v63 = vcombine.high %v10094_v17, %v10094_v17  ;;  %v13500_v49 = vrot.slane %v10094_v17, %v11107_v5 }
 0x1ef   : > { %10752 = vrot.lane.b32.xlu0 %v10751_v29, %s11060_s21  ;;  %v4315_v53 = vcombine.high %v4313_v3, %v4313_v3  ;;  %v8611_v56 = vcombine.low %v4290_v26, %v4298_v1  ;;  %v8628_v57 = vcombine.low %v4314_v51, %v4313_v3  ;;  %v4092_v17 = vrot.slane %v13494_v28, %v11107_v5  ;;  %v13520_v29 = vpop.permute.xlu0 %10542 }
 0x1f0   : > { %v8626_v40 = vrot.slane %v8612_v37, %v11107_v5  ;;  %v13509_v35 = vrot.slane %v4068_v63, %v11107_v5  ;;  %v13513_v23 = vcombine.high %v13500_v49, %v13500_v49  ;;  %v8407_v60 = vcombine.low %v4067_v4, %v4066_v0  ;;  %14344 = vst [vmem:[#allocation15_spill] sm:$0xff] %v13520_v29  ;;  %v10135_v0 = vld [vmem:[%s11105_s16 + $0xea] sm:$0x3f]  ;;  %v13538_v28 = vpop.permute.xlu1 %10557 }
 0x1f1   : > { %v8619_v27 = vrot.slane %v8611_v56, %v11107_v5  ;;  %v8629_v26 = vcombine.low %v4315_v53, %v13486_v15  ;;  %v8636_v7 = vrot.slane %v8628_v57, %v11107_v5  ;;  %v4100_v3 = vcombine.high %v4092_v17, %v4092_v17  ;;  %14345 = vst [vmem:[#allocation5_spill] sm:$0xff] %v13538_v28 }
 0x1f2   : > { %v13524_v1 = vcombine.high %v13509_v35, %v13509_v35  ;;  %v8408_v51 = vcombine.low %v13500_v49, %v13513_v23  ;;  %v10490_v37 = vunpack.i.h.bf16 %v13278_v18  ;;  %v8415_v53 = vrot.slane %v8407_v60, %v11107_v5  ;;  %v10136_v60 = vld [vmem:[%s11105_s16 + $0xf2] sm:$0xff] }
 0x1f3   : > { %v8627_v63 = vcombine.low %v8619_v27, %v8626_v40  ;;  %v8643_v56 = vrot.slane %v8629_v26, %v11107_v5  ;;  %v10489_v4 = vunpack.i.l.bf16 %v13278_v18  ;;  %v8425_v32 = vcombine.low %v4092_v17, %v4100_v3  ;;  %v13549_v3 = vld [vmem:[%s11105_s16 + $0xfa] sm:$0x3f] }
 0x1f4   : > { %v8422_v57 = vrot.slane %v8408_v51, %v11107_v5  ;;  %v8424_v34 = vcombine.low %v13509_v35, %v13524_v1  ;;  %v9379_v9 = vsel %vm9375_vm6, %v13456_v30, %v10490_v37  ;;  %v10485_v26 = vunpack.i.h.bf16 %v13294_v55  ;;  %14346 = vst [vmem:[#allocation37_spill] sm:$0xff] %v13549_v3 }
 0x1f5   : > { %v8644_v40 = vcombine.low %v8636_v7, %v8643_v56  ;;  %v13541_v27 = vsel %vm9375_vm6, %v9352_v11, %v10489_v4  ;;  %v10484_v18 = vunpack.i.l.bf16 %v13294_v55  ;;  %v8439_v17 = vrot.slane %v8425_v32, %v11107_v5  ;;  %v13560_v56 = vpop.permute.xlu0 %10552 }
 0x1f6   : > { %v8423_v51 = vcombine.low %v8415_v53, %v8422_v57  ;;  %v8432_v15 = vrot.slane %v8424_v34, %v11107_v5  ;;  %v4801_v30 = vcombine.high %v10135_v0, %v10135_v0  ;;  %v13557_v11 = vsel %vm9349_vm5, %v13467_v48, %v10485_v26  ;;  %14347 = vst [vmem:[#allocation38_spill] sm:$0xff] %v13560_v56  ;;  %v14349_v48 = vld [vmem:[#allocation33_spill] sm:$0xff]  ;;  %v13578_v56 = vpop.permute.xlu1 %10567 }
 0x1f7   : > { %v10766_v37 = vpack.i.bf16 %v8644_v40, %v8627_v63  ;;  %v13553_v7 = vsel %vm9349_vm5, %v13474_v8, %v10484_v18  ;;  %v4808_v55 = vrot.slane %v10135_v0, %v11107_v5  ;;  %v4817_v53 = vcombine.high %v10136_v60, %v10136_v60  ;;  %v10122_v63 = vld [vmem:[%s11105_s16 + $0x82] sm:$0xff] }
 0x1f8   : > { %v8440_v34 = vcombine.low %v8432_v15, %v8439_v17  ;;  %v4815_v32 = vrot.slane %v4801_v30, %v11107_v5  ;;  %v4824_v4 = vrot.slane %v10136_v60, %v11107_v5  ;;  %v13568_v57 = vrot.slane %v13549_v3, %v11107_v5  ;;  %v14350_v40 = vld [vmem:[#allocation34_spill] sm:$0xff]  ;;  %v13576_v60 = vld [vmem:[%s11105_s16 + $0x8a] sm:$0x3f] }
 0x1f9   : > { %10767 = vrot.lane.b32.xlu1 %v10766_v37, %s11063_s24  ;;  %v4816_v8 = vcombine.high %v4808_v55, %v4808_v55  ;;  %v4570_v0 = vcombine.high %v14349_v48, %v14349_v48  ;;  %v4585_v26 = vcombine.high %v14350_v40, %v14350_v40  ;;  %v4831_v18 = vrot.slane %v4817_v53, %v11107_v5 }
 0x1fa   : > { %14348 = vst [vmem:[#allocation39_spill] sm:$0xff] %v13568_v57  ;;  %v10761_v15 = vpack.i.bf16 %v8440_v34, %v8423_v51  ;;  %v4832_v17 = vcombine.high %v4824_v4, %v4824_v4  ;;  %v9103_v30 = vcombine.low %v4815_v32, %v4824_v4  ;;  %14351 = vst [vmem:[#allocation33_spill] sm:$0xff] %v13576_v60 }
 0x1fb   : > { %14352 = vst [vmem:[#allocation34_spill] sm:$0xff] %v13578_v56  ;;  %v9102_v37 = vcombine.low %v4808_v55, %v4816_v8  ;;  %v4584_v28 = vrot.slane %v4570_v0, %v11107_v5  ;;  %v4586_v3 = vcombine.high %v10122_v63, %v10122_v63  ;;  %v13582_v41 = vrot.slane %v10122_v63, %v11107_v5  ;;  %v13598_v8 = vpop.permute.xlu0 %10562 }
 0x1fc   : > { %10762 = vrot.lane.b32.xlu0 %v10761_v15, %s11063_s24  ;;  %v4833_v48 = vcombine.high %v4831_v18, %v4831_v18  ;;  %v9117_v51 = vrot.slane %v9103_v30, %v11107_v5  ;;  %v9119_v34 = vcombine.low %v4832_v17, %v4831_v18  ;;  %v4610_v63 = vrot.slane %v13576_v60, %v11107_v5 }
 0x1fd   : > { %v9110_v53 = vrot.slane %v9102_v37, %v11107_v5  ;;  %v13590_v4 = vrot.slane %v4586_v3, %v11107_v5  ;;  %v13594_v55 = vcombine.high %v13582_v41, %v13582_v41  ;;  %14353 = vst [vmem:[#allocation40_spill] sm:$0xff] %v13598_v8  ;;  %v8898_v15 = vcombine.low %v4585_v26, %v4584_v28  ;;  %v13613_v26 = vpop.permute.xlu1 %10577 }
 0x1fe   : > { %v9120_v0 = vcombine.low %v4833_v48, %v13568_v57  ;;  %v9127_v40 = vrot.slane %v9119_v34, %v11107_v5  ;;  %v10500_v18 = vunpack.i.h.bf16 %v13313_v16  ;;  %v4618_v30 = vcombine.high %v4610_v63, %v4610_v63  ;;  %14354 = vst [vmem:[#allocation41_spill] sm:$0xff] %v13613_v26 }
 0x1ff   : > { %v9118_v17 = vcombine.low %v9110_v53, %v9117_v51  ;;  %v13605_v3 = vcombine.high %v13590_v4, %v13590_v4  ;;  %v8899_v37 = vcombine.low %v13582_v41, %v13594_v55  ;;  %v8906_v8 = vrot.slane %v8898_v15, %v11107_v5  ;;  %v13626_v26 = vpop.permute.xlu0 %10572 }
 0x200   : > { %v9134_v32 = vrot.slane %v9120_v0, %v11107_v5  ;;  %v10499_v48 = vunpack.i.l.bf16 %v13313_v16  ;;  %v9405_v28 = vsel %vm9401_vm7, %v9379_v9, %v10500_v18  ;;  %v8916_v53 = vcombine.low %v4610_v63, %v4618_v30  ;;  %v1237_v16 = vld [vmem:[%s11105_s16 + $0x7a] sm:$0x3f] }
 0x201   : > { %v8913_v51 = vrot.slane %v8899_v37, %v11107_v5  ;;  %v8915_v34 = vcombine.low %v13590_v4, %v13605_v3  ;;  %v10198_v56 = vpack.c.bf16 %v9405_v28, %v9405_v28  ;;  %v10495_v0 = vunpack.i.h.bf16 %v13332_v14 }
 0x202   : > { %v9135_v60 = vcombine.low %v9127_v40, %v9134_v32  ;;  %v9404_v57 = vsel %vm9401_vm7, %v13541_v27, %v10499_v48  ;;  %v10494_v15 = vunpack.i.l.bf16 %v13332_v14  ;;  %v8930_v18 = vrot.slane %v8916_v53, %v11107_v5  ;;  %v14355_v40 = vld [vmem:[#allocation36_spill] sm:$0xff]  ;;  %v13644_v48 = vpop.permute.xlu1 %10587 }
 0x203   : > { %v8914_v29 = vcombine.low %v8906_v8, %v8913_v51  ;;  %v8923_v9 = vrot.slane %v8915_v34, %v11107_v5  ;;  %v10197_v37 = vpack.c.bf16 %v9404_v57, %v9404_v57  ;;  %9532 = vst.msk [vmem:[#allocation2 + $0xc] sm:$0xf] %vm9528_vm8, %v10198_v56  ;;  %v9391_v27 = vsel %vm9375_vm6, %v13557_v11, %v10495_v0 }
 0x204   : > { %v10776_v63 = vpack.i.bf16 %v9135_v60, %v9118_v17  ;;  %v9390_v32 = vsel %vm9375_vm6, %v13553_v7, %v10494_v15  ;;  %v1724_v14 = vcombine.high %v14355_v40, %v14355_v40  ;;  %v1739_v57 = vcombine.high %v13136_v33, %v13136_v33  ;;  %v14356_v15 = vld [vmem:[#allocation25_spill] sm:$0xff]  ;;  %v13659_v40 = vpop.permute.xlu0 %10582 }
 0x205   : > { %v8931_v8 = vcombine.low %v8923_v9, %v8930_v18  ;;  %9531 = vst.msk [vmem:[#allocation2 + $0x8] sm:$0xf] %vm9528_vm8, %v10197_v37  ;;  %v1493_v56 = vcombine.high %v13139_v12, %v13139_v12  ;;  %v1526_v30 = vcombine.high %v1237_v16, %v1237_v16  ;;  %v1533_v60 = vrot.slane %v1237_v16, %v11107_v5  ;;  %v14357_v9 = vld [vmem:[#allocation29_spill] sm:$0xff] }
 0x206   : > { %10777 = vrot.lane.b32.xlu1 %v10776_v63, %s11062_s23  ;;  %v1738_v7 = vrot.slane %v1724_v14, %v11107_v5  ;;  %v10510_v11 = vunpack.i.h.bf16 %v13349_v44  ;;  %v10509_v17 = vunpack.i.l.bf16 %v13349_v44  ;;  %v10505_v12 = vunpack.i.h.bf16 %v13365_v61  ;;  %v9985_v63 = vld [vmem:[%s11105_s16 + $0x88] sm:$0x3f] }
 0x207   : > { %v10771_v28 = vpack.i.bf16 %v8931_v8, %v8914_v29  ;;  %v1507_v33 = vrot.slane %v1493_v56, %v11107_v5  ;;  %v1540_v51 = vrot.slane %v1526_v30, %v11107_v5  ;;  %v1541_v53 = vcombine.high %v1533_v60, %v1533_v60 }
 0x208   : > { %v6190_v34 = vcombine.low %v1739_v57, %v1738_v7  ;;  %v6003_v0 = vcombine.low %v13093_v21, %v1533_v60  ;;  %v9262_v16 = vsel %vm9245_vm1, %v14356_v15, %v10509_v17  ;;  %v9263_v29 = vsel %vm9245_vm1, %v14357_v9, %v10510_v11 }
 0x209   : > { %10772 = vrot.lane.b32.xlu0 %v10771_v28, %s11062_s23  ;;  %v5986_v44 = vcombine.low %v1507_v33, %v13074_v50  ;;  %v10504_v18 = vunpack.i.l.bf16 %v13365_v61  ;;  %v9417_v37 = vsel %vm9401_vm7, %v9391_v27, %v10505_v12  ;;  %v6004_v21 = vcombine.low %v1541_v53, %v1540_v51  ;;  %v13674_v28 = vpop.permute.xlu1 %10597 }
 0x20a   : > { %v6197_v14 = vrot.slane %v6190_v34, %v11107_v5  ;;  %v6011_v8 = vrot.slane %v6003_v0, %v11107_v5  ;;  %v10210_v57 = vpack.c.bf16 %v9417_v37, %v9417_v37  ;;  %v2243_v30 = vcombine.high %v13173_v58, %v13173_v58 }
 0x20b   : > { %v5994_v56 = vrot.slane %v5986_v44, %v11107_v5  ;;  %v9416_v50 = vsel %vm9401_vm7, %v9390_v32, %v10504_v18  ;;  %v2258_v61 = vcombine.high %v13193_v19, %v13193_v19  ;;  %v6018_v27 = vrot.slane %v6004_v21, %v11107_v5  ;;  %v14358_v32 = vld [vmem:[#allocation35_spill] sm:$0xff]  ;;  %v13688_v18 = vpop.permute.xlu0 %10592 }
 0x20c   : > { %6246 = vrot.lane.b32.xlu1 %v6197_v14, %s11057_s18  ;;  %v10209_v7 = vpack.c.bf16 %v9416_v50, %v9416_v50  ;;  %9544 = vst.msk [vmem:[#allocation2 + $0x3c] sm:$0xf] %vm9528_vm8, %v10210_v57  ;;  %v2012_v60 = vcombine.high %v13201_v22, %v13201_v22  ;;  %v2045_v11 = vcombine.high %v9985_v63, %v9985_v63  ;;  %v11005_v17 = vld [vmem:[#allocation2 + $0x8] sm:$0xff]   ;;  %v10520_v53 = vunpack.i.h.bf16 %v13386_v59 }
 0x20d   : > { %v6002_v33 = vcombine.low %v5994_v56, %v14358_v32  ;;  %v2257_v58 = vrot.slane %v2243_v30, %v11107_v5  ;;  %v2052_v19 = vrot.slane %v9985_v63, %v11107_v5  ;;  %v6478_v51 = vcombine.low %v13425_v25, %v13418_v10  ;;  %10247 = vmatmul.mubr.msk.bf16.gmra.mrb[4].mxu0 %vm9663_vm11, %v11005_v17 }
 0x20e   : > { %v6019_v12 = vcombine.low %v6011_v8, %v6018_v27  ;;  %9543 = vst.msk [vmem:[#allocation2 + $0x38] sm:$0xf] %vm9528_vm8, %v10209_v7  ;;  %v2026_v34 = vrot.slane %v2012_v60, %v11107_v5  ;;  %v2059_v22 = vrot.slane %v2045_v11, %v11107_v5  ;;  %v14359_v10 = vmov 0.0   ;;  %v14360_v27 = vld [vmem:[#allocation7_spill] sm:$0xff] }
 0x20f   : > { %v6681_v0 = vcombine.low %v2258_v61, %v2257_v58  ;;  %v2060_v15 = vcombine.high %v2052_v19, %v2052_v19  ;;  %v6492_v44 = vrot.slane %v6478_v51, %v11107_v5  ;;  %v6494_v9 = vcombine.low %v13434_v46, %v2052_v19  ;;  %10250 = vmatprep.mubr.msk.bf16.mxu0 %vm11065_vm10, %v14359_v10  ;;  %v10013_v46 = vld [vmem:[%s11105_s16 + $0x89] sm:$0x3f] }
 0x210   : > { %v10781_v25 = vpack.i.bf16 %v6019_v12, %v6002_v33  ;;  %v6477_v37 = vcombine.low %v2026_v34, %v13413_v38  ;;  %v10519_v63 = vunpack.i.l.bf16 %v13386_v59  ;;  %v9289_v14 = vsel %vm9271_vm2, %v9263_v29, %v10520_v53  ;;  %v13705_v29 = vpop.permute.xlu1 %10607 }
 0x211   : > { %v6688_v21 = vrot.slane %v6681_v0, %v11107_v5  ;;  %v6495_v8 = vcombine.low %v2060_v15, %v2059_v22  ;;  %v6502_v57 = vrot.slane %v6494_v9, %v11107_v5  ;;  %v10515_v56 = vunpack.i.h.bf16 %v13404_v47 }
 0x212   : > { %10782 = vrot.lane.b32.xlu0 %v10781_v25, %s11057_s18  ;;  %v6485_v50 = vrot.slane %v6477_v37, %v11107_v5  ;;  %v9288_v30 = vsel %vm9271_vm2, %v9262_v16, %v10519_v63  ;;  %v10514_v38 = vunpack.i.l.bf16 %v13404_v47  ;;  %v2761_v59 = vcombine.high %v13244_v62, %v13244_v62  ;;  %v14361_v47 = vld [vmem:[#allocation6_spill] sm:$0xff] }
 0x213   : > { %6737 = vrot.lane.b32.xlu1 %v6688_v21, %s11059_s20  ;;  %v6509_v61 = vrot.slane %v6495_v8, %v11107_v5  ;;  %v9277_v7 = vsel %vm9271_vm2, %v14360_v27, %v10515_v56  ;;  %v2776_v60 = vcombine.high %v13267_v13, %v13267_v13  ;;  %v2530_v16 = vcombine.high %v13260_v36, %v13260_v36  ;;  %v13722_v13 = vpop.permute.xlu0 %10602 }
 0x214   : > { %v6493_v11 = vcombine.low %v6485_v50, %v6492_v44  ;;  %v9276_v17 = vsel %vm9271_vm2, %v14361_v47, %v10514_v38  ;;  %v2775_v62 = vrot.slane %v2761_v59, %v11107_v5  ;;  %v2563_v32 = vcombine.high %v10013_v46, %v10013_v46 }
 0x215   : > { %v6510_v33 = vcombine.low %v6502_v57, %v6509_v61  ;;  %v2544_v58 = vrot.slane %v2530_v16, %v11107_v5  ;;  %v2570_v19 = vrot.slane %v10013_v46, %v11107_v5  ;;  %v6969_v51 = vcombine.low %v13513_v23, %v13509_v35  ;;  %v11008_v12 = vld [vmem:[#allocation2 + $0x38] sm:$0xff]   ;;  %v10041_v57 = vld [vmem:[%s11105_s16 + $0x8a] sm:$0x3f] }
 0x216   : > { %v7172_v34 = vcombine.low %v2776_v60, %v2775_v62  ;;  %v2577_v36 = vrot.slane %v2563_v32, %v11107_v5  ;;  %v10530_v22 = vunpack.i.h.bf16 %v13420_v43  ;;  %v10529_v53 = vunpack.i.l.bf16 %v13420_v43  ;;  %10271 = vmatmul.mubr.msk.bf16.vlgmr.msra.gmra.mrb[0].mxu1 %vm9663_vm11, %v11008_v12  ;;  %v13736_v43 = vpop.permute.xlu1 %10617 }
 0x217   : > { %v10786_v0 = vpack.i.bf16 %v6510_v33, %v6493_v11  ;;  %v2578_v15 = vcombine.high %v2570_v19, %v2570_v19  ;;  %v6968_v44 = vcombine.low %v2544_v58, %v13500_v49  ;;  %v6983_v9 = vrot.slane %v6969_v51, %v11107_v5  ;;  %10274 = vmatprep.mubr.msk.bf16.mxu1 %vm11065_vm10, %v14359_v10  ;;  %v13754_v59 = vpop.permute.xlu0 %10612 }
 0x218   : > { %v7179_v35 = vrot.slane %v7172_v34, %v11107_v5  ;;  %v6985_v23 = vcombine.low %v13524_v1, %v2570_v19  ;;  %v9314_v25 = vsel %vm9297_vm3, %v9288_v30, %v10529_v53  ;;  %v9315_v37 = vsel %vm9297_vm3, %v9289_v14, %v10530_v22  ;;  %v10068_v34 = vld [vmem:[%s11105_s16 + $0x90] sm:$0xff]  ;;  %v10069_v53 = vld [vmem:[%s11105_s16 + $0x98] sm:$0x3f] }
 0x219   : > { %10787 = vrot.lane.b32.xlu0 %v10786_v0, %s11059_s20  ;;  %v6976_v49 = vrot.slane %v6968_v44, %v11107_v5  ;;  %v6986_v63 = vcombine.low %v2578_v15, %v2577_v36  ;;  %v10525_v21 = vunpack.i.h.bf16 %v13439_v39  ;;  %v10524_v8 = vunpack.i.l.bf16 %v13439_v39 }
 0x21a   : > { %7228 = vrot.lane.b32.xlu1 %v7179_v35, %s11058_s19  ;;  %v6993_v1 = vrot.slane %v6985_v23, %v11107_v5  ;;  %v3279_v14 = vcombine.high %v13305_v24, %v13305_v24  ;;  %v3294_v56 = vcombine.high %v13322_v20, %v13322_v20  ;;  %v3048_v46 = vcombine.high %v13325_v2, %v13325_v2  ;;  %v13765_v32 = vpop.permute.xlu1 %10627 }
 0x21b   : > { %v6984_v50 = vcombine.low %v6976_v49, %v6983_v9  ;;  %v7000_v30 = vrot.slane %v6986_v63, %v11107_v5  ;;  %v9302_v38 = vsel %vm9297_vm3, %v9276_v17, %v10524_v8  ;;  %v9303_v39 = vsel %vm9297_vm3, %v9277_v7, %v10525_v21  ;;  %v13781_v0 = vpop.permute.xlu0 %10622 }
 0x21c   : > { %v3293_v61 = vrot.slane %v3279_v14, %v11107_v5  ;;  %v3062_v27 = vrot.slane %v3048_v46, %v11107_v5  ;;  %v3081_v24 = vcombine.high %v10041_v57, %v10041_v57  ;;  %v3088_v60 = vrot.slane %v10041_v57, %v11107_v5 }
 0x21d   : > { %v7001_v20 = vcombine.low %v6993_v1, %v7000_v30  ;;  %v7460_v2 = vcombine.low %v13594_v55, %v13590_v4  ;;  %v10540_v16 = vunpack.i.h.bf16 %v13460_v52  ;;  %v10539_v11 = vunpack.i.l.bf16 %v13460_v52 }
 0x21e   : > { %v7663_v47 = vcombine.low %v3294_v56, %v3293_v61  ;;  %v3095_v7 = vrot.slane %v3081_v24, %v11107_v5  ;;  %v3096_v17 = vcombine.high %v3088_v60, %v3088_v60  ;;  %v7459_v62 = vcombine.low %v3062_v27, %v13582_v41  ;;  %v13796_v57 = vpop.permute.xlu1 %10637 }
 0x21f   : > { %v10791_v33 = vpack.i.bf16 %v7001_v20, %v6984_v50  ;;  %v7474_v58 = vrot.slane %v7460_v2, %v11107_v5  ;;  %v7476_v19 = vcombine.low %v13605_v3, %v3088_v60  ;;  %v9340_v4 = vsel %vm9323_vm4, %v9314_v25, %v10539_v11  ;;  %v13804_v24 = vpop.permute.xlu0 %10632  ;;  %v14363_v2 = vld [vmem:[#allocation15_spill] sm:$0xff] }
 0x220   : > { %v7670_v55 = vrot.slane %v7663_v47, %v11107_v5  ;;  %v7467_v52 = vrot.slane %v7459_v62, %v11107_v5  ;;  %v7477_v51 = vcombine.low %v3096_v17, %v3095_v7  ;;  %v9341_v12 = vsel %vm9323_vm4, %v9315_v37, %v10540_v16  ;;  %v14364_v17 = vld [vmem:[#allocation8_spill] sm:$0xff] }
 0x221   : > { %10792 = vrot.lane.b32.xlu0 %v10791_v33, %s11058_s19  ;;  %v7484_v41 = vrot.slane %v7476_v19, %v11107_v5  ;;  %v10535_v36 = vunpack.i.h.bf16 %v13480_v6  ;;  %v10534_v22 = vunpack.i.l.bf16 %v13480_v6  ;;  %v3798_v3 = vcombine.high %v13378_v42, %v13378_v42  ;;  %v10096_v33 = vld [vmem:[%s11105_s16 + $0x91] sm:$0xff] }
 0x222   : > { %7719 = vrot.lane.b32.xlu1 %v7670_v55, %s11061_s22  ;;  %v7475_v15 = vcombine.low %v7467_v52, %v7474_v58  ;;  %v7491_v44 = vrot.slane %v7477_v51, %v11107_v5  ;;  %v3813_v9 = vcombine.high %v13397_v45, %v13397_v45  ;;  %v14362_v35 = vcombine.high %v13408_v31, %v13408_v31  ;;  %v10097_v58 = vld [vmem:[%s11105_s16 + $0x99] sm:$0x3f] }
 0x223   : > { %v9328_v6 = vsel %vm9323_vm4, %v9302_v38, %v10534_v22  ;;  %v9329_v42 = vsel %vm9323_vm4, %v9303_v39, %v10535_v36  ;;  %v3812_v25 = vrot.slane %v3798_v3, %v11107_v5  ;;  %v3583_v37 = vcombine.high %v10068_v34, %v10068_v34  ;;  %v14365_v52 = vld [vmem:[#allocation9_spill] sm:$0xff]  ;;  %v14366_v22 = vld [vmem:[#allocation14_spill] sm:$0xff] }
 0x224   : > { %v3581_v23 = vrot.slane %v14362_v35, %v11107_v5  ;;  %v7492_v49 = vcombine.low %v7484_v41, %v7491_v44  ;;  %v3590_v63 = vrot.slane %v10068_v34, %v11107_v5  ;;  %v3600_v21 = vcombine.high %v10069_v53, %v10069_v53 }
 0x225   : > { %v3607_v8 = vrot.slane %v10069_v53, %v11107_v5  ;;  %v8154_v45 = vcombine.low %v3813_v9, %v3812_v25  ;;  %v3597_v1 = vrot.slane %v3583_v37, %v11107_v5  ;;  %v10550_v31 = vunpack.i.h.bf16 %v13502_v54  ;;  %v14368_v37 = vld [vmem:[#allocation5_spill] sm:$0xff] }
 0x226   : > { %v10549_v14 = vunpack.i.l.bf16 %v13502_v54  ;;  %v10796_v56 = vpack.i.bf16 %v7492_v49, %v7475_v15  ;;  %v3598_v46 = vcombine.high %v3590_v63, %v3590_v63  ;;  %v3614_v50 = vrot.slane %v3600_v21, %v11107_v5 }
 0x227   : > { %v3615_v30 = vcombine.high %v3607_v8, %v3607_v8  ;;  %v8161_v38 = vrot.slane %v8154_v45, %v11107_v5  ;;  %v3599_v39 = vcombine.high %v3597_v1, %v3597_v1  ;;  %v7950_v61 = vcombine.low %v3581_v23, %v3590_v63  ;;  %v13833_v63 = vpop.permute.xlu0 %10642 }
 0x228   : > { %v9366_v27 = vsel %vm9349_vm5, %v9340_v4, %v10549_v14  ;;  %10797 = vrot.lane.b32.xlu0 %v10796_v56, %s11061_s22  ;;  %v7951_v60 = vcombine.low %v3598_v46, %v3597_v1  ;;  %v9367_v54 = vsel %vm9349_vm5, %v9341_v12, %v10550_v31  ;;  %v10545_v16 = vunpack.i.h.bf16 %v14363_v2  ;;  %v13821_v12 = vpop.permute.xlu1 %10647 }
 0x229   : > { %v7968_v20 = vcombine.low %v3615_v30, %v3614_v50  ;;  %8210 = vrot.lane.b32.xlu1 %v8161_v38, %s11060_s21  ;;  %v7958_v11 = vrot.slane %v7950_v61, %v11107_v5  ;;  %v7967_v47 = vcombine.low %v3599_v39, %v3607_v8  ;;  %v10544_v7 = vunpack.i.l.bf16 %v14363_v2 }
 0x22a   : > { %v4316_v62 = vcombine.high %v14364_v17, %v14364_v17  ;;  %v7965_v19 = vrot.slane %v7951_v60, %v11107_v5  ;;  %v9355_v55 = vsel %vm9349_vm5, %v9329_v42, %v10545_v16  ;;  %v4331_v51 = vcombine.high %v14365_v52, %v14365_v52  ;;  %v14370_v17 = vld [vmem:[#allocation37_spill] sm:$0xff] }
 0x22b   : > { %v7982_v4 = vrot.slane %v7968_v20, %v11107_v5  ;;  %v7975_v34 = vrot.slane %v7967_v47, %v11107_v5  ;;  %v9354_v41 = vsel %vm9349_vm5, %v9328_v6, %v10544_v7  ;;  %v14367_v3 = vcombine.high %v14366_v22, %v14366_v22  ;;  %v14369_v20 = vld [vmem:[#allocation38_spill] sm:$0xff]  ;;  %v14372_v52 = vld [vmem:[#allocation33_spill] sm:$0xff] }
 0x22c   : > { %v4330_v36 = vrot.slane %v4316_v62, %v11107_v5  ;;  %v7966_v15 = vcombine.low %v7958_v11, %v7965_v19  ;;  %v4101_v44 = vcombine.high %v10096_v33, %v10096_v33  ;;  %v4108_v9 = vrot.slane %v10096_v33, %v11107_v5  ;;  %v13841_v39 = vpop.permute.xlu1 %10657  ;;  %v10124_v11 = vld [vmem:[%s11105_s16 + $0x92] sm:$0xff]  ;;  %v14371_v62 = vld [vmem:[#allocation39_spill] sm:$0xff] }
 0x22d   : > { %v4099_v53 = vrot.slane %v14367_v3, %v11107_v5  ;;  %v4118_v35 = vcombine.high %v10097_v58, %v10097_v58  ;;  %v7983_v23 = vcombine.low %v7975_v34, %v7982_v4  ;;  %v4125_v25 = vrot.slane %v10097_v58, %v11107_v5  ;;  %v10125_v58 = vld [vmem:[%s11105_s16 + $0x9a] sm:$0x3f] }
 0x22e   : > { %v8645_v42 = vcombine.low %v4331_v51, %v4330_v36  ;;  %v10560_v49 = vunpack.i.h.bf16 %v14368_v37  ;;  %v4115_v6 = vrot.slane %v4101_v44, %v11107_v5  ;;  %v4116_v21 = vcombine.high %v4108_v9, %v4108_v9  ;;  %v13862_v36 = vpop.permute.xlu0 %10652 }
 0x22f   : > { %v4132_v8 = vrot.slane %v4118_v35, %v11107_v5  ;;  %v8441_v45 = vcombine.low %v4099_v53, %v4108_v9  ;;  %v10801_v1 = vpack.i.bf16 %v7983_v23, %v7966_v15  ;;  %v4133_v14 = vcombine.high %v4125_v25, %v4125_v25  ;;  %v14374_v35 = vld [vmem:[#allocation34_spill] sm:$0xff] }
 0x230   : > { %v8652_v31 = vrot.slane %v8645_v42, %v11107_v5  ;;  %v10559_v56 = vunpack.i.l.bf16 %v14368_v37  ;;  %v4117_v46 = vcombine.high %v4115_v6, %v4115_v6  ;;  %v8442_v50 = vcombine.low %v4116_v21, %v4115_v6 }
 0x231   : > { %v8449_v30 = vrot.slane %v8441_v45, %v11107_v5  ;;  %v9393_v38 = vsel %vm9375_vm6, %v9367_v54, %v10560_v49  ;;  %10802 = vrot.lane.b32.xlu0 %v10801_v1, %s11060_s21  ;;  %v8459_v61 = vcombine.low %v4133_v14, %v4132_v8  ;;  %v10555_v2 = vunpack.i.h.bf16 %v14369_v20  ;;  %v13871_v49 = vpop.permute.xlu1 %10667 }
 0x232   : > { %8701 = vrot.lane.b32.xlu1 %v8652_v31, %s11063_s24  ;;  %v9392_v60 = vsel %vm9375_vm6, %v9366_v27, %v10559_v56  ;;  %v10554_v16 = vunpack.i.l.bf16 %v14369_v20  ;;  %v8456_v47 = vrot.slane %v8442_v50, %v11107_v5  ;;  %v8458_v7 = vcombine.low %v4117_v46, %v4125_v25  ;;  %v13878_v20 = vpop.permute.xlu0 %10662 }
 0x233   : > { %v4834_v54 = vcombine.high %v14370_v17, %v14370_v17  ;;  %v4849_v33 = vcombine.high %v14371_v62, %v14371_v62  ;;  %v8473_v19 = vrot.slane %v8459_v61, %v11107_v5  ;;  %v9381_v27 = vsel %vm9375_vm6, %v9355_v55, %v10555_v2  ;;  %v14376_v62 = vld [vmem:[#allocation41_spill] sm:$0xff] }
 0x234   : > { %v9380_v4 = vsel %vm9375_vm6, %v9354_v41, %v10554_v16  ;;  %v14373_v51 = vcombine.high %v14372_v52, %v14372_v52  ;;  %v8457_v22 = vcombine.low %v8449_v30, %v8456_v47  ;;  %v8466_v3 = vrot.slane %v8458_v7, %v11107_v5  ;;  %v14375_v47 = vld [vmem:[#allocation40_spill] sm:$0xff] }
 0x235   : > { %v4848_v53 = vrot.slane %v4834_v54, %v11107_v5  ;;  %v4619_v15 = vcombine.high %v10124_v11, %v10124_v11  ;;  %v4626_v44 = vrot.slane %v10124_v11, %v11107_v5  ;;  %v4636_v9 = vcombine.high %v10125_v58, %v10125_v58 }
 0x236   : > { %v4617_v34 = vrot.slane %v14373_v51, %v11107_v5  ;;  %v4643_v41 = vrot.slane %v10125_v58, %v11107_v5  ;;  %v10570_v55 = vunpack.i.h.bf16 %v14374_v35  ;;  %v8474_v23 = vcombine.low %v8466_v3, %v8473_v19  ;;  %v13893_v51 = vpop.permute.xlu1 %10677 }
 0x237   : > { %v9136_v42 = vcombine.low %v4849_v33, %v4848_v53  ;;  %v4633_v25 = vrot.slane %v4619_v15, %v11107_v5  ;;  %v10569_v37 = vunpack.i.l.bf16 %v14374_v35  ;;  %v4634_v6 = vcombine.high %v4626_v44, %v4626_v44  ;;  %v14377_v53 = vld [vmem:[#allocation24_spill] sm:$0xff] }
 0x238   : > { %v4650_v21 = vrot.slane %v4636_v9, %v11107_v5  ;;  %v4651_v8 = vcombine.high %v4643_v41, %v4643_v41  ;;  %v8932_v45 = vcombine.low %v4617_v34, %v4626_v44  ;;  %v10806_v1 = vpack.i.bf16 %v8474_v23, %v8457_v22 }
 0x239   : > { %v9143_v31 = vrot.slane %v9136_v42, %v11107_v5  ;;  %v4635_v14 = vcombine.high %v4633_v25, %v4633_v25  ;;  %v9418_v56 = vsel %vm9401_vm7, %v9392_v60, %v10569_v37  ;;  %v8933_v46 = vcombine.low %v4634_v6, %v4633_v25  ;;  %v13907_v37 = vpop.permute.xlu0 %10672 }
 0x23a   : > { %v8940_v50 = vrot.slane %v8932_v45, %v11107_v5  ;;  %v8950_v30 = vcombine.low %v4651_v8, %v4650_v21  ;;  %v9419_v61 = vsel %vm9401_vm7, %v9393_v38, %v10570_v55  ;;  %10807 = vrot.lane.b32.xlu0 %v10806_v1, %s11063_s24  ;;  %v10211_v16 = vpack.c.bf16 %v9418_v56, %v9418_v56  ;;  %v14379_v55 = vld [vmem:[#allocation18_spill] sm:$0xff]  ;;  %v14380_v21 = vld [vmem:[#allocation17_spill] sm:$0xff] }
 0x23b   : > { %9192 = vrot.lane.b32.xlu1 %v9143_v31, %s11062_s23  ;;  %v8949_v2 = vcombine.low %v4635_v14, %v4643_v41  ;;  %v10212_v11 = vpack.c.bf16 %v9419_v61, %v9419_v61  ;;  %v10565_v7 = vunpack.i.h.bf16 %v14375_v47  ;;  %v8947_v17 = vrot.slane %v8933_v46, %v11107_v5  ;;  %v14378_v41 = vld [vmem:[#allocation23_spill] sm:$0xff] }
 0x23c   : > { %v8964_v60 = vrot.slane %v8950_v30, %v11107_v5  ;;  %v10564_v54 = vunpack.i.l.bf16 %v14375_v47  ;;  %v10580_v33 = vunpack.i.h.bf16 %v14376_v62  ;;  %9545 = vst.msk [vmem:[#allocation2 + $0x40] sm:$0xf] %vm9528_vm8, %v10211_v16  ;;  %v10579_v19 = vunpack.i.l.bf16 %v14376_v62  ;;  %v13923_v30 = vpop.permute.xlu1 %10687 }
 0x23d   : > { %v8957_v38 = vrot.slane %v8949_v2, %v11107_v5  ;;  %9546 = vst.msk [vmem:[#allocation2 + $0x44] sm:$0xf] %vm9528_vm8, %v10212_v11  ;;  %v9407_v58 = vsel %vm9401_vm7, %v9381_v27, %v10565_v7  ;;  %v10575_v52 = vunpack.i.h.bf16 %v13626_v26  ;;  %v8948_v34 = vcombine.low %v8940_v50, %v8947_v17 }
 0x23e   : > { %v9406_v22 = vsel %vm9401_vm7, %v9380_v4, %v10564_v54  ;;  %v10200_v3 = vpack.c.bf16 %v9407_v58, %v9407_v58  ;;  %v9265_v15 = vsel %vm9245_vm1, %v14377_v53, %v10580_v33  ;;  %v9264_v35 = vsel %vm9245_vm1, %v14378_v41, %v10579_v19  ;;  %v13938_v33 = vpop.permute.xlu0 %10682 }
 0x23f   : > { %v8965_v44 = vcombine.low %v8957_v38, %v8964_v60  ;;  %v10199_v9 = vpack.c.bf16 %v9406_v22, %v9406_v22  ;;  %v10574_v27 = vunpack.i.l.bf16 %v13626_v26  ;;  %v9253_v23 = vsel %vm9245_vm1, %v14379_v55, %v10575_v52 }
 0x240   : > { %9534 = vst.msk [vmem:[#allocation2 + $0x14] sm:$0xf] %vm9528_vm8, %v10200_v3  ;;  %v10590_v42 = vunpack.i.h.bf16 %v13644_v48  ;;  %v10589_v4 = vunpack.i.l.bf16 %v13644_v48  ;;  %v10585_v25 = vunpack.i.h.bf16 %v13659_v40  ;;  %v10584_v26 = vunpack.i.l.bf16 %v13659_v40 }
 0x241   : > { %v10811_v6 = vpack.i.bf16 %v8965_v44, %v8948_v34  ;;  %9533 = vst.msk [vmem:[#allocation2 + $0x10] sm:$0xf] %vm9528_vm8, %v10199_v9  ;;  %v9252_v8 = vsel %vm9245_vm1, %v14380_v21, %v10574_v27  ;;  %v10600_v45 = vunpack.i.h.bf16 %v13674_v28  ;;  %v10599_v14 = vunpack.i.l.bf16 %v13674_v28  ;;  %v13954_v9 = vpop.permute.xlu1 %10697 }
 0x242   : > { %v9290_v1 = vsel %vm9271_vm2, %v9264_v35, %v10589_v4  ;;  %v9291_v31 = vsel %vm9271_vm2, %v9265_v15, %v10590_v42  ;;  %v9279_v48 = vsel %vm9271_vm2, %v9253_v23, %v10585_v25  ;;  %v9278_v56 = vsel %vm9271_vm2, %v9252_v8, %v10584_v26  ;;  %v13970_v8 = vpop.permute.xlu0 %10692 }
 0x243   : > { %10812 = vrot.lane.b32.xlu0 %v10811_v6, %s11062_s23  ;;  %v9317_v46 = vsel %vm9297_vm3, %v9291_v31, %v10600_v45  ;;  %v10595_v50 = vunpack.i.h.bf16 %v13688_v18  ;;  %v10594_v40 = vunpack.i.l.bf16 %v13688_v18  ;;  %v9316_v61 = vsel %vm9297_vm3, %v9290_v1, %v10599_v14 }
 0x244   : > { %v10610_v2 = vunpack.i.h.bf16 %v13705_v29  ;;  %v10609_v16 = vunpack.i.l.bf16 %v13705_v29  ;;  %v10605_v28 = vunpack.i.h.bf16 %v13722_v13  ;;  %v11014_v11 = vld [vmem:[#allocation2 + $0x40] sm:$0xff]   ;;  %v10604_v17 = vunpack.i.l.bf16 %v13722_v13 }
 0x245   : > { %v9304_v47 = vsel %vm9297_vm3, %v9278_v56, %v10594_v40  ;;  %v9305_v7 = vsel %vm9297_vm3, %v9279_v48, %v10595_v50  ;;  %v10620_v60 = vunpack.i.h.bf16 %v13736_v43  ;;  %10275 = vmatmul.mubr.msk.bf16.gmra.mrb[4].mxu1 %vm9663_vm11, %v11014_v11  ;;  %v10619_v29 = vunpack.i.l.bf16 %v13736_v43  ;;  %v14383_v48 = vld [vmem:[#allocation30_spill] sm:$0xff]  ;;  %v14384_v50 = vld [vmem:[#allocation31_spill] sm:$0xff] }
 0x246   : > { %v9342_v18 = vsel %vm9323_vm4, %v9316_v61, %v10609_v16  ;;  %v9343_v54 = vsel %vm9323_vm4, %v9317_v46, %v10610_v2  ;;  %v9331_v62 = vsel %vm9323_vm4, %v9305_v7, %v10605_v28  ;;  %v9330_v38 = vsel %vm9323_vm4, %v9304_v47, %v10604_v17  ;;  %10278 = vmatprep.mubr.msk.bf16.mxu1 %vm11065_vm10, %v14359_v10  ;;  %v10708_v28 = vpop.permute.xlu1 %10707 }
 0x247   : > { %v9369_v58 = vsel %vm9349_vm5, %v9343_v54, %v10620_v60  ;;  %v10615_v13 = vunpack.i.h.bf16 %v13754_v59  ;;  %v10614_v19 = vunpack.i.l.bf16 %v13754_v59  ;;  %v9368_v34 = vsel %vm9349_vm5, %v9342_v18, %v10619_v29  ;;  %v14385_v60 = vld [vmem:[#allocation19_spill] sm:$0xff]  ;;  %v14386_v18 = vld [vmem:[#allocation20_spill] sm:$0xff] }
 0x248   : > { %v11013_v52 = vld [vmem:[#allocation2 + $0x10] sm:$0xff]   ;;  %v10630_v22 = vunpack.i.h.bf16 %v13765_v32  ;;  %v10629_v43 = vunpack.i.l.bf16 %v13765_v32  ;;  %v10625_v3 = vunpack.i.h.bf16 %v13781_v0  ;;  %v10624_v44 = vunpack.i.l.bf16 %v13781_v0 }
 0x249   : > { %v9356_v53 = vsel %vm9349_vm5, %v9330_v38, %v10614_v19  ;;  %v9357_v15 = vsel %vm9349_vm5, %v9331_v62, %v10615_v13  ;;  %v10640_v59 = vunpack.i.h.bf16 %v13796_v57  ;;  %10251 = vmatmul.mubr.msk.bf16.gmra.mrb[8].mxu0 %vm9663_vm11, %v11013_v52  ;;  %v10639_v27 = vunpack.i.l.bf16 %v13796_v57  ;;  %v10703_v13 = vpop.permute.xlu0 %10702 }
 0x24a   : > { %v9394_v41 = vsel %vm9375_vm6, %v9368_v34, %v10629_v43  ;;  %v9395_v35 = vsel %vm9375_vm6, %v9369_v58, %v10630_v22  ;;  %v9383_v32 = vsel %vm9375_vm6, %v9357_v15, %v10625_v3  ;;  %v9382_v55 = vsel %vm9375_vm6, %v9356_v53, %v10624_v44  ;;  %10254 = vmatprep.mubr.msk.bf16.mxu0 %vm11065_vm10, %v14359_v10 }
 0x24b   : > { %v9421_v23 = vsel %vm9401_vm7, %v9395_v35, %v10640_v59  ;;  %v10635_v0 = vunpack.i.h.bf16 %v13804_v24  ;;  %v10634_v42 = vunpack.i.l.bf16 %v13804_v24  ;;  %v9420_v4 = vsel %vm9401_vm7, %v9394_v41, %v10639_v27  ;;  %v14381_v24 = vld [vmem:[#allocation27_spill] sm:$0xff]  ;;  %v14015_v41 = vpop.permute.xlu1 %10717 }
 0x24c   : > { %v10214_v25 = vpack.c.bf16 %v9421_v23, %v9421_v23  ;;  %v10650_v6 = vunpack.i.h.bf16 %v13821_v12  ;;  %v10649_v21 = vunpack.i.l.bf16 %v13821_v12  ;;  %v10213_v57 = vpack.c.bf16 %v9420_v4, %v9420_v4 }
 0x24d   : > { %v9408_v26 = vsel %vm9401_vm7, %v9382_v55, %v10634_v42  ;;  %v9409_v45 = vsel %vm9401_vm7, %v9383_v32, %v10635_v0  ;;  %v10645_v1 = vunpack.i.h.bf16 %v13833_v63  ;;  %v14382_v31 = vunpack.i.h.bf16 %v14381_v24 }
 0x24e   : > { %9548 = vst.msk [vmem:[#allocation2 + $0x4c] sm:$0xf] %vm9528_vm8, %v10214_v25  ;;  %v10201_v56 = vpack.c.bf16 %v9408_v26, %v9408_v26  ;;  %v10202_v46 = vpack.c.bf16 %v9409_v45, %v9409_v45  ;;  %v9266_v12 = vsel %vm9245_vm1, %v14384_v50, %v10649_v21  ;;  %9547 = vst.msk [vmem:[#allocation2 + $0x48] sm:$0xf] %vm9528_vm8, %v10213_v57  ;;  %v10644_v61 = vunpack.i.l.bf16 %v13833_v63  ;;  %v14028_v57 = vpop.permute.xlu0 %10712  ;;  %v211_v26 = vld [vmem:[%s11105_s16 + $0xc8] sm:$0x3f] }
 0x24f   : > { %v9241_v14 = vsel %vm9219_vm0, %v14383_v48, %v14382_v31  ;;  %v10660_v2 = vunpack.i.h.bf16 %v13841_v39  ;;  %v10659_v16 = vunpack.i.l.bf16 %v13841_v39  ;;  %v10655_v11 = vunpack.i.h.bf16 %v13862_v36 }
 0x250   : > { %v9267_v40 = vsel %vm9245_vm1, %v9241_v14, %v10650_v6  ;;  %9535 = vst.msk [vmem:[#allocation2 + $0x18] sm:$0xf] %vm9528_vm8, %v10201_v56  ;;  %9536 = vst.msk [vmem:[#allocation2 + $0x1c] sm:$0xf] %vm9528_vm8, %v10202_v46  ;;  %v10654_v47 = vunpack.i.l.bf16 %v13862_v36  ;;  %v10670_v7 = vunpack.i.h.bf16 %v13871_v49  ;;  %v10669_v17 = vunpack.i.l.bf16 %v13871_v49 }
 0x251   : > { %v9254_v63 = vsel %vm9245_vm1, %v14385_v60, %v10644_v61  ;;  %v9255_v54 = vsel %vm9245_vm1, %v14386_v18, %v10645_v1  ;;  %v9292_v39 = vsel %vm9271_vm2, %v9266_v12, %v10659_v16  ;;  %v10665_v62 = vunpack.i.h.bf16 %v13878_v20  ;;  %v14044_v12 = vpop.permute.xlu1 %10727 }
 0x252   : > { %v9293_v29 = vsel %vm9271_vm2, %v9267_v40, %v10660_v2  ;;  %v9280_v38 = vsel %vm9271_vm2, %v9254_v63, %v10654_v47  ;;  %v9281_v36 = vsel %vm9271_vm2, %v9255_v54, %v10655_v11  ;;  %v9318_v58 = vsel %vm9297_vm3, %v9292_v39, %v10669_v17  ;;  %v11029_v40 = vld.sshfl [vmem:[%s11105_s16 + $0x68] sm:$0x3f pattern:$0x76325410]  ;;  %v14058_v63 = vld [vmem:[%s11105_s16 + $0xd8] sm:$0x3f]  ;;  %v14061_v54 = vpop.permute.xlu0 %10722 }
 0x253   : > { %v9319_v49 = vsel %vm9297_vm3, %v9293_v29, %v10670_v7  ;;  %v10664_v19 = vunpack.i.l.bf16 %v13878_v20  ;;  %v10680_v52 = vunpack.i.h.bf16 %v13893_v51  ;;  %v10679_v34 = vunpack.i.l.bf16 %v13893_v51  ;;  %v11030_v11 = vld.sshfl [vmem:[%s11105_s16 + $0xd0] sm:$0xff pattern:$0x76325410]  ;;  %v14389_v39 = vld [vmem:[#allocation10_spill] sm:$0xff] }
 0x254   : > { %v10675_v22 = vunpack.i.h.bf16 %v13907_v37  ;;  %v10674_v43 = vunpack.i.l.bf16 %v13907_v37  ;;  %v10690_v3 = vunpack.i.h.bf16 %v13923_v30  ;;  %v10689_v53 = vunpack.i.l.bf16 %v13923_v30  ;;  %v14387_v47 = vld [vmem:[#allocation28_spill] sm:$0xff] }
 0x255   : > { %v9306_v15 = vsel %vm9297_vm3, %v9280_v38, %v10664_v19  ;;  %v9307_v44 = vsel %vm9297_vm3, %v9281_v36, %v10665_v62  ;;  %v9344_v59 = vsel %vm9323_vm4, %v9318_v58, %v10679_v34  ;;  %v10685_v20 = vunpack.i.h.bf16 %v13938_v33  ;;  %v11016_v32 = vld [vmem:[#allocation2 + $0x48] sm:$0xff]  }
 0x256   : > { %v9345_v51 = vsel %vm9323_vm4, %v9319_v49, %v10680_v52  ;;  %v9332_v35 = vsel %vm9323_vm4, %v9306_v15, %v10674_v43  ;;  %v9333_v37 = vsel %vm9323_vm4, %v9307_v44, %v10675_v22  ;;  %v9370_v30 = vsel %vm9349_vm5, %v9344_v59, %v10689_v53  ;;  %10279 = vmatmul.mubr.msk.bf16.gmra.mrb[8].mxu1 %vm9663_vm11, %v11016_v32  ;;  %v14391_v38 = vld [vmem:[#allocation11_spill] sm:$0xff]  ;;  %v14075_v22 = vpop.permute.xlu1 %10737  ;;  %v14077_v53 = vpop.permute.xlu0 %10732 }
 0x257   : > { %v11015_v27 = vld [vmem:[#allocation2 + $0x18] sm:$0xff]   ;;  %v9371_v55 = vsel %vm9349_vm5, %v9345_v51, %v10690_v3  ;;  %v10684_v23 = vunpack.i.l.bf16 %v13938_v33  ;;  %v10700_v0 = vunpack.i.h.bf16 %v13954_v9  ;;  %v10699_v42 = vunpack.i.l.bf16 %v13954_v9  ;;  %10282 = vmatprep.mubr.msk.bf16.mxu1 %vm11065_vm10, %v14359_v10 }
 0x258   : > { %v10695_v4 = vunpack.i.h.bf16 %v13970_v8  ;;  %v10694_v25 = vunpack.i.l.bf16 %v13970_v8  ;;  %v10710_v6 = vunpack.i.h.bf16 %v10708_v28  ;;  %v10709_v21 = vunpack.i.l.bf16 %v10708_v28  ;;  %10255 = vmatmul.mubr.msk.bf16.gmra.mrb[12].mxu0 %vm9663_vm11, %v11015_v27 }
 0x259   : > { %v9359_v33 = vsel %vm9349_vm5, %v9333_v37, %v10685_v20  ;;  %v9396_v45 = vsel %vm9375_vm6, %v9370_v30, %v10699_v42  ;;  %v9397_v9 = vsel %vm9375_vm6, %v9371_v55, %v10700_v0  ;;  %v10705_v1 = vunpack.i.h.bf16 %v10703_v13  ;;  %10258 = vmatprep.mubr.msk.bf16.mxu0 %vm11065_vm10, %v14359_v10 }
 0x25a   : > { %v9358_v8 = vsel %vm9349_vm5, %v9332_v35, %v10684_v23  ;;  %v9385_v24 = vsel %vm9375_vm6, %v9359_v33, %v10695_v4  ;;  %v9422_v31 = vsel %vm9401_vm7, %v9396_v45, %v10709_v21  ;;  %v9423_v48 = vsel %vm9401_vm7, %v9397_v9, %v10710_v6  ;;  %v10748_v35 = vpop.permute.xlu1 %10747  ;;  %v14090_v42 = vpop.permute.xlu0 %10742  ;;  %v14392_v4 = vld [vmem:[#allocation16_spill] sm:$0xff]  ;;  %v14393_v21 = vld [vmem:[#allocation3_spill] sm:$0xff]  ;;  %v14395_v9 = vld [vmem:[#allocation26_spill] sm:$0xff] }
 0x25b   : > { %v10215_v14 = vpack.c.bf16 %v9422_v31, %v9422_v31  ;;  %v10216_v56 = vpack.c.bf16 %v9423_v48, %v9423_v48  ;;  %v10704_v46 = vunpack.i.l.bf16 %v10703_v13  ;;  %v9411_v50 = vsel %vm9401_vm7, %v9385_v24, %v10705_v1  ;;  %v14394_v33 = vld [vmem:[#allocation4_spill] sm:$0xff] }
 0x25c   : > { %v655_v61 = vcombine.high %v211_v26, %v211_v26  ;;  %v9384_v2 = vsel %vm9375_vm6, %v9358_v8, %v10694_v25  ;;  %v10204_v16 = vpack.c.bf16 %v9411_v50, %v9411_v50  ;;  %v662_v28 = vrot.slane %v211_v26, %v11107_v5 }
 0x25d   : > { %v14388_v7 = vcombine.high %v14387_v47, %v14387_v47  ;;  %9549 = vst.msk [vmem:[#allocation2 + $0x50] sm:$0xf] %vm9528_vm8, %v10215_v14  ;;  %9550 = vst.msk [vmem:[#allocation2 + $0x54] sm:$0xf] %vm9528_vm8, %v10216_v56  ;;  %v9410_v60 = vsel %vm9401_vm7, %v9384_v2, %v10704_v46  ;;  %v14390_v62 = vcombine.high %v14389_v39, %v14389_v39  ;;  %v10365_v25 = vunpack.i.h.bf16 %v14392_v4 }
 0x25e   : > { %v10203_v18 = vpack.c.bf16 %v9410_v60, %v9410_v60  ;;  %9538 = vst.msk [vmem:[#allocation2 + $0x24] sm:$0xf] %vm9528_vm8, %v10204_v16  ;;  %v439_v36 = vcombine.high %v14391_v38, %v14391_v38  ;;  %v472_v58 = vcombine.high %v11029_v40, %v11029_v40  ;;  %v669_v13 = vrot.slane %v655_v61, %v11107_v5 }
 0x25f   : > { %v685_v17 = vrot.slane %v14388_v7, %v11107_v5  ;;  %v438_v29 = vrot.slane %v14390_v62, %v11107_v5  ;;  %v670_v49 = vcombine.high %v662_v28, %v662_v28  ;;  %v686_v19 = vcombine.high %v11030_v11, %v11030_v11  ;;  %v10758_v48 = vpop.permute.xlu1 %10757 }
 0x260   : > { %9537 = vst.msk [vmem:[#allocation2 + $0x20] sm:$0xf] %vm9528_vm8, %v10203_v18  ;;  %v14073_v34 = vrot.slane %v14058_v63, %v11107_v5  ;;  %v5038_v3 = vcombine.low %v11029_v40, %v472_v58  ;;  %v5225_v59 = vcombine.low %v669_v13, %v11030_v11  ;;  %v10364_v6 = vunpack.i.l.bf16 %v14392_v4 }
 0x261   : > { %v687_v52 = vcombine.high %v685_v17, %v685_v17  ;;  %v5020_v43 = vcombine.low %v439_v36, %v438_v29  ;;  %v5224_v44 = vcombine.low %v662_v28, %v670_v49  ;;  %v5241_v20 = vcombine.low %v686_v19, %v685_v17  ;;  %v10753_v2 = vpop.permute.xlu0 %10752 }
 0x262   : > { %v5052_v30 = vrot.slane %v5038_v3, %v11107_v5  ;;  %v5239_v55 = vrot.slane %v5225_v59, %v11107_v5  ;;  %v10395_v1 = vunpack.i.h.bf16 %v14395_v9  ;;  %v10394_v8 = vunpack.i.l.bf16 %v14395_v9 }
 0x263   : > { %v5242_v51 = vcombine.low %v687_v52, %v14073_v34  ;;  %v5028_v32 = vrot.slane %v5020_v43, %v11107_v5  ;;  %v5232_v27 = vrot.slane %v5224_v44, %v11107_v5  ;;  %v5249_v23 = vrot.slane %v5241_v20, %v11107_v5 }
 0x264   : > { %v11018_v15 = vld [vmem:[#allocation2 + $0x50] sm:$0xff]   ;;  %v5053_v45 = vcombine.low %v14394_v33, %v5052_v30  ;;  %v10720_v14 = vunpack.i.h.bf16 %v14015_v41  ;;  %v10719_v56 = vunpack.i.l.bf16 %v14015_v41  ;;  %v10715_v46 = vunpack.i.h.bf16 %v14028_v57 }
 0x265   : > { %10283 = vmatmul.mubr.msk.bf16.gmra.mrb[12].mxu1 %vm9663_vm11, %v11018_v15  ;;  %v5256_v0 = vrot.slane %v5242_v51, %v11107_v5  ;;  %v5036_v26 = vcombine.low %v5028_v32, %v14393_v21  ;;  %v5240_v24 = vcombine.low %v5232_v27, %v5239_v55  ;;  %v10714_v50 = vunpack.i.l.bf16 %v14028_v57 }
 0x266   : > { %10286 = vmatprep.mubr.msk.bf16.mxu1 %vm11065_vm10, %v14359_v10  ;;  %v10730_v40 = vunpack.i.h.bf16 %v14044_v12  ;;  %v10729_v61 = vunpack.i.l.bf16 %v14044_v12  ;;  %v9231_v28 = vsel %vm9219_vm0, %v5053_v45, %v10365_v25  ;;  %v10725_v7 = vunpack.i.h.bf16 %v14061_v54 }
 0x267   : > { %v11017_v37 = vld [vmem:[#allocation2 + $0x20] sm:$0xff]   ;;  %v5257_v31 = vcombine.low %v5249_v23, %v5256_v0  ;;  %v9230_v16 = vsel %vm9219_vm0, %v5036_v26, %v10364_v6  ;;  %v9242_v11 = vsel %vm9219_vm0, %v5240_v24, %v10394_v8  ;;  %v10724_v41 = vunpack.i.l.bf16 %v14061_v54 }
 0x268   : > { %10259 = vmatmul.mubr.msk.bf16.gmra.mrb[16].mxu0 %vm9663_vm11, %v11017_v37  ;;  %v10740_v17 = vunpack.i.h.bf16 %v14075_v22  ;;  %v10739_v57 = vunpack.i.l.bf16 %v14075_v22  ;;  %v9268_v60 = vsel %vm9245_vm1, %v9242_v11, %v10719_v56  ;;  %v9256_v18 = vsel %vm9245_vm1, %v9230_v16, %v10714_v50 }
 0x269   : > { %10262 = vmatprep.mubr.msk.bf16.mxu0 %vm11065_vm10, %v14359_v10  ;;  %v9243_v47 = vsel %vm9219_vm0, %v5257_v31, %v10395_v1  ;;  %v9257_v39 = vsel %vm9245_vm1, %v9231_v28, %v10715_v46  ;;  %v9294_v29 = vsel %vm9271_vm2, %v9268_v60, %v10729_v61  ;;  %v10750_v36 = vunpack.i.h.bf16 %v10748_v35 }
 0x26a   : > { %v9269_v12 = vsel %vm9245_vm1, %v9243_v47, %v10720_v14  ;;  %v10749_v58 = vunpack.i.l.bf16 %v10748_v35  ;;  %v10735_v54 = vunpack.i.h.bf16 %v14077_v53  ;;  %v10734_v13 = vunpack.i.l.bf16 %v14077_v53 }
 0x26b   : > { %v10768_v62 = vpop.permute.xlu1 %10767  ;;  %v9295_v38 = vsel %vm9271_vm2, %v9269_v12, %v10730_v40  ;;  %v10760_v49 = vunpack.i.h.bf16 %v10758_v48  ;;  %v10759_v19 = vunpack.i.l.bf16 %v10758_v48  ;;  %v9282_v52 = vsel %vm9271_vm2, %v9256_v18, %v10724_v41  ;;  %v201_v18 = vld [vmem:[%s11105_s16 + $0x78] sm:$0x3f] }
 0x26c   : > { %v9283_v22 = vsel %vm9271_vm2, %v9257_v39, %v10725_v7  ;;  %v9320_v43 = vsel %vm9297_vm3, %v9294_v29, %v10739_v57  ;;  %v9321_v3 = vsel %vm9297_vm3, %v9295_v38, %v10740_v17  ;;  %v10745_v44 = vunpack.i.h.bf16 %v14090_v42 }
 0x26d   : > { %v10744_v59 = vunpack.i.l.bf16 %v14090_v42  ;;  %v10770_v20 = vunpack.i.h.bf16 %v10768_v62  ;;  %v10769_v51 = vunpack.i.l.bf16 %v10768_v62  ;;  %v9346_v35 = vsel %vm9323_vm4, %v9320_v43, %v10749_v58 }
 0x26e   : > { %v10763_v15 = vpop.permute.xlu0 %10762  ;;  %v9347_v53 = vsel %vm9323_vm4, %v9321_v3, %v10750_v36  ;;  %v10755_v37 = vunpack.i.h.bf16 %v10753_v2  ;;  %v10754_v32 = vunpack.i.l.bf16 %v10753_v2  ;;  %v9308_v30 = vsel %vm9297_vm3, %v9282_v52, %v10734_v13  ;;  %v14396_v52 = vld [vmem:[#allocation22_spill] sm:$0xff]  ;;  %v14397_v3 = vld [vmem:[#allocation32_spill] sm:$0xff] }
 0x26f   : > { %v9309_v27 = vsel %vm9297_vm3, %v9283_v22, %v10735_v54  ;;  %v9372_v55 = vsel %vm9349_vm5, %v9346_v35, %v10759_v19  ;;  %v9373_v23 = vsel %vm9349_vm5, %v9347_v53, %v10760_v49  ;;  %v10765_v4 = vunpack.i.h.bf16 %v10763_v15 }
 0x270   : > { %v10764_v25 = vunpack.i.l.bf16 %v10763_v15  ;;  %v9334_v21 = vsel %vm9323_vm4, %v9308_v30, %v10744_v59  ;;  %v9335_v26 = vsel %vm9323_vm4, %v9309_v27, %v10745_v44  ;;  %v9398_v33 = vsel %vm9375_vm6, %v9372_v55, %v10769_v51  ;;  %v14398_v30 = vld [vmem:[#allocation21_spill] sm:$0xff] }
 0x271   : > { %v9399_v45 = vsel %vm9375_vm6, %v9373_v23, %v10770_v20  ;;  %v9360_v9 = vsel %vm9349_vm5, %v9334_v21, %v10754_v32  ;;  %v9361_v1 = vsel %vm9349_vm5, %v9335_v26, %v10755_v37  ;;  %v688_v60 = vcombine.high %v14058_v63, %v14058_v63 }
 0x272   : > { %v9386_v50 = vsel %vm9375_vm6, %v9360_v9, %v10764_v25  ;;  %v9387_v40 = vsel %vm9375_vm6, %v9361_v1, %v10765_v4  ;;  %v703_v62 = vcombine.high %v14073_v34, %v14073_v34  ;;  %v490_v38 = vcombine.high %v201_v18, %v201_v18  ;;  %v14399_v1 = vld [vmem:[#allocation12_spill] sm:$0xff] }
 0x273   : > { %v702_v39 = vrot.slane %v688_v60, %v11107_v5  ;;  %v497_v36 = vrot.slane %v201_v18, %v11107_v5  ;;  %v10370_v27 = vunpack.i.h.bf16 %v14398_v30  ;;  %v10369_v55 = vunpack.i.l.bf16 %v14398_v30 }
 0x275   : > { %v5258_v54 = vcombine.low %v703_v62, %v702_v39  ;;  %v505_v13 = vcombine.high %v497_v36, %v497_v36  ;;  %v5071_v22 = vcombine.low %v14396_v52, %v497_v36 }
 0x277   : > { %v5265_v19 = vrot.slane %v5258_v54, %v11107_v5  ;;  %v5079_v59 = vrot.slane %v5071_v22, %v11107_v5 }
 0x278   : > { %v10778_v0 = vpop.permute.xlu1 %10777 }
 0x279   : > { %v10780_v42 = vunpack.i.h.bf16 %v10778_v0  ;;  %v10779_v6 = vunpack.i.l.bf16 %v10778_v0  ;;  %v9244_v15 = vsel %vm9219_vm0, %v5265_v19, %v14397_v3 }
 0x27b   : > { %v9424_v8 = vsel %vm9401_vm7, %v9398_v33, %v10779_v6  ;;  %v9425_v24 = vsel %vm9401_vm7, %v9399_v45, %v10780_v42  ;;  %v10773_v31 = vpop.permute.xlu0 %10772 }
 0x27c   : > { %v10217_v48 = vpack.c.bf16 %v9424_v8, %v9424_v8  ;;  %v10218_v14 = vpack.c.bf16 %v9425_v24, %v9425_v24  ;;  %v10775_v56 = vunpack.i.h.bf16 %v10773_v31  ;;  %v10774_v46 = vunpack.i.l.bf16 %v10773_v31  ;;  %v14400_v8 = vld [vmem:[#allocation13_spill] sm:$0xff] }
 0x27d   : > { %v14401_v24 = vcombine.low %v14399_v1, %v14400_v8 }
 0x27e   : > { %9551 = vst.msk [vmem:[#allocation2 + $0x58] sm:$0xf] %vm9528_vm8, %v10217_v48  ;;  %9552 = vst.msk [vmem:[#allocation2 + $0x5c] sm:$0xf] %vm9528_vm8, %v10218_v14  ;;  %v9412_v61 = vsel %vm9401_vm7, %v9386_v50, %v10774_v46  ;;  %v9413_v2 = vsel %vm9401_vm7, %v9387_v40, %v10775_v56  ;;  %v6247_v47 = vpop.permute.xlu1 %6246 }
 0x27f   : > { %v10205_v16 = vpack.c.bf16 %v9412_v61, %v9412_v61  ;;  %v10206_v28 = vpack.c.bf16 %v9413_v2, %v9413_v2  ;;  %v9270_v44 = vsel %vm9245_vm1, %v9244_v15, %v6247_v47  ;;  %v9232_v31 = vsel %vm9219_vm0, %v14401_v24, %v10369_v55 }
 0x281   : > { %9539 = vst.msk [vmem:[#allocation2 + $0x28] sm:$0xf] %vm9528_vm8, %v10205_v16  ;;  %9540 = vst.msk [vmem:[#allocation2 + $0x2c] sm:$0xf] %vm9528_vm8, %v10206_v28 }
 0x284   : > { %v10783_v17 = vpop.permute.xlu0 %10782 }
 0x285   : > { %v11020_v11 = vld [vmem:[#allocation2 + $0x58] sm:$0xff]   ;;  %v6738_v41 = vpop.permute.xlu1 %6737  ;;  %v10785_v25 = vunpack.i.h.bf16 %v10783_v17  ;;  %v10784_v42 = vunpack.i.l.bf16 %v10783_v17 }
 0x286   : > { %10287 = vmatmul.mubr.msk.bf16.gmra.mrb[16].mxu1 %vm9663_vm11, %v11020_v11  ;;  %v9296_v51 = vsel %vm9271_vm2, %v9270_v44, %v6738_v41 }
 0x287   : > { %10290 = vmatprep.mubr.msk.bf16.mxu1 %vm11065_vm10, %v14359_v10  ;;  %v9258_v46 = vsel %vm9245_vm1, %v9232_v31, %v10784_v42 }
 0x288   : > { %v11019_v7 = vld [vmem:[#allocation2 + $0x28] sm:$0xff]  }
 0x289   : > { %10263 = vmatmul.mubr.msk.bf16.gmra.mrb[20].mxu0 %vm9663_vm11, %v11019_v7 }
 0x28a   : > { %10266 = vmatprep.mubr.msk.bf16.mxu0 %vm11065_vm10, %v14359_v10  ;;  %v504_v10 = vrot.slane %v490_v38, %v11107_v5 }
 0x28b   : > { %v10788_v12 = vpop.permute.xlu0 %10787 }
 0x28c   : > { %v7229_v57 = vpop.permute.xlu1 %7228  ;;  %v5072_v43 = vcombine.low %v505_v13, %v504_v10  ;;  %v10790_v6 = vunpack.i.h.bf16 %v10788_v12  ;;  %v10789_v21 = vunpack.i.l.bf16 %v10788_v12 }
 0x28d   : > { %v9322_v53 = vsel %vm9297_vm3, %v9296_v51, %v7229_v57 }
 0x28e   : > { %v5086_v20 = vrot.slane %v5072_v43, %v11107_v5  ;;  %v9284_v2 = vsel %vm9271_vm2, %v9258_v46, %v10789_v21 }
 0x290   : > { %v5087_v23 = vcombine.low %v5079_v59, %v5086_v20 }
 0x292   : > { %v9233_v48 = vsel %vm9219_vm0, %v5087_v23, %v10370_v27 }
 0x293   : > { %v10793_v58 = vpop.permute.xlu0 %10792  ;;  %v9259_v50 = vsel %vm9245_vm1, %v9233_v48, %v10785_v25 }
 0x294   : > { %v7720_v29 = vpop.permute.xlu1 %7719  ;;  %v10795_v45 = vunpack.i.h.bf16 %v10793_v58  ;;  %v10794_v9 = vunpack.i.l.bf16 %v10793_v58  ;;  %v9285_v16 = vsel %vm9271_vm2, %v9259_v50, %v10790_v6 }
 0x295   : > { %v9348_v37 = vsel %vm9323_vm4, %v9322_v53, %v7720_v29 }
 0x296   : > { %v9310_v47 = vsel %vm9297_vm3, %v9284_v2, %v10794_v9  ;;  %v9311_v7 = vsel %vm9297_vm3, %v9285_v16, %v10795_v45 }
 0x29a   : > { %v10798_v63 = vpop.permute.xlu0 %10797 }
 0x29b   : > { %v8211_v49 = vpop.permute.xlu1 %8210  ;;  %v10800_v14 = vunpack.i.h.bf16 %v10798_v63  ;;  %v10799_v56 = vunpack.i.l.bf16 %v10798_v63 }
 0x29c   : > { %v9374_v32 = vsel %vm9349_vm5, %v9348_v37, %v8211_v49 }
 0x29d   : > { %v9336_v41 = vsel %vm9323_vm4, %v9310_v47, %v10799_v56  ;;  %v9337_v17 = vsel %vm9323_vm4, %v9311_v7, %v10800_v14 }
 0x2a3   : > { %v10803_v35 = vpop.permute.xlu0 %10802 }
 0x2a4   : > { %v8702_v34 = vpop.permute.xlu1 %8701  ;;  %v10805_v40 = vunpack.i.h.bf16 %v10803_v35  ;;  %v10804_v61 = vunpack.i.l.bf16 %v10803_v35 }
 0x2a5   : > { %v9400_v0 = vsel %vm9375_vm6, %v9374_v32, %v8702_v34 }
 0x2a6   : > { %v9362_v60 = vsel %vm9349_vm5, %v9336_v41, %v10804_v61  ;;  %v9363_v12 = vsel %vm9349_vm5, %v9337_v17, %v10805_v40 }
 0x2ac   : > { %v10808_v26 = vpop.permute.xlu0 %10807 }
 0x2ad   : > { %v9193_v4 = vpop.permute.xlu1 %9192  ;;  %v10810_v28 = vunpack.i.h.bf16 %v10808_v26  ;;  %v10809_v11 = vunpack.i.l.bf16 %v10808_v26 }
 0x2ae   : > { %v9426_v5 = vsel %vm9401_vm7, %v9400_v0, %v9193_v4 }
 0x2af   : > { %v10219_v33 = vpack.c.bf16 %v9426_v5, %v9426_v5  ;;  %v9388_v62 = vsel %vm9375_vm6, %v9362_v60, %v10809_v11  ;;  %v9389_v29 = vsel %vm9375_vm6, %v9363_v12, %v10810_v28 }
 0x2b1   : > { %9554 = vst.msk [vmem:[#allocation2 + $0x60] sm:$0x3] %vm9553_vm12, %v10219_v33 }
 0x2b5   : > { %v10813_v57 = vpop.permute.xlu0 %10812 }
 0x2b6   : > { %v10815_v18 = vunpack.i.h.bf16 %v10813_v57  ;;  %v10814_v39 = vunpack.i.l.bf16 %v10813_v57 }
 0x2b7   : > { %v9741_v13 = vpop.f32.mrb[0].mxu0 }
 0x2b8   : > { %v9414_v38 = vsel %vm9401_vm7, %v9388_v62, %v10814_v39  ;;  %v9415_v36 = vsel %vm9401_vm7, %v9389_v29, %v10815_v18  ;;  %v11021_v58 = vld [vmem:[#allocation2 + $0x60] ss:$0 sps:$4 sm:$0x33]   ;;  %9843 = vst [vmem:[%s14205_s6] sm:$0xff] %v9741_v13  ;;  %v10244_v49 = vpop.f32.mrb[1].mxu0 }
 0x2b9   : > { %v10207_v54 = vpack.c.bf16 %v9414_v38, %v9414_v38  ;;  %v10208_v10 = vpack.c.bf16 %v9415_v36, %v9415_v36  ;;  %10291 = vmatmul.mubr.msk.bf16.gmra.mrb[20].mxu1 %vm9663_vm11, %v11021_v58  ;;  %v9744_v19 = vpop.f32.mrb[2].mxu0 }
 0x2ba   : > { %9844 = vst [vmem:[%s14205_s6 + $0x8] sm:$0xff] %v9744_v19  ;;  %v10245_v52 = vpop.f32.mrb[3].mxu0 }
 0x2bb   : > { %9541 = vst.msk [vmem:[#allocation2 + $0x30] sm:$0xf] %vm9528_vm8, %v10207_v54  ;;  %9542 = vst.msk [vmem:[#allocation2 + $0x34] sm:$0xf] %vm9528_vm8, %v10208_v10 }
 0x2c2   : > { %v11022_v63 = vld [vmem:[#allocation2 + $0x30] sm:$0xff]  }
 0x2c3   : > { %10267 = vmatmul.mubr.msk.bf16.gmra.mrb[24].mxu0 %vm9663_vm11, %v11022_v63 }
 0x2e0   : > { %v9749_v22 = vpop.f32.mrb[4].mxu0 }
 0x2e1   : > { %9845 = vst [vmem:[%s14205_s6 + $0x10] sm:$0xff] %v9749_v22  ;;  %v10248_v43 = vpop.f32.mrb[5].mxu0 }
 0x2e2   : > { %v9752_v3 = vpop.f32.mrb[6].mxu0 }
 0x2e3   : > { %9846 = vst [vmem:[%s14205_s6 + $0x18] sm:$0xff] %v9752_v3  ;;  %v10249_v15 = vpop.f32.mrb[7].mxu0 }
 0x2e9   : > { %v9797_v34 = vpop.f32.mrb[0].mxu1 }
 0x2ea   : > { %9857 = vst [vmem:[%s14205_s6 + $0x70] sm:$0xff] %v9797_v34  ;;  %v10272_v44 = vpop.f32.mrb[1].mxu1 }
 0x2eb   : > { %v9800_v59 = vpop.f32.mrb[2].mxu1 }
 0x2ec   : > { %9858 = vst [vmem:[%s14205_s6 + $0x78] sm:$0xff] %v9800_v59  ;;  %v10273_v20 = vpop.f32.mrb[3].mxu1 }
 0x318   : > { %v9805_v51 = vpop.f32.mrb[4].mxu1 }
 0x319   : > { %9859 = vst [vmem:[%s14205_s6 + $0x80] sm:$0xff] %v9805_v51  ;;  %v10276_v35 = vpop.f32.mrb[5].mxu1 }
 0x31a   : > { %v9808_v53 = vpop.f32.mrb[6].mxu1 }
 0x31b   : > { %9860 = vst [vmem:[%s14205_s6 + $0x88] sm:$0xff] %v9808_v53  ;;  %v10277_v37 = vpop.f32.mrb[7].mxu1 }
 0x31c   : > { %v9757_v32 = vpop.f32.mrb[8].mxu0 }
 0x31d   : > { %9847 = vst [vmem:[%s14205_s6 + $0x20] sm:$0xff] %v9757_v32  ;;  %v10252_v30 = vpop.f32.mrb[9].mxu0 }
 0x31e   : > { %v9760_v27 = vpop.f32.mrb[10].mxu0 }
 0x31f   : > { %9848 = vst [vmem:[%s14205_s6 + $0x28] sm:$0xff] %v9760_v27  ;;  %v10253_v55 = vpop.f32.mrb[11].mxu0 }
 0x329   : > { %v9813_v23 = vpop.f32.mrb[8].mxu1 }
 0x32a   : > { %9861 = vst [vmem:[%s14205_s6 + $0x90] sm:$0xff] %v9813_v23  ;;  %v10280_v4 = vpop.f32.mrb[9].mxu1 }
 0x32b   : > { %v9765_v0 = vpop.f32.mrb[12].mxu0  ;;  %v9816_v42 = vpop.f32.mrb[10].mxu1 }
 0x32c   : > { %9849 = vst [vmem:[%s14205_s6 + $0x30] sm:$0xff] %v9765_v0  ;;  %v10256_v25 = vpop.f32.mrb[13].mxu0  ;;  %9862 = vst [vmem:[%s14205_s6 + $0x98] sm:$0xff] %v9816_v42  ;;  %v10281_v6 = vpop.f32.mrb[11].mxu1 }
 0x32d   : > { %v9768_v5 = vpop.f32.mrb[14].mxu0 }
 0x32e   : > { %9850 = vst [vmem:[%s14205_s6 + $0x38] sm:$0xff] %v9768_v5  ;;  %v10257_v21 = vpop.f32.mrb[15].mxu0 }
 0x338   : > { %v9821_v26 = vpop.f32.mrb[12].mxu1 }
 0x339   : > { %9863 = vst [vmem:[%s14205_s6 + $0xa0] sm:$0xff] %v9821_v26  ;;  %v10284_v33 = vpop.f32.mrb[13].mxu1 }
 0x33a   : > { %v9824_v45 = vpop.f32.mrb[14].mxu1 }
 0x33b   : > { %v9773_v9 = vpop.f32.mrb[16].mxu0  ;;  %9864 = vst [vmem:[%s14205_s6 + $0xa8] sm:$0xff] %v9824_v45  ;;  %v10285_v1 = vpop.f32.mrb[15].mxu1 }
 0x33c   : > { %9851 = vst [vmem:[%s14205_s6 + $0x40] sm:$0xff] %v9773_v9  ;;  %v10260_v8 = vpop.f32.mrb[17].mxu0 }
 0x33d   : > { %v9776_v24 = vpop.f32.mrb[18].mxu0 }
 0x33e   : > { %9852 = vst [vmem:[%s14205_s6 + $0x48] sm:$0xff] %v9776_v24  ;;  %v10261_v31 = vpop.f32.mrb[19].mxu0 }
 0x359   : > { %v9829_v48 = vpop.f32.mrb[16].mxu1 }
 0x35a   : > { %9865 = vst [vmem:[%s14205_s6 + $0xb0] sm:$0xff] %v9829_v48  ;;  %v10288_v14 = vpop.f32.mrb[17].mxu1 }
 0x35b   : > { %v9832_v56 = vpop.f32.mrb[18].mxu1 }
 0x35c   : > { %v9781_v46 = vpop.f32.mrb[20].mxu0  ;;  %9866 = vst [vmem:[%s14205_s6 + $0xb8] sm:$0xff] %v9832_v56  ;;  %v10289_v50 = vpop.f32.mrb[19].mxu1 }
 0x35d   : > { %9853 = vst [vmem:[%s14205_s6 + $0x50] sm:$0xff] %v9781_v46  ;;  %v10264_v40 = vpop.f32.mrb[21].mxu0 }
 0x35e   : > { %v9784_v61 = vpop.f32.mrb[22].mxu0 }
 0x35f   : > { %9854 = vst [vmem:[%s14205_s6 + $0x58] sm:$0xff] %v9784_v61  ;;  %v10265_v2 = vpop.f32.mrb[23].mxu0 }
 0x38c   : > { %v9837_v16 = vpop.f32.mrb[20].mxu1 }
 0x38d   : > { %9867 = vst [vmem:[%s14205_s6 + $0xc0] sm:$0xf] %v9837_v16  ;;  %v10292_v28 = vpop.f32.mrb[21].mxu1 }
 0x38e   : > { %v9840_v11 = vpop.f32.mrb[22].mxu1 }
 0x38f   : > { %v10293_v47 = vpop.f32.mrb[23].mxu1 }
 0x396   : > { %v9789_v7 = vpop.f32.mrb[24].mxu0 }
 0x397   : > { %9855 = vst [vmem:[%s14205_s6 + $0x60] sm:$0xff] %v9789_v7  ;;  %v10268_v41 = vpop.f32.mrb[25].mxu0 }
 0x398   : > { %v9792_v17 = vpop.f32.mrb[26].mxu0 }
 0x399   : > { %9856 = vst [vmem:[%s14205_s6 + $0x68] sm:$0xff] %v9792_v17  ;;  %v10269_v57 = vpop.f32.mrb[27].mxu0 }
 0x39a PF: > { %s12_s11 = sadd.s32 1, %s11053_s11   ;;  %s14402_s9 = smov %s11049_s10 }
 0x39b   : > { %p9_p5 = scmp.ge.s32.totalorder %s12_s11, 4   ;;  %s14403_s10 = smov %s14405_s12 }
 0x39d   :  { %11 = sbr.rel (!%p9_p5) target bundleno = 2 (0x2), region = 67 }

</bundles_post_ra>
